<compile_context>
chip_gen: v6e
topology: v6e:2x2x1
jax: 0.10.0
libtpu: 0.0.40
codegen_flags: <defaults>
</compile_context>

<pallas_src>
import jax
import jax.numpy as jnp
from jax.experimental import pallas as pl
from jax.experimental.pallas import tpu as pltpu

IN_FEATURES = 5604
H1 = 768
H2 = 384
OUT = 1

# Padded sizes for TPU lane/sublane alignment.
K_PAD = 5632          # 44 * 128, zero-padded contraction dim
OUT_PAD = 128         # final output padded to one lane-width; column 0 is real
TK = 2816             # contraction tile (5632 = 2 * 2816) -> only 2 K grid steps
MAX_TB = 512          # max batch tile; n_b == 1 for B <= 512 => W1 streamed once


def mlp_kernel(x_ref, w1_ref, b1_ref, w2_ref, b2_ref, w3_ref, b3_ref,
               out_ref, acc_ref):
    """Accumulate x @ W1 over K tiles (bf16 operands, fp32 acc);
    on the last K tile run the rest of the MLP in fp32."""
    k = pl.program_id(1)

    @pl.when(k == 0)
    def _():
        acc_ref[...] = jnp.zeros_like(acc_ref)

    # x is fully resident in VMEM (bf16); slice the current K chunk.
    off = pl.multiple_of(k * TK, 128)
    x_tile = x_ref[:, pl.ds(off, TK)]                       # bf16 (TB, TK)
    acc_ref[...] += jnp.dot(x_tile, w1_ref[...],            # bf16 x bf16 -> f32
                            preferred_element_type=jnp.float32)

    @pl.when(k == pl.num_programs(1) - 1)
    def _():
        # linear -> dropout1 (identity, eval) -> relu
        h = jnp.maximum(acc_ref[...] + b1_ref[...], 0.0)
        # output1
        y0 = jnp.dot(h, w2_ref[...], preferred_element_type=jnp.float32) + b2_ref[...]
        # dropout2 (identity, eval) -> relu
        y1 = jnp.maximum(y0, 0.0)
        # output2 (padded to 128 output lanes; only column 0 is meaningful)
        y2 = jnp.dot(y1, w3_ref[...], preferred_element_type=jnp.float32) + b3_ref[...]
        out_ref[...] = y2.astype(out_ref.dtype)


def prepare_params(w1, b1, w2, b2, w3, b3):
    """Pad / reshape / cast parameters ONCE (call outside the hot path and reuse).

    W1 is stored in bf16: it is the HBM-bound stream, and jnp.dot at default
    precision already decomposes fp32 into bf16 MXU passes, so the accuracy
    delta is small.  The tiny tail weights stay fp32."""
    w1_p = jnp.zeros((K_PAD, H1), jnp.bfloat16).at[:IN_FEATURES, :].set(
        w1.astype(jnp.bfloat16))
    b1_p = b1.reshape(1, H1).astype(jnp.float32)
    w2_p = w2.astype(jnp.float32)
    b2_p = b2.reshape(1, H2).astype(jnp.float32)
    w3_p = jnp.zeros((H2, OUT_PAD), jnp.float32).at[:, :OUT].set(
        w3.astype(jnp.float32))
    b3_p = jnp.zeros((1, OUT_PAD), jnp.float32).at[:, :OUT].set(
        b3.reshape(1, OUT).astype(jnp.float32))
    return w1_p, b1_p, w2_p, b2_p, w3_p, b3_p


@jax.jit
def mlp_forward(feature, w1_p, b1_p, w2_p, b2_p, w3_p, b3_p):
    """feature: (B, 5604) float32. Params from prepare_params. Returns (B, 1) f32."""
    B = feature.shape[0]

    # Batch tiling: a single block (padded to a multiple of 8) for B <= 512 so
    # W1 is streamed exactly once; 512-row blocks beyond that so re-streaming
    # is bounded by ceil(B/512) and overlaps with real MXU work.
    if B <= MAX_TB:
        TB = max(8, ((B + 7) // 8) * 8)
        B_pad = TB
    else:
        TB = MAX_TB
        B_pad = ((B + MAX_TB - 1) // MAX_TB) * MAX_TB
    n_b = B_pad // TB
    n_k = K_PAD // TK

    # Single fused pad + bf16 cast (no zeros().at[].set() materialization of a
    # separate fp32 padded buffer); halves padded-x HBM bytes as well.
    x_p = jnp.pad(feature,
                  ((0, B_pad - B), (0, K_PAD - IN_FEATURES))).astype(jnp.bfloat16)

    out_pad = pl.pallas_call(
        mlp_kernel,
        out_shape=jax.ShapeDtypeStruct((B_pad, OUT_PAD), jnp.float32),
        grid_spec=pltpu.PrefetchScalarGridSpec(
            num_scalar_prefetch=0,
            grid=(n_b, n_k),
            in_specs=[
                pl.BlockSpec((TB, K_PAD), lambda b, k: (b, 0)),      # x (resident, bf16)
                pl.BlockSpec((TK, H1), lambda b, k: (k, 0)),         # W1 tile (bf16)
                pl.BlockSpec((1, H1), lambda b, k: (0, 0)),          # b1
                pl.BlockSpec((H1, H2), lambda b, k: (0, 0)),         # W2
                pl.BlockSpec((1, H2), lambda b, k: (0, 0)),          # b2
                pl.BlockSpec((H2, OUT_PAD), lambda b, k: (0, 0)),    # W3 (padded)
                pl.BlockSpec((1, OUT_PAD), lambda b, k: (0, 0)),     # b3 (padded)
            ],
            out_specs=pl.BlockSpec((TB, OUT_PAD), lambda b, k: (b, 0)),
            scratch_shapes=[pltpu.VMEM((TB, H1), jnp.float32)],
        ),
        compiler_params=pltpu.CompilerParams(
            dimension_semantics=("parallel", "arbitrary"),
            # Worst case (TB=512, TK=2816, bf16 streams) ~24 MiB; leave headroom
            # but stay well under v7x's 64 MiB physical VMEM.
            vmem_limit_bytes=40 << 20,
        ),
    )(x_p, w1_p, b1_p, w2_p, b2_p, w3_p, b3_p)

    return out_pad[:B, :OUT]


def init_params(key):
    """Deterministic parameter init (shapes match the PyTorch module)."""
    k1, k2, k3, k4, k5, k6 = jax.random.split(key, 6)
    s1 = 1.0 / jnp.sqrt(IN_FEATURES)
    s2 = 1.0 / jnp.sqrt(H1)
    s3 = 1.0 / jnp.sqrt(H2)
    w1 = jax.random.uniform(k1, (IN_FEATURES, H1), jnp.float32, -s1, s1)
    b1 = jax.random.uniform(k2, (H1,), jnp.float32, -s1, s1)
    w2 = jax.random.uniform(k3, (H1, H2), jnp.float32, -s2, s2)
    b2 = jax.random.uniform(k4, (H2,), jnp.float32, -s2, s2)
    w3 = jax.random.uniform(k5, (H2, OUT), jnp.float32, -s3, s3)
    b3 = jax.random.uniform(k6, (OUT,), jnp.float32, -s3, s3)
    return w1, b1, w2, b2, w3, b3


if __name__ == "__main__":
    key = jax.random.PRNGKey(0)
    kx, kp = jax.random.split(key)

    B = 8
    feature = jax.random.normal(kx, (B, IN_FEATURES), jnp.float32)
    params = init_params(kp)

    # Pad/cast weights once, outside the jitted forward.
    prepared = prepare_params(*params)

    y = mlp_forward(feature, *prepared)
    y = jax.block_until_ready(y)

    # Pure-JAX reference check (eval-mode dropout = identity).
    w1, b1, w2, b2, w3, b3 = params
    h = jnp.maximum(feature @ w1 + b1, 0.0)
    y0 = h @ w2 + b2
    y1 = jnp.maximum(y0, 0.0)
    y_ref = y1 @ w3 + b3
    assert y.shape == (B, OUT)
    # Tolerance widened slightly vs fp32 storage because W1/x are streamed in
    # bf16 (fp32 accumulation); the error stays well within a few 1e-3.
    assert jnp.allclose(y, y_ref, atol=5e-3, rtol=5e-3), "mismatch vs reference"

    print("KERNEL_OK")
</pallas_src>

<mosaic_0001>
module attributes {stable_mosaic.version = 11 : i64} {
  func.func @mlp_kernel(%arg0: i32, %arg1: i32, %arg2: memref<8x5632xbf16, #tpu.memory_space<vmem>>, %arg3: memref<2816x768xbf16, #tpu.memory_space<vmem>>, %arg4: memref<1x768xf32, #tpu.memory_space<vmem>>, %arg5: memref<768x384xf32, #tpu.memory_space<vmem>>, %arg6: memref<1x384xf32, #tpu.memory_space<vmem>>, %arg7: memref<384x128xf32, #tpu.memory_space<vmem>>, %arg8: memref<1x128xf32, #tpu.memory_space<vmem>>, %arg9: memref<8x128xf32, #tpu.memory_space<vmem>>, %arg10: memref<8x768xf32, #tpu.memory_space<vmem>>) attributes {dimension_semantics = [#tpu.dimension_semantics<parallel>, #tpu.dimension_semantics<arbitrary>], iteration_bounds = array<i64: 1, 2>, scalar_prefetch = 0 : i64, scratch_operands = 1 : i64, tpu.core_type = #tpu.core_type<tc>, window_params = [{transform_indices = @transform_0, window_bounds = array<i64: 8, 5632>}, {transform_indices = @transform_1, window_bounds = array<i64: 2816, 768>}, {pipeline_mode = #tpu.pipeline_mode<synchronous>, transform_indices = @transform_2, window_bounds = array<i64: 1, 768>}, {pipeline_mode = #tpu.pipeline_mode<synchronous>, transform_indices = @transform_3, window_bounds = array<i64: 768, 384>}, {pipeline_mode = #tpu.pipeline_mode<synchronous>, transform_indices = @transform_4, window_bounds = array<i64: 1, 384>}, {pipeline_mode = #tpu.pipeline_mode<synchronous>, transform_indices = @transform_5, window_bounds = array<i64: 384, 128>}, {pipeline_mode = #tpu.pipeline_mode<synchronous>, transform_indices = @transform_6, window_bounds = array<i64: 1, 128>}, {transform_indices = @transform_7, window_bounds = array<i64: 8, 128>}]} {
    %c0_i32 = arith.constant 0 : i32
    %0 = arith.cmpi eq, %arg1, %c0_i32 : i32
    %1 = arith.extui %0 : i1 to i32
    %c0_i32_0 = arith.constant 0 : i32
    %2 = arith.cmpi ne, %1, %c0_i32_0 : i32
    scf.if %2 {
      %cst_8 = arith.constant 0.000000e+00 : f32
      %15 = vector.broadcast %cst_8 : f32 to vector<8x768xf32>
      %c0_9 = arith.constant 0 : index
      %c0_10 = arith.constant 0 : index
      %16 = vector.load %arg10[%c0_9, %c0_10] : memref<8x768xf32, #tpu.memory_space<vmem>>, vector<8x768xf32>
      tpu.vector_store %arg10[%c0_9, %c0_10], %15 {strides = array<i32>} : memref<8x768xf32, #tpu.memory_space<vmem>>, vector<8x768xf32>,
    } else {
    }
    %c2816_i32 = arith.constant 2816 : i32
    %3 = arith.muli %arg1, %c2816_i32 : i32
    %4 = tpu.assume_multiple %3, 128 : i32
    %c0 = arith.constant 0 : index
    %5 = arith.index_cast %4 : i32 to index
    %6 = vector.load %arg2[%c0, %5] : memref<8x5632xbf16, #tpu.memory_space<vmem>>, vector<8x2816xbf16>
    %c0_1 = arith.constant 0 : index
    %c0_2 = arith.constant 0 : index
    %7 = vector.load %arg10[%c0_1, %c0_2] : memref<8x768xf32, #tpu.memory_space<vmem>>, vector<8x768xf32>
    %c0_3 = arith.constant 0 : index
    %c0_4 = arith.constant 0 : index
    %8 = vector.load %arg3[%c0_3, %c0_4] : memref<2816x768xbf16, #tpu.memory_space<vmem>>, vector<2816x768xbf16>
    %cst = arith.constant dense<0.000000e+00> : vector<8x768xf32>
    %9 = tpu.matmul %6, %8, %cst {dimension_numbers = #tpu.dot_dimension_numbers<[1], [0], [0], [1], [0, 0, 1, 1], [], []>} : vector<8x2816xbf16>, vector<2816x768xbf16>, vector<8x768xf32> -> vector<8x768xf32>
    %10 = arith.addf %7, %9 : vector<8x768xf32>
    %c0_5 = arith.constant 0 : index
    %c0_6 = arith.constant 0 : index
    %11 = vector.load %arg10[%c0_5, %c0_6] : memref<8x768xf32, #tpu.memory_space<vmem>>, vector<8x768xf32>
    tpu.vector_store %arg10[%c0_5, %c0_6], %10 {strides = array<i32>} : memref<8x768xf32, #tpu.memory_space<vmem>>, vector<8x768xf32>,
    %c1_i32 = arith.constant 1 : i32
    %12 = arith.cmpi eq, %arg1, %c1_i32 : i32
    %13 = arith.extui %12 : i1 to i32
    %c0_i32_7 = arith.constant 0 : i32
    %14 = arith.cmpi ne, %13, %c0_i32_7 : i32
    scf.if %14 {
      %c0_8 = arith.constant 0 : index
      %c0_9 = arith.constant 0 : index
      %15 = vector.load %arg10[%c0_8, %c0_9] : memref<8x768xf32, #tpu.memory_space<vmem>>, vector<8x768xf32>
      %c0_10 = arith.constant 0 : index
      %c0_11 = arith.constant 0 : index
      %16 = vector.load %arg4[%c0_10, %c0_11] : memref<1x768xf32, #tpu.memory_space<vmem>>, vector<1x768xf32>
      %17 = vector.broadcast %16 : vector<1x768xf32> to vector<8x768xf32>
      %18 = arith.addf %15, %17 : vector<8x768xf32>
      %cst_12 = arith.constant 0.000000e+00 : f32
      %19 = vector.broadcast %cst_12 : f32 to vector<8x768xf32>
      %20 = arith.maximumf %18, %19 : vector<8x768xf32>
      %c0_13 = arith.constant 0 : index
      %c0_14 = arith.constant 0 : index
      %21 = vector.load %arg5[%c0_13, %c0_14] : memref<768x384xf32, #tpu.memory_space<vmem>>, vector<768x384xf32>
      %cst_15 = arith.constant dense<0.000000e+00> : vector<8x384xf32>
      %22 = tpu.matmul %20, %21, %cst_15 {dimension_numbers = #tpu.dot_dimension_numbers<[1], [0], [0], [1], [0, 0, 1, 1], [], []>} : vector<8x768xf32>, vector<768x384xf32>, vector<8x384xf32> -> vector<8x384xf32>
      %c0_16 = arith.constant 0 : index
      %c0_17 = arith.constant 0 : index
      %23 = vector.load %arg6[%c0_16, %c0_17] : memref<1x384xf32, #tpu.memory_space<vmem>>, vector<1x384xf32>
      %24 = vector.broadcast %23 : vector<1x384xf32> to vector<8x384xf32>
      %25 = arith.addf %22, %24 : vector<8x384xf32>
      %cst_18 = arith.constant 0.000000e+00 : f32
      %26 = vector.broadcast %cst_18 : f32 to vector<8x384xf32>
      %27 = arith.maximumf %25, %26 : vector<8x384xf32>
      %c0_19 = arith.constant 0 : index
      %c0_20 = arith.constant 0 : index
      %28 = vector.load %arg7[%c0_19, %c0_20] : memref<384x128xf32, #tpu.memory_space<vmem>>, vector<384x128xf32>
      %cst_21 = arith.constant dense<0.000000e+00> : vector<8x128xf32>
      %29 = tpu.matmul %27, %28, %cst_21 {dimension_numbers = #tpu.dot_dimension_numbers<[1], [0], [0], [1], [0, 0, 1, 1], [], []>} : vector<8x384xf32>, vector<384x128xf32>, vector<8x128xf32> -> vector<8x128xf32>
      %c0_22 = arith.constant 0 : index
      %c0_23 = arith.constant 0 : index
      %30 = vector.load %arg8[%c0_22, %c0_23] : memref<1x128xf32, #tpu.memory_space<vmem>>, vector<1x128xf32>
      %31 = vector.broadcast %30 : vector<1x128xf32> to vector<8x128xf32>
      %32 = arith.addf %29, %31 : vector<8x128xf32>
      %c0_24 = arith.constant 0 : index
      %c0_25 = arith.constant 0 : index
      %33 = vector.load %arg9[%c0_24, %c0_25] : memref<8x128xf32, #tpu.memory_space<vmem>>, vector<8x128xf32>
      tpu.vector_store %arg9[%c0_24, %c0_25], %32 {strides = array<i32>} : memref<8x128xf32, #tpu.memory_space<vmem>>, vector<8x128xf32>,
    } else {
    }
    return
  }
  func.func @transform_0(%arg0: i32, %arg1: i32) -> (i32, i32) {
    %c0_i32 = arith.constant 0 : i32
    %c0_i32_0 = arith.constant 0 : i32
    return %arg0, %c0_i32 : i32, i32
  }
  func.func @transform_1(%arg0: i32, %arg1: i32) -> (i32, i32) {
    %c0_i32 = arith.constant 0 : i32
    %c0_i32_0 = arith.constant 0 : i32
    return %arg1, %c0_i32 : i32, i32
  }
  func.func @transform_2(%arg0: i32, %arg1: i32) -> (i32, i32) {
    %c0_i32 = arith.constant 0 : i32
    %c0_i32_0 = arith.constant 0 : i32
    %c0_i32_1 = arith.constant 0 : i32
    return %c0_i32, %c0_i32_0 : i32, i32
  }
  func.func @transform_3(%arg0: i32, %arg1: i32) -> (i32, i32) {
    %c0_i32 = arith.constant 0 : i32
    %c0_i32_0 = arith.constant 0 : i32
    %c0_i32_1 = arith.constant 0 : i32
    return %c0_i32, %c0_i32_0 : i32, i32
  }
  func.func @transform_4(%arg0: i32, %arg1: i32) -> (i32, i32) {
    %c0_i32 = arith.constant 0 : i32
    %c0_i32_0 = arith.constant 0 : i32
    %c0_i32_1 = arith.constant 0 : i32
    return %c0_i32, %c0_i32_0 : i32, i32
  }
  func.func @transform_5(%arg0: i32, %arg1: i32) -> (i32, i32) {
    %c0_i32 = arith.constant 0 : i32
    %c0_i32_0 = arith.constant 0 : i32
    %c0_i32_1 = arith.constant 0 : i32
    return %c0_i32, %c0_i32_0 : i32, i32
  }
  func.func @transform_6(%arg0: i32, %arg1: i32) -> (i32, i32) {
    %c0_i32 = arith.constant 0 : i32
    %c0_i32_0 = arith.constant 0 : i32
    %c0_i32_1 = arith.constant 0 : i32
    return %c0_i32, %c0_i32_0 : i32, i32
  }
  func.func @transform_7(%arg0: i32, %arg1: i32) -> (i32, i32) {
    %c0_i32 = arith.constant 0 : i32
    %c0_i32_0 = arith.constant 0 : i32
    return %arg0, %c0_i32 : i32, i32
  }
}

</mosaic_0001>

<bundles_post_ra>
// kernel: mlp_forward.1
= control target key start
LH: loop header
LB: loop body
LE: loop exit
PB: predicated region body
PF: predicated region fallthrough
CT: control target
= control target key end

     0   :  { %s14178_s0 = inlined_call_operand.vmem [shape: bf16[8,5632], index: 0, kind: input, shape index: {}]   ;;  %s14179_s1 = inlined_call_operand.hbm [shape: bf16[5632,768], index: 1, kind: input, shape index: {}]   ;;  %s14180_s2 = inlined_call_operand.hbm [shape: f32[1,768], index: 2, kind: input, shape index: {}]   ;;  %s14181_s3 = inlined_call_operand.hbm [shape: f32[768,384], index: 3, kind: input, shape index: {}]   ;;  %s14182_s4 = inlined_call_operand.hbm [shape: f32[1,384], index: 4, kind: input, shape index: {}]   ;;  %s14183_s5 = inlined_call_operand.hbm [shape: f32[384,128], index: 5, kind: input, shape index: {}]   ;;  %s14184_s6 = inlined_call_operand.hbm [shape: f32[1,128], index: 6, kind: input, shape index: {}]   ;;  %s14185_s7 = inlined_call_operand.vmem [shape: f32[8,128], index: 7, kind: output, shape index: {}]  }
   0x1   :  { %14191 = sst [smem:[#allocation17_spill]] %s14180_s2 }
   0x2   :  { %12 = vsyncpa [#allocation4], 0 }
   0x3   :  { %14 = vsyncpa [#allocation4 + $0x1], 0 }
   0x4   :  { %15 = vsyncpa [#allocation6], 0 }
   0x5   :  { %16 = vsyncpa [#allocation9], 0 }
   0x6   :  { %17 = vsyncpa [#allocation12], 0  ;;  %s12615_s24 = smov 0   ;;  %s12617_s25 = smov 0  }
   0x7   :  { %s12619_s26 = smov 0   ;;  %s12621_s27 = smov 0  }
   0x8   :  { %s12623_s28 = smov 0   ;;  %s12625_s29 = smov 0  }
   0x9 LB: > { %s9324_s30 = sadd.s32 4294967295, %s12560_s29   ;;  %p9325_p0 = scmp.ge.s32.totalorder %s12560_s29, 1  ;;  %s12560_s29 = sphi %s12625_s29, %s23_s29   ;;  %s12556_s28 = sphi %s12623_s28, %s14208_s28   ;;  %s12552_s27 = sphi %s12621_s27, %s14207_s27   ;;  %s12548_s26 = sphi %s12619_s26, %s14206_s26   ;;  %s12544_s25 = sphi %s12617_s25, %s14205_s25   ;;  %s12540_s24 = sphi %s12615_s24, %s14204_s24  }
   0xa   : > { %p12647_p1 = scmp.eq.s32.totalorder %s9324_s30, 0  ;;  %p223_p2 = scmp.lt.s32.totalorder %s12560_s29, 3 }
   0xb   : > { %s12562_s10 = smov [#allocation5]   ;;  %s12563_s12 = smov [#allocation8]  }
   0xc   : > { %s14192_s8 = scalar_select %p12647_p1, 1, 0 }
   0xd   : > { %p12652_p3 = pnand %p9325_p0, %p223_p2  ;;  %s244_s11 = sshll.u32 %s12562_s10, 4  ;;  %s245_s11 = int_to_ptr.vmem [resolvable:$true] %s244_s11 }
   0xe   : > { %s268_s13 = sshll.u32 %s12563_s12, 4  ;;  %s12564_s15 = smov [#allocation7]   ;;  %s269_s13 = int_to_ptr.vmem [resolvable:$true] %s268_s13 }
   0xf   : > { %s14193_s9 = scalar_select %p12652_p3, 1, 0 }
  0x10   : > { %p10642_p4 = pneg %p12652_p3  ;;  %s254_s16 = sshll.u32 %s12564_s15, 4  ;;  %s12664_s16 = int_to_ptr.vmem [resolvable:$true] %s254_s16 }
  0x11   : > { %s12351_s18 = scalar_lea.vmem %s245_s11, 96  ;;  %p12359_p10 = scmp.lt.s32.totalorder %s245_s11, %s245_s11 }
  0x12   : > { %p12660_p5 = pnand %p10642_p4, %p12647_p1  ;;  %p12352_p7 = scmp.ne.s32.totalorder %s245_s11, %s12351_s18 }
  0x13   : > { %p12360_p11 = scmp.lt.s32.totalorder %s12351_s18, %s12351_s18 }
  0x14   : > { %p12668_p6 = pneg %p12660_p5 }
  0x15   : > { %p12361_p12 = por %p12360_p11, %p12359_p10 }
  0x16   : > { %p12354_p8 = pnand %p12352_p7, %p12668_p6 }
  0x18   : > { %p12355_p9 = pneg %p12354_p8 }
  0x1a   : > { %p12362_p13 = pnand %p12361_p12, %p12355_p9 }
  0x1c   : > { %12365 = shalt.err (!%p12362_p13)
}
  0x1d   : > { %s14196_s2 = sld [smem:[#allocation17_spill]]  ;;  %s12377_s21 = scalar_lea.vmem %s269_s13, 48 }
  0x1e   : > { %p12378_p0 = scmp.ne.s32.totalorder %s269_s13, %s12377_s21  ;;  %s12384_s22 = scalar_lea.vmem %s269_s13, 64 }
  0x1f   : > { %p12385_p7 = scmp.lt.s32.totalorder %s269_s13, %s269_s13  ;;  %p12386_p8 = scmp.lt.s32.totalorder %s12384_s22, %s12377_s21 }
  0x20   : > { %p12380_p2 = pnand %p12378_p0, %p12668_p6 }
  0x21   : > { %p12387_p3 = por %p12386_p8, %p12385_p7 }
  0x22   : > { %p12381_p4 = pneg %p12380_p2 }
  0x23   : > { %10645 = dma.hbm_to_vmem [thread:$0]  (!%p12660_p5), %s14196_s2, 96, %s245_s11, [#allocation6]  }
  0x24   : > { %p12388_p1 = pnand %p12387_p3, %p12381_p4 }
  0x26   : > { %12391 = shalt.err (!%p12388_p1)
}
  0x27   : > { %10651 = dma.hbm_to_vmem [thread:$0]  (!%p12660_p5), %s14182_s4, 48, %s269_s13, [#allocation9]  }
  0x28   : > { %s12403_s10 = scalar_lea.vmem %s12664_s16, 36864  ;;  %p12411_p12 = scmp.lt.s32.totalorder %s12664_s16, %s12664_s16 }
  0x29   : > { %p12404_p9 = scmp.ne.s32.totalorder %s12664_s16, %s12403_s10  ;;  %p12412_p13 = scmp.lt.s32.totalorder %s12403_s10, %s12403_s10 }
  0x2b   : > { %p12406_p10 = pnand %p12404_p9, %p12668_p6  ;;  %p12413_p3 = por %p12412_p13, %p12411_p12 }
  0x2d   : > { %p12407_p11 = pneg %p12406_p10 }
  0x2f   : > { %p12414_p1 = pnand %p12413_p3, %p12407_p11 }
  0x31   : > { %12417 = shalt.err (!%p12414_p1)
}
  0x32   : > { %s14189_s11 = smov 384   ;;  %s14190_s12 = smov 24  }
  0x33   : > { %10648 = dma.hbm_to_vmem [thread:$0]  (!%p12660_p5), %s14181_s3, 36864, %s12664_s16, [#allocation6], %s14189_s11, %s14189_s11, %s14190_s12  }
  0x34   : > { %s12567_s18 = smov [#allocation10]  }
  0x35   : > { %s278_s19 = sshll.u32 %s12567_s18, 4  ;;  %s279_s19 = int_to_ptr.vmem [resolvable:$true] %s278_s19 }
  0x36   : > { %s12429_s20 = scalar_lea.vmem %s279_s19, 6144  ;;  %p12437_p7 = scmp.lt.s32.totalorder %s279_s19, %s279_s19 }
  0x37   : > { %p12430_p0 = scmp.ne.s32.totalorder %s279_s19, %s12429_s20  ;;  %p12438_p8 = scmp.lt.s32.totalorder %s12429_s20, %s12429_s20 }
  0x39   : > { %p12432_p2 = pnand %p12430_p0, %p12668_p6  ;;  %p12439_p9 = por %p12438_p8, %p12437_p7 }
  0x3b   : > { %p12433_p4 = pneg %p12432_p2 }
  0x3d   : > { %p12440_p10 = pnand %p12439_p9, %p12433_p4 }
  0x3f   : > { %12443 = shalt.err (!%p12440_p10)
}
  0x40   : > { %s12568_s21 = smov 128   ;;  %s12569_s22 = smov 8  }
  0x41   : > { %10654 = dma.hbm_to_vmem [thread:$0]  (!%p12660_p5), %s14183_s5, 6144, %s279_s19, [#allocation9], %s12568_s21, %s12568_s21, %s12569_s22  }
  0x42   : > { %s12570_s30 = smov [#allocation11]  }
  0x43   : > { %s292_s10 = sshll.u32 %s12570_s30, 4  ;;  %s293_s10 = int_to_ptr.vmem [resolvable:$true] %s292_s10 }
  0x44   : > { %s12455_s13 = scalar_lea.vmem %s293_s10, 16  ;;  %s12462_s15 = scalar_lea.vmem %s293_s10, 32 }
  0x45   : > { %p12456_p11 = scmp.ne.s32.totalorder %s293_s10, %s12455_s13  ;;  %p12463_p3 = scmp.lt.s32.totalorder %s293_s10, %s293_s10 }
  0x46   : > { %p12464_p1 = scmp.lt.s32.totalorder %s12462_s15, %s12455_s13 }
  0x47   : > { %p12458_p12 = pnand %p12456_p11, %p12668_p6 }
  0x48   : > { %p12465_p0 = por %p12464_p1, %p12463_p3 }
  0x49   : > { %p12459_p13 = pneg %p12458_p12 }
  0x4b   : > { %p12466_p2 = pnand %p12465_p0, %p12459_p13 }
  0x4d   : > { %12469 = shalt.err (!%p12466_p2)
}
  0x4e   : > { %10657 = dma.hbm_to_vmem [thread:$0]  (!%p12660_p5), %s14184_s6, 16, %s293_s10, [#allocation12]  }
  0x4f   : > { %s32_s17 = sadd.s32 1, %s12556_s28  ;;  %s68_s14 = sadd.s32 1, %s12548_s26 }
  0x50   : > { %p33_p6 = scmp.ge.s32.totalorder %s32_s17, 2  ;;  %p75_p4 = scmp.ne.s32.totalorder %s12548_s26, %s12544_s25 }
  0x51   : > { %p76_p7 = scmp.eq.s32.totalorder %s12560_s29, 0  ;;  %p81_p9 = scmp.ne.s32.totalorder %s12544_s25, %s12540_s24 }
  0x52   : > { %s14210_s17 = smov (%p33_p6, %s32_s17), 0  ;;  %p10667_p10 = scmp.lt.s32.totalorder %s12560_s29, 2 }
  0x53   : > { %p77_p8 = por %p76_p7, %p75_p4  ;;  %s65_s19 = ssub.s32 %s12556_s28, %s14210_s17 }
  0x54   : > { %p66_p11 = scmp.eq.s32.totalorder %s65_s19, 0  ;;  %p14197_p12 = scmp.ne.s32.totalorder %s14192_s8, 0 }
  0x55   : > { %s303_s22 = sand.u32 1, %s12548_s26   ;;  %s10668_s30 = smul.u32 135168, %s12556_s28 }
  0x56   : > { %p12729_p13 = por %p14197_p12, %p81_p9  ;;  %s10617_s16 = smul.u32 8448, %s303_s22 }
  0x57   : > { %s12735_s23 = scalar_select %p66_p11, %s12548_s26, %s68_s14  }
  0x58   : > { %p12738_p5 = pnand %p10667_p10, %p77_p8  ;;  %s314_s24 = scalar_lea.hbm %s14179_s1, %s10668_s30 }
  0x59   : > { %s307_s18 = scalar_lea.vmem [#allocation3], %s10617_s16  ;;  %s304_s19 = scalar_lea.sflag [#allocation4], %s303_s22 }
  0x5a   : > { %s315_s20 = sshll.u32 %s307_s18, 4  ;;  %p12472_p3 = pneg %p12738_p5  ;;  %s316_s20 = int_to_ptr.vmem [resolvable:$true] %s315_s20 }
  0x5b   : > { %s12483_s11 = scalar_lea.vmem %s316_s20, 135168  ;;  %s12571_s14 = smov [#allocation3]  }
  0x5c   : > { %p12484_p1 = scmp.ne.s32.totalorder %s316_s20, %s12483_s11  ;;  %s12488_s12 = sshll.u32 %s12571_s14, 4  ;;  %s12489_s12 = int_to_ptr.vmem [resolvable:$false] %s12488_s12 }
  0x5d   : > { %s12490_s2 = scalar_lea.vmem %s12489_s12, 270336  ;;  %p12491_p6 = scmp.lt.s32.totalorder %s316_s20, %s12489_s12 }
  0x5e   : > { %p12486_p0 = pnand %p12484_p1, %p12472_p3  ;;  %p12492_p4 = scmp.lt.s32.totalorder %s12490_s2, %s12483_s11 }
  0x60   : > { %p12487_p2 = pneg %p12486_p0  ;;  %p12493_p7 = por %p12492_p4, %p12491_p6 }
  0x62   : > { %p12494_p8 = pnand %p12493_p7, %p12487_p2 }
  0x64   : > { %12497 = shalt.err (!%p12494_p8)
}
  0x65   : > { %s14200_s16 = smov 24   ;;  %s14201_s30 = smov 384  }
  0x66   : > { %10661 = dma.hbm_to_vmem [thread:$0]  (!%p12738_p5), %s314_s24, 135168, %s316_s20, %s304_s19, %s14201_s30, %s14201_s30, %s14200_s16  }
  0x67   : > { %p14202_p9 = scmp.ne.s32.totalorder %s14193_s9, 0 }
  0x68   : > { %s329_s22 = sand.u32 (!%p14202_p9), 1, %s12544_s25  }
  0x69   : > { %327 = sbr.rel (%p14202_p9) target bundleno = 1981 (0x7bd), region = 48  ;;  %s330_s15 = scalar_lea.sflag (!%p14202_p9), [#allocation4], %s329_s22 }
  0x6a   : > { %s10619_s13 = smul.u32 (!%p14202_p9), 8448, %s329_s22 }
  0x6c   : > { %s12755_s18 = scalar_lea.vmem (!%p14202_p9), [#allocation3], %s10619_s13 }
  0x6e   : > { %12523 = dma.done.wait (%p12729_p13), %s330_s15, 135168  }
  0x6f   : > { %12525 = vsyncadd (%p12729_p13), %s330_s15, 4294832128  ;;  %p14203_p10 = scmp.ne.s32.totalorder %s14192_s8, 0 }
  0x71   : > { %12527 = dma.done.wait (%p14203_p10), [#allocation6], 36960  }
  0x72   : > { %12529 = vsyncadd (%p14203_p10), [#allocation6], 4294930336 }
  0x73   : > { %12531 = dma.done.wait (%p14203_p10), [#allocation9], 6192  }
  0x74   : > { %12533 = vsyncadd (%p14203_p10), [#allocation9], 4294961104 }
  0x75   : > { %12535 = dma.done.wait (%p14203_p10), [#allocation12], 16  }
  0x76   : > { %12537 = vsyncadd (%p14203_p10), [#allocation12], 4294967280  ;;  %p9340_p11 = scmp.ne.s32.totalorder %s12552_s27, 0 }
  0x78   : > { %401 = sbr.rel (%p9340_p11) target bundleno = 129 (0x81), region = 76 }
  0x7d   : > { %v12572_v0 = vmov 0.0  }
  0x7e   : > { %402 = vst [vmem:[#allocation2 + $0x28] sm:$0xff] %v12572_v0  ;;  %403 = vst [vmem:[#allocation2 + $0x10] sm:$0xff] %v12572_v0 }
  0x7f   : > { %404 = vst [vmem:[#allocation2 + $0x8] sm:$0xff] %v12572_v0  ;;  %405 = vst [vmem:[#allocation2] sm:$0xff] %v12572_v0 }
  0x80   : > { %406 = vst [vmem:[#allocation2 + $0x18] sm:$0xff] %v12572_v0  ;;  %407 = vst [vmem:[#allocation2 + $0x20] sm:$0xff] %v12572_v0 }
  0x81 PF: > { %v10734_v1 = vld [vmem:[%s12755_s18 + $0x154] ss:$24 sps:$4 sm:$0xff]   ;;  %v10738_v3 = vld [vmem:[%s12755_s18 + $0x150] ss:$24 sps:$4 sm:$0xff]   ;;  %v10740_v5 = vld [vmem:[%s12755_s18 + $0x124] ss:$24 sps:$4 sm:$0xff]  }
  0x82   : > { %v10736_v2 = vld [vmem:[%s12755_s18 + $0x454] ss:$24 sps:$4 sm:$0xff]   ;;  %6843 = vmatprep.subr.bf16.mxu0 %v10734_v1  ;;  %v10739_v4 = vld [vmem:[%s12755_s18 + $0x450] ss:$24 sps:$4 sm:$0xff]   ;;  %v10742_v6 = vld [vmem:[%s12755_s18 + $0x424] ss:$24 sps:$4 sm:$0xff]  }
  0x83   : > { %6884 = vmatprep.subr.bf16.mxu1 %v10736_v2  ;;  %6844 = vmatpush1.bf16.msra.mxu0 %v10738_v3  ;;  %v10744_v7 = vld [vmem:[%s12755_s18 + $0x120] ss:$24 sps:$4 sm:$0xff]   ;;  %v10746_v9 = vld [vmem:[%s12755_s18 + $0xf4] ss:$24 sps:$4 sm:$0xff]   ;;  %v10750_v11 = vld [vmem:[%s12755_s18 + $0xf0] ss:$24 sps:$4 sm:$0xff]  }
  0x84   : > { %6885 = vmatpush1.bf16.msra.mxu1 %v10739_v4  ;;  %6845 = vmatprep.subr.bf16.mxu0 %v10740_v5  ;;  %v10745_v8 = vld [vmem:[%s12755_s18 + $0x420] ss:$24 sps:$4 sm:$0xff]   ;;  %v10748_v10 = vld [vmem:[%s12755_s18 + $0x3f4] ss:$24 sps:$4 sm:$0xff]   ;;  %v10751_v12 = vld [vmem:[%s12755_s18 + $0x3f0] ss:$24 sps:$4 sm:$0xff]  }
  0x85   : > { %6886 = vmatprep.subr.bf16.mxu1 %v10742_v6  ;;  %v10752_v13 = vld [vmem:[%s12755_s18 + $0xc4] ss:$24 sps:$4 sm:$0xff]   ;;  %v10756_v15 = vld [vmem:[%s12755_s18 + $0xc0] ss:$24 sps:$4 sm:$0xff]   ;;  %v10758_v17 = vld [vmem:[%s12755_s18 + $0x94] ss:$24 sps:$4 sm:$0xff]  }
  0x86   : > { %v10754_v14 = vld [vmem:[%s12755_s18 + $0x3c4] ss:$24 sps:$4 sm:$0xff]   ;;  %v10757_v16 = vld [vmem:[%s12755_s18 + $0x3c0] ss:$24 sps:$4 sm:$0xff]   ;;  %v10760_v18 = vld [vmem:[%s12755_s18 + $0x394] ss:$24 sps:$4 sm:$0xff]  }
  0x87   : > { %6846 = vmatpush1.bf16.msra.mxu0 %v10744_v7  ;;  %v10762_v19 = vld [vmem:[%s12755_s18 + $0x90] ss:$24 sps:$4 sm:$0xff]   ;;  %v10764_v21 = vld [vmem:[%s12755_s18 + $0x64] ss:$24 sps:$4 sm:$0xff]   ;;  %v10768_v23 = vld [vmem:[%s12755_s18 + $0x60] ss:$24 sps:$4 sm:$0xff]  }
  0x88   : > { %6887 = vmatpush1.bf16.msra.mxu1 %v10745_v8  ;;  %6847 = vmatprep.subr.bf16.mxu0 %v10746_v9  ;;  %v10763_v20 = vld [vmem:[%s12755_s18 + $0x390] ss:$24 sps:$4 sm:$0xff]   ;;  %v10766_v22 = vld [vmem:[%s12755_s18 + $0x364] ss:$24 sps:$4 sm:$0xff]   ;;  %v10769_v24 = vld [vmem:[%s12755_s18 + $0x360] ss:$24 sps:$4 sm:$0xff]  }
  0x89   : > { %6888 = vmatprep.subr.bf16.mxu1 %v10748_v10  ;;  %v10770_v25 = vld [vmem:[%s12755_s18 + $0x34] ss:$24 sps:$4 sm:$0xff]   ;;  %v10774_v27 = vld [vmem:[%s12755_s18 + $0x30] ss:$24 sps:$4 sm:$0xff]   ;;  %v10776_v29 = vld [vmem:[%s12755_s18 + $0x4] ss:$24 sps:$4 sm:$0xff]  }
  0x8a   : > { %v10772_v26 = vld [vmem:[%s12755_s18 + $0x334] ss:$24 sps:$4 sm:$0xff]   ;;  %v10775_v28 = vld [vmem:[%s12755_s18 + $0x330] ss:$24 sps:$4 sm:$0xff]   ;;  %v10778_v30 = vld [vmem:[%s12755_s18 + $0x304] ss:$24 sps:$4 sm:$0xff]  }
  0x8b   : > { %6848 = vmatpush1.bf16.msra.mxu0 %v10750_v11  ;;  %v10780_v31 = vld [vmem:[%s12755_s18] ss:$24 sps:$4 sm:$0xff]   ;;  %v10782_v33 = vld [vmem:[%s12755_s18 + $0x2d4] ss:$24 sps:$4 sm:$0xff]   ;;  %s408_s2 = smul.u32 2816, %s12552_s27  ;;  %p10420_p12 = scmp.ne.s32.totalorder %s12552_s27, 1 }
  0x8c   : > { %6889 = vmatpush1.bf16.msra.mxu1 %v10751_v12  ;;  %6849 = vmatprep.subr.bf16.mxu0 %v10752_v13  ;;  %v10781_v32 = vld [vmem:[%s12755_s18 + $0x300] ss:$24 sps:$4 sm:$0xff]   ;;  %v10784_v34 = vld [vmem:[%s12755_s18 + $0x5d4] ss:$24 sps:$4 sm:$0xff]   ;;  %v10786_v35 = vld [vmem:[%s12755_s18 + $0x2d0] ss:$24 sps:$4 sm:$0xff]  }
  0x8d   : > { %6890 = vmatprep.subr.bf16.mxu1 %v10754_v14  ;;  %v10787_v36 = vld [vmem:[%s12755_s18 + $0x5d0] ss:$24 sps:$4 sm:$0xff]   ;;  %v10788_v37 = vld [vmem:[%s12755_s18 + $0x2a4] ss:$24 sps:$4 sm:$0xff]   ;;  %s409_s8 = sshra.s32 %s408_s2, 7 }
  0x8e   : > { %v10790_v38 = vld [vmem:[%s12755_s18 + $0x5a4] ss:$24 sps:$4 sm:$0xff]   ;;  %v10792_v39 = vld [vmem:[%s12755_s18 + $0x2a0] ss:$24 sps:$4 sm:$0xff]   ;;  %v10794_v41 = vld [vmem:[%s12755_s18 + $0x274] ss:$24 sps:$4 sm:$0xff]  }
  0x8f   : > { %6850 = vmatpush1.bf16.msra.mxu0 %v10756_v15  ;;  %v10793_v40 = vld [vmem:[%s12755_s18 + $0x5a0] ss:$24 sps:$4 sm:$0xff]   ;;  %s9341_s9 = sshll.u32 %s409_s8, 2  ;;  %v10796_v42 = vld [vmem:[%s12755_s18 + $0x574] ss:$24 sps:$4 sm:$0xff]  }
  0x90   : > { %6891 = vmatpush1.bf16.msra.mxu1 %v10757_v16  ;;  %6851 = vmatprep.subr.bf16.mxu0 %v10758_v17  ;;  %v10798_v43 = vld [vmem:[%s12755_s18 + $0x270] ss:$24 sps:$4 sm:$0xff]   ;;  %s12822_s21 = scalar_lea.vmem %s14178_s0, %s9341_s9  ;;  %v10800_v45 = vld [vmem:[%s12755_s18 + $0x244] ss:$24 sps:$4 sm:$0xff]   ;;  %v10804_v50 = vld [vmem:[%s12755_s18 + $0x240] ss:$24 sps:$4 sm:$0xff]  }
  0x91   : > { %6892 = vmatprep.subr.bf16.mxu1 %v10760_v18  ;;  %v10799_v44 = vld [vmem:[%s12755_s18 + $0x570] ss:$24 sps:$4 sm:$0xff]   ;;  %v10802_v46 = vld [vmem:[%s12755_s18 + $0x544] ss:$24 sps:$4 sm:$0xff]   ;;  %v10805_v51 = vld [vmem:[%s12755_s18 + $0x540] ss:$24 sps:$4 sm:$0xff]  }
  0x92   : > { %v413_v47 = vld [vmem:[%s12822_s21] sm:$0xff]  ;;  %v414_v49 = vld [vmem:[%s12822_s21 + $0x8] sm:$0xff] }
  0x93   : > { %6852 = vmatpush1.bf16.msra.mxu0 %v10762_v19  ;;  %v12827_v48 = vcombine.high %v413_v47, %v413_v47  ;;  %v12832_v52 = vcombine.high %v414_v49, %v414_v49  ;;  %v10806_v53 = vld [vmem:[%s12755_s18 + $0x214] ss:$24 sps:$4 sm:$0xff]   ;;  %v10810_v55 = vld [vmem:[%s12755_s18 + $0x210] ss:$24 sps:$4 sm:$0xff]   ;;  %v10812_v57 = vld [vmem:[%s12755_s18 + $0x1e4] ss:$24 sps:$4 sm:$0xff]   ;;  %v12854_v7 = vcombine.low %v413_v47, %v413_v47  ;;  %v12856_v8 = vcombine.low %v414_v49, %v414_v49 }
  0x94   : > { %6893 = vmatpush1.bf16.msra.mxu1 %v10763_v20  ;;  %6853 = vmatprep.subr.bf16.mxu0 %v10764_v21  ;;  %v10808_v54 = vld [vmem:[%s12755_s18 + $0x514] ss:$24 sps:$4 sm:$0xff]   ;;  %v10811_v56 = vld [vmem:[%s12755_s18 + $0x510] ss:$24 sps:$4 sm:$0xff]   ;;  %v10814_v58 = vld [vmem:[%s12755_s18 + $0x4e4] ss:$24 sps:$4 sm:$0xff]  }
  0x95   : > { %6894 = vmatprep.subr.bf16.mxu1 %v10766_v22  ;;  %6875 = vmatprep.mubr.bf16.mxu0 %v12827_v48  ;;  %v10816_v59 = vld [vmem:[%s12755_s18 + $0x1e0] ss:$24 sps:$4 sm:$0xff]   ;;  %v10818_v61 = vld [vmem:[%s12755_s18 + $0x1b4] ss:$24 sps:$4 sm:$0xff]   ;;  %v10822_v63 = vld [vmem:[%s12755_s18 + $0x1b0] ss:$24 sps:$4 sm:$0xff]  }
  0x96   : > { %6916 = vmatprep.mubr.bf16.mxu1 %v12832_v52  ;;  %v10817_v60 = vld [vmem:[%s12755_s18 + $0x4e0] ss:$24 sps:$4 sm:$0xff]   ;;  %v10820_v62 = vld [vmem:[%s12755_s18 + $0x4b4] ss:$24 sps:$4 sm:$0xff]   ;;  %v10823_v0 = vld [vmem:[%s12755_s18 + $0x4b0] ss:$24 sps:$4 sm:$0xff]  }
  0x97   : > { %6854 = vmatpush1.bf16.msra.mxu0 %v10768_v23  ;;  %v10824_v1 = vld [vmem:[%s12755_s18 + $0x184] ss:$24 sps:$4 sm:$0xff]   ;;  %v10828_v3 = vld [vmem:[%s12755_s18 + $0x180] ss:$24 sps:$4 sm:$0xff]   ;;  %v10836_v5 = vld [vmem:[%s12755_s18 + $0x754] ss:$24 sps:$4 sm:$0xff]  }
  0x98   : > { %6895 = vmatpush1.bf16.msra.mxu1 %v10769_v24  ;;  %6855 = vmatprep.subr.bf16.mxu0 %v10770_v25  ;;  %v10826_v2 = vld [vmem:[%s12755_s18 + $0x484] ss:$24 sps:$4 sm:$0xff]   ;;  %v10829_v4 = vld [vmem:[%s12755_s18 + $0x480] ss:$24 sps:$4 sm:$0xff]   ;;  %v10839_v6 = vld [vmem:[%s12755_s18 + $0xa54] ss:$24 sps:$4 sm:$0xff]  }
  0x99   : > { %6896 = vmatprep.subr.bf16.mxu1 %v10772_v26  ;;  %v10834_v9 = vld [vmem:[%s12755_s18 + $0x750] ss:$24 sps:$4 sm:$0xff]   ;;  %v10842_v11 = vld [vmem:[%s12755_s18 + $0x724] ss:$24 sps:$4 sm:$0xff]   ;;  %v10840_v13 = vld [vmem:[%s12755_s18 + $0x720] ss:$24 sps:$4 sm:$0xff]  }
  0x9a   : > { %v10837_v10 = vld [vmem:[%s12755_s18 + $0xa50] ss:$24 sps:$4 sm:$0xff]   ;;  %v10845_v12 = vld [vmem:[%s12755_s18 + $0xa24] ss:$24 sps:$4 sm:$0xff]   ;;  %v10843_v14 = vld [vmem:[%s12755_s18 + $0xa20] ss:$24 sps:$4 sm:$0xff]  }
  0x9b   : > { %6856 = vmatpush1.bf16.msra.mxu0 %v10774_v27  ;;  %v10848_v15 = vld [vmem:[%s12755_s18 + $0x6f4] ss:$24 sps:$4 sm:$0xff]   ;;  %v10846_v17 = vld [vmem:[%s12755_s18 + $0x6f0] ss:$24 sps:$4 sm:$0xff]   ;;  %v10854_v19 = vld [vmem:[%s12755_s18 + $0x6c4] ss:$24 sps:$4 sm:$0xff]  }
  0x9c   : > { %6897 = vmatpush1.bf16.msra.mxu1 %v10775_v28  ;;  %6857 = vmatprep.subr.bf16.mxu0 %v10776_v29  ;;  %v10851_v16 = vld [vmem:[%s12755_s18 + $0x9f4] ss:$24 sps:$4 sm:$0xff]   ;;  %v10849_v18 = vld [vmem:[%s12755_s18 + $0x9f0] ss:$24 sps:$4 sm:$0xff]   ;;  %v10857_v20 = vld [vmem:[%s12755_s18 + $0x9c4] ss:$24 sps:$4 sm:$0xff]  }
  0x9d   : > { %6898 = vmatprep.subr.bf16.mxu1 %v10778_v30  ;;  %v10852_v21 = vld [vmem:[%s12755_s18 + $0x6c0] ss:$24 sps:$4 sm:$0xff]   ;;  %v10860_v23 = vld [vmem:[%s12755_s18 + $0x694] ss:$24 sps:$4 sm:$0xff]   ;;  %v10858_v25 = vld [vmem:[%s12755_s18 + $0x690] ss:$24 sps:$4 sm:$0xff]  }
  0x9e   : > { %v10855_v22 = vld [vmem:[%s12755_s18 + $0x9c0] ss:$24 sps:$4 sm:$0xff]   ;;  %v10863_v24 = vld [vmem:[%s12755_s18 + $0x994] ss:$24 sps:$4 sm:$0xff]   ;;  %v10861_v26 = vld [vmem:[%s12755_s18 + $0x990] ss:$24 sps:$4 sm:$0xff]  }
  0x9f   : > { %6858 = vmatpush1.bf16.msra.mxu0 %v10780_v31  ;;  %v10866_v27 = vld [vmem:[%s12755_s18 + $0x664] ss:$24 sps:$4 sm:$0xff]   ;;  %v10864_v29 = vld [vmem:[%s12755_s18 + $0x660] ss:$24 sps:$4 sm:$0xff]   ;;  %v10872_v31 = vld [vmem:[%s12755_s18 + $0x634] ss:$24 sps:$4 sm:$0xff]  }
  0xa0   : > { %6899 = vmatpush1.bf16.msra.mxu1 %v10781_v32  ;;  %6859 = vmatprep.subr.bf16.mxu0 %v10782_v33  ;;  %v10869_v28 = vld [vmem:[%s12755_s18 + $0x964] ss:$24 sps:$4 sm:$0xff]   ;;  %v10867_v30 = vld [vmem:[%s12755_s18 + $0x960] ss:$24 sps:$4 sm:$0xff]   ;;  %v10875_v32 = vld [vmem:[%s12755_s18 + $0x934] ss:$24 sps:$4 sm:$0xff]  }
  0xa1   : > { %6900 = vmatprep.subr.bf16.mxu1 %v10784_v34  ;;  %v12885_v33 = vld [vmem:[%s12822_s21 + $0x10] sm:$0xff]  ;;  %v12888_v34 = vld [vmem:[%s12822_s21 + $0x18] sm:$0xff] }
  0xa2   : > { %v10890_v47 = vld [vmem:[%s12755_s18 + $0x8a4] ss:$24 sps:$4 sm:$0xff]  }
  0xa3   : > { %6860 = vmatpush2.bf16.msra.mxu0 %v10786_v35  ;;  %v10870_v35 = vld [vmem:[%s12755_s18 + $0x630] ss:$24 sps:$4 sm:$0xff]   ;;  %v10893_v49 = vld [vmem:[%s12755_s18 + $0xba4] ss:$24 sps:$4 sm:$0xff]  }
  0xa4   : > { %6901 = vmatpush2.bf16.msra.mxu1 %v10787_v36  ;;  %6861 = vmatprep.subr.bf16.mxu0 %v10788_v37  ;;  %v10873_v36 = vld [vmem:[%s12755_s18 + $0x930] ss:$24 sps:$4 sm:$0xff]   ;;  %v12894_v37 = vcombine.high %v12885_v33, %v12885_v33 }
  0xa5   : > { %6902 = vmatprep.subr.bf16.mxu1 %v10790_v38  ;;  %v12898_v38 = vcombine.high %v12888_v34, %v12888_v34 }
  0xa7   : > { %6862 = vmatpush2.bf16.msra.mxu0 %v10792_v39  ;;  %v10878_v39 = vld [vmem:[%s12755_s18 + $0x604] ss:$24 sps:$4 sm:$0xff]  }
  0xa8   : > { %6903 = vmatpush2.bf16.msra.mxu1 %v10793_v40  ;;  %6863 = vmatprep.subr.bf16.mxu0 %v10794_v41  ;;  %v10881_v40 = vld [vmem:[%s12755_s18 + $0x904] ss:$24 sps:$4 sm:$0xff]   ;;  %v10876_v41 = vld [vmem:[%s12755_s18 + $0x600] ss:$24 sps:$4 sm:$0xff]  }
  0xa9   : > { %6904 = vmatprep.subr.bf16.mxu1 %v10796_v42  ;;  %v10879_v42 = vld [vmem:[%s12755_s18 + $0x900] ss:$24 sps:$4 sm:$0xff]  }
  0xab   : > { %6864 = vmatpush2.bf16.msra.mxu0 %v10798_v43  ;;  %v10884_v43 = vld [vmem:[%s12755_s18 + $0x8d4] ss:$24 sps:$4 sm:$0xff]  }
  0xac   : > { %6905 = vmatpush2.bf16.msra.mxu1 %v10799_v44  ;;  %6865 = vmatprep.subr.bf16.mxu0 %v10800_v45  ;;  %v10887_v44 = vld [vmem:[%s12755_s18 + $0xbd4] ss:$24 sps:$4 sm:$0xff]   ;;  %v10882_v45 = vld [vmem:[%s12755_s18 + $0x8d0] ss:$24 sps:$4 sm:$0xff]  }
  0xad   : > { %6906 = vmatprep.subr.bf16.mxu1 %v10802_v46  ;;  %v10885_v46 = vld [vmem:[%s12755_s18 + $0xbd0] ss:$24 sps:$4 sm:$0xff]  }
  0xaf   : > { %6866 = vmatpush2.bf16.msra.mxu0 %v10804_v50  ;;  %v10888_v50 = vld [vmem:[%s12755_s18 + $0x8a0] ss:$24 sps:$4 sm:$0xff]  }
  0xb0   : > { %6907 = vmatpush2.bf16.msra.mxu1 %v10805_v51  ;;  %6867 = vmatprep.subr.bf16.mxu0 %v10806_v53  ;;  %v10891_v51 = vld [vmem:[%s12755_s18 + $0xba0] ss:$24 sps:$4 sm:$0xff]   ;;  %v10896_v53 = vld [vmem:[%s12755_s18 + $0x874] ss:$24 sps:$4 sm:$0xff]  }
  0xb1   : > { %6908 = vmatprep.subr.bf16.mxu1 %v10808_v54  ;;  %v10899_v54 = vld [vmem:[%s12755_s18 + $0xb74] ss:$24 sps:$4 sm:$0xff]  }
  0xb3   : > { %6868 = vmatpush2.bf16.msra.mxu0 %v10810_v55  ;;  %v10894_v55 = vld [vmem:[%s12755_s18 + $0x870] ss:$24 sps:$4 sm:$0xff]  }
  0xb4   : > { %6909 = vmatpush2.bf16.msra.mxu1 %v10811_v56  ;;  %6869 = vmatprep.subr.bf16.mxu0 %v10812_v57  ;;  %v10897_v56 = vld [vmem:[%s12755_s18 + $0xb70] ss:$24 sps:$4 sm:$0xff]   ;;  %v10902_v57 = vld [vmem:[%s12755_s18 + $0x844] ss:$24 sps:$4 sm:$0xff]  }
  0xb5   : > { %6910 = vmatprep.subr.bf16.mxu1 %v10814_v58  ;;  %v10905_v58 = vld [vmem:[%s12755_s18 + $0xb44] ss:$24 sps:$4 sm:$0xff]  }
  0xb7   : > { %6870 = vmatpush2.bf16.msra.mxu0 %v10816_v59  ;;  %v10900_v59 = vld [vmem:[%s12755_s18 + $0x840] ss:$24 sps:$4 sm:$0xff]  }
  0xb8   : > { %6911 = vmatpush2.bf16.msra.mxu1 %v10817_v60  ;;  %6871 = vmatprep.subr.bf16.mxu0 %v10818_v61  ;;  %v10903_v60 = vld [vmem:[%s12755_s18 + $0xb40] ss:$24 sps:$4 sm:$0xff]   ;;  %v10908_v61 = vld [vmem:[%s12755_s18 + $0x814] ss:$24 sps:$4 sm:$0xff]  }
  0xb9   : > { %6912 = vmatprep.subr.bf16.mxu1 %v10820_v62  ;;  %v10911_v62 = vld [vmem:[%s12755_s18 + $0xb14] ss:$24 sps:$4 sm:$0xff]  }
  0xbb   : > { %6872 = vmatpush2.bf16.msra.mxu0 %v10822_v63  ;;  %v10906_v63 = vld [vmem:[%s12755_s18 + $0x810] ss:$24 sps:$4 sm:$0xff]  }
  0xbc   : > { %6913 = vmatpush2.bf16.msra.mxu1 %v10823_v0  ;;  %6873 = vmatprep.subr.bf16.mxu0 %v10824_v1  ;;  %v10909_v0 = vld [vmem:[%s12755_s18 + $0xb10] ss:$24 sps:$4 sm:$0xff]   ;;  %v10914_v1 = vld [vmem:[%s12755_s18 + $0x7e4] ss:$24 sps:$4 sm:$0xff]  }
  0xbd   : > { %6914 = vmatprep.subr.bf16.mxu1 %v10826_v2  ;;  %v10917_v2 = vld [vmem:[%s12755_s18 + $0xae4] ss:$24 sps:$4 sm:$0xff]  }
  0xbf   : > { %6874 = vmatpush2.bf16.msra.mxu0 %v10828_v3  ;;  %v10912_v3 = vld [vmem:[%s12755_s18 + $0x7e0] ss:$24 sps:$4 sm:$0xff]  }
  0xc0   : > { %6915 = vmatpush2.bf16.msra.mxu1 %v10829_v4  ;;  %6925 = vmatprep.subr.bf16.mxu0 %v10836_v5  ;;  %v10915_v4 = vld [vmem:[%s12755_s18 + $0xae0] ss:$24 sps:$4 sm:$0xff]   ;;  %v10920_v5 = vld [vmem:[%s12755_s18 + $0x7b4] ss:$24 sps:$4 sm:$0xff]  }
  0xc1   : > { %6966 = vmatprep.subr.bf16.mxu1 %v10839_v6  ;;  %v10923_v6 = vld [vmem:[%s12755_s18 + $0xab4] ss:$24 sps:$4 sm:$0xff]  }
  0xc2   : > { %6876 = vmatmul.mubr.bf16.vlgmr.msra.gmra.mxu0 %v12854_v7 }
  0xc3   : > { %6917 = vmatmul.mubr.bf16.vlgmr.msra.gmra.mxu1 %v12856_v8  ;;  %6926 = vmatpush1.bf16.msra.mxu0 %v10834_v9  ;;  %v10918_v9 = vld [vmem:[%s12755_s18 + $0x7b0] ss:$24 sps:$4 sm:$0xff]  }
  0xc4   : > { %6967 = vmatpush1.bf16.msra.mxu1 %v10837_v10  ;;  %6927 = vmatprep.subr.bf16.mxu0 %v10842_v11  ;;  %v10921_v10 = vld [vmem:[%s12755_s18 + $0xab0] ss:$24 sps:$4 sm:$0xff]   ;;  %v10926_v11 = vld [vmem:[%s12755_s18 + $0x784] ss:$24 sps:$4 sm:$0xff]  }
  0xc5   : > { %6968 = vmatprep.subr.bf16.mxu1 %v10845_v12  ;;  %6957 = vmatprep.mubr.bf16.mxu0 %v12894_v37  ;;  %v10929_v12 = vld [vmem:[%s12755_s18 + $0xa84] ss:$24 sps:$4 sm:$0xff]  }
  0xc6   : > { %6998 = vmatprep.mubr.bf16.mxu1 %v12898_v38 }
  0xc7   : > { %6928 = vmatpush1.bf16.msra.mxu0 %v10840_v13  ;;  %v10924_v13 = vld [vmem:[%s12755_s18 + $0x780] ss:$24 sps:$4 sm:$0xff]  }
  0xc8   : > { %6969 = vmatpush1.bf16.msra.mxu1 %v10843_v14  ;;  %6929 = vmatprep.subr.bf16.mxu0 %v10848_v15  ;;  %v10927_v14 = vld [vmem:[%s12755_s18 + $0xa80] ss:$24 sps:$4 sm:$0xff]   ;;  %v10936_v15 = vld [vmem:[%s12755_s18 + $0xd54] ss:$24 sps:$4 sm:$0xff]  }
  0xc9   : > { %6970 = vmatprep.subr.bf16.mxu1 %v10851_v16  ;;  %v10939_v16 = vld [vmem:[%s12755_s18 + $0x1054] ss:$24 sps:$4 sm:$0xff]  }
  0xcb   : > { %6930 = vmatpush1.bf16.msra.mxu0 %v10846_v17  ;;  %v12942_v17 = vcombine.low %v12885_v33, %v12885_v33  ;;  %v10954_v33 = vld [vmem:[%s12755_s18 + $0xcc4] ss:$24 sps:$4 sm:$0xff]  }
  0xcc   : > { %6971 = vmatpush1.bf16.msra.mxu1 %v10849_v18  ;;  %6931 = vmatprep.subr.bf16.mxu0 %v10854_v19  ;;  %v12946_v18 = vcombine.low %v12888_v34, %v12888_v34  ;;  %v10934_v19 = vld [vmem:[%s12755_s18 + $0xd50] ss:$24 sps:$4 sm:$0xff]   ;;  %v10957_v34 = vld [vmem:[%s12755_s18 + $0xfc4] ss:$24 sps:$4 sm:$0xff]  }
  0xcd   : > { %6972 = vmatprep.subr.bf16.mxu1 %v10857_v20  ;;  %v10937_v20 = vld [vmem:[%s12755_s18 + $0x1050] ss:$24 sps:$4 sm:$0xff]  }
  0xcf   : > { %6932 = vmatpush1.bf16.msra.mxu0 %v10852_v21  ;;  %v10942_v21 = vld [vmem:[%s12755_s18 + $0xd24] ss:$24 sps:$4 sm:$0xff]  }
  0xd0   : > { %6973 = vmatpush1.bf16.msra.mxu1 %v10855_v22  ;;  %6933 = vmatprep.subr.bf16.mxu0 %v10860_v23  ;;  %v10945_v22 = vld [vmem:[%s12755_s18 + $0x1024] ss:$24 sps:$4 sm:$0xff]   ;;  %v12953_v23 = vld [vmem:[%s12822_s21 + $0x20] sm:$0xff] }
  0xd1   : > { %6974 = vmatprep.subr.bf16.mxu1 %v10863_v24  ;;  %v12956_v24 = vld [vmem:[%s12822_s21 + $0x28] sm:$0xff] }
  0xd3   : > { %6934 = vmatpush1.bf16.msra.mxu0 %v10858_v25  ;;  %v12960_v25 = vcombine.high %v12953_v23, %v12953_v23 }
  0xd4   : > { %6975 = vmatpush1.bf16.msra.mxu1 %v10861_v26  ;;  %6935 = vmatprep.subr.bf16.mxu0 %v10866_v27  ;;  %v12964_v26 = vcombine.high %v12956_v24, %v12956_v24  ;;  %v10940_v27 = vld [vmem:[%s12755_s18 + $0xd20] ss:$24 sps:$4 sm:$0xff]  }
  0xd5   : > { %6976 = vmatprep.subr.bf16.mxu1 %v10869_v28  ;;  %v10943_v28 = vld [vmem:[%s12755_s18 + $0x1020] ss:$24 sps:$4 sm:$0xff]  }
  0xd7   : > { %6936 = vmatpush1.bf16.msra.mxu0 %v10864_v29  ;;  %v10948_v29 = vld [vmem:[%s12755_s18 + $0xcf4] ss:$24 sps:$4 sm:$0xff]  }
  0xd8   : > { %6977 = vmatpush1.bf16.msra.mxu1 %v10867_v30  ;;  %6937 = vmatprep.subr.bf16.mxu0 %v10872_v31  ;;  %v10951_v30 = vld [vmem:[%s12755_s18 + $0xff4] ss:$24 sps:$4 sm:$0xff]   ;;  %v10946_v31 = vld [vmem:[%s12755_s18 + $0xcf0] ss:$24 sps:$4 sm:$0xff]  }
  0xd9   : > { %6978 = vmatprep.subr.bf16.mxu1 %v10875_v32  ;;  %v10949_v32 = vld [vmem:[%s12755_s18 + $0xff0] ss:$24 sps:$4 sm:$0xff]  }
  0xdb   : > { %6938 = vmatpush1.bf16.msra.mxu0 %v10870_v35  ;;  %v10952_v35 = vld [vmem:[%s12755_s18 + $0xcc0] ss:$24 sps:$4 sm:$0xff]  }
  0xdc   : > { %6979 = vmatpush1.bf16.msra.mxu1 %v10873_v36  ;;  %6939 = vmatprep.subr.bf16.mxu0 %v10878_v39  ;;  %v10955_v36 = vld [vmem:[%s12755_s18 + $0xfc0] ss:$24 sps:$4 sm:$0xff]   ;;  %v10960_v39 = vld [vmem:[%s12755_s18 + $0xc94] ss:$24 sps:$4 sm:$0xff]  }
  0xdd   : > { %6980 = vmatprep.subr.bf16.mxu1 %v10881_v40  ;;  %v10963_v40 = vld [vmem:[%s12755_s18 + $0xf94] ss:$24 sps:$4 sm:$0xff]  }
  0xdf   : > { %6940 = vmatpush1.bf16.msra.mxu0 %v10876_v41  ;;  %v10958_v41 = vld [vmem:[%s12755_s18 + $0xc90] ss:$24 sps:$4 sm:$0xff]  }
  0xe0   : > { %6981 = vmatpush1.bf16.msra.mxu1 %v10879_v42  ;;  %6941 = vmatprep.subr.bf16.mxu0 %v10884_v43  ;;  %v10961_v42 = vld [vmem:[%s12755_s18 + $0xf90] ss:$24 sps:$4 sm:$0xff]   ;;  %v10966_v43 = vld [vmem:[%s12755_s18 + $0xc64] ss:$24 sps:$4 sm:$0xff]  }
  0xe1   : > { %6982 = vmatprep.subr.bf16.mxu1 %v10887_v44  ;;  %v10969_v44 = vld [vmem:[%s12755_s18 + $0xf64] ss:$24 sps:$4 sm:$0xff]  }
  0xe3   : > { %6942 = vmatpush2.bf16.msra.mxu0 %v10882_v45  ;;  %v10964_v45 = vld [vmem:[%s12755_s18 + $0xc60] ss:$24 sps:$4 sm:$0xff]  }
  0xe4   : > { %6983 = vmatpush2.bf16.msra.mxu1 %v10885_v46  ;;  %6943 = vmatprep.subr.bf16.mxu0 %v10890_v47  ;;  %v10967_v46 = vld [vmem:[%s12755_s18 + $0xf60] ss:$24 sps:$4 sm:$0xff]   ;;  %v10972_v47 = vld [vmem:[%s12755_s18 + $0xc34] ss:$24 sps:$4 sm:$0xff]  }
  0xe5   : > { %6984 = vmatprep.subr.bf16.mxu1 %v10893_v49  ;;  %v10975_v49 = vld [vmem:[%s12755_s18 + $0xf34] ss:$24 sps:$4 sm:$0xff]  }
  0xe7   : > { %6944 = vmatpush2.bf16.msra.mxu0 %v10888_v50  ;;  %v10970_v50 = vld [vmem:[%s12755_s18 + $0xc30] ss:$24 sps:$4 sm:$0xff]  }
  0xe8   : > { %6985 = vmatpush2.bf16.msra.mxu1 %v10891_v51  ;;  %6945 = vmatprep.subr.bf16.mxu0 %v10896_v53  ;;  %v10973_v51 = vld [vmem:[%s12755_s18 + $0xf30] ss:$24 sps:$4 sm:$0xff]   ;;  %v10978_v53 = vld [vmem:[%s12755_s18 + $0xc04] ss:$24 sps:$4 sm:$0xff]  }
  0xe9   : > { %6986 = vmatprep.subr.bf16.mxu1 %v10899_v54  ;;  %v10981_v54 = vld [vmem:[%s12755_s18 + $0xf04] ss:$24 sps:$4 sm:$0xff]  }
  0xeb   : > { %6946 = vmatpush2.bf16.msra.mxu0 %v10894_v55  ;;  %v10976_v55 = vld [vmem:[%s12755_s18 + $0xc00] ss:$24 sps:$4 sm:$0xff]  }
  0xec   : > { %6987 = vmatpush2.bf16.msra.mxu1 %v10897_v56  ;;  %6947 = vmatprep.subr.bf16.mxu0 %v10902_v57  ;;  %v10979_v56 = vld [vmem:[%s12755_s18 + $0xf00] ss:$24 sps:$4 sm:$0xff]   ;;  %v10984_v57 = vld [vmem:[%s12755_s18 + $0xed4] ss:$24 sps:$4 sm:$0xff]  }
  0xed   : > { %6988 = vmatprep.subr.bf16.mxu1 %v10905_v58  ;;  %v10987_v58 = vld [vmem:[%s12755_s18 + $0x11d4] ss:$24 sps:$4 sm:$0xff]  }
  0xef   : > { %6948 = vmatpush2.bf16.msra.mxu0 %v10900_v59  ;;  %v10982_v59 = vld [vmem:[%s12755_s18 + $0xed0] ss:$24 sps:$4 sm:$0xff]  }
  0xf0   : > { %6989 = vmatpush2.bf16.msra.mxu1 %v10903_v60  ;;  %6949 = vmatprep.subr.bf16.mxu0 %v10908_v61  ;;  %v10985_v60 = vld [vmem:[%s12755_s18 + $0x11d0] ss:$24 sps:$4 sm:$0xff]   ;;  %v10990_v61 = vld [vmem:[%s12755_s18 + $0xea4] ss:$24 sps:$4 sm:$0xff]  }
  0xf1   : > { %6990 = vmatprep.subr.bf16.mxu1 %v10911_v62  ;;  %v10993_v62 = vld [vmem:[%s12755_s18 + $0x11a4] ss:$24 sps:$4 sm:$0xff]  }
  0xf3   : > { %6950 = vmatpush2.bf16.msra.mxu0 %v10906_v63  ;;  %v10988_v63 = vld [vmem:[%s12755_s18 + $0xea0] ss:$24 sps:$4 sm:$0xff]  }
  0xf4   : > { %6991 = vmatpush2.bf16.msra.mxu1 %v10909_v0  ;;  %6951 = vmatprep.subr.bf16.mxu0 %v10914_v1  ;;  %v10991_v0 = vld [vmem:[%s12755_s18 + $0x11a0] ss:$24 sps:$4 sm:$0xff]   ;;  %v10996_v1 = vld [vmem:[%s12755_s18 + $0xe74] ss:$24 sps:$4 sm:$0xff]  }
  0xf5   : > { %6992 = vmatprep.subr.bf16.mxu1 %v10917_v2  ;;  %v10999_v2 = vld [vmem:[%s12755_s18 + $0x1174] ss:$24 sps:$4 sm:$0xff]  }
  0xf7   : > { %6952 = vmatpush2.bf16.msra.mxu0 %v10912_v3  ;;  %v10994_v3 = vld [vmem:[%s12755_s18 + $0xe70] ss:$24 sps:$4 sm:$0xff]  }
  0xf8   : > { %6993 = vmatpush2.bf16.msra.mxu1 %v10915_v4  ;;  %6953 = vmatprep.subr.bf16.mxu0 %v10920_v5  ;;  %v10997_v4 = vld [vmem:[%s12755_s18 + $0x1170] ss:$24 sps:$4 sm:$0xff]   ;;  %v11002_v5 = vld [vmem:[%s12755_s18 + $0xe44] ss:$24 sps:$4 sm:$0xff]  }
  0xf9   : > { %6994 = vmatprep.subr.bf16.mxu1 %v10923_v6  ;;  %v11005_v6 = vld [vmem:[%s12755_s18 + $0x1144] ss:$24 sps:$4 sm:$0xff]  }
  0xfb   : > { %6954 = vmatpush2.bf16.msra.mxu0 %v10918_v9  ;;  %v11000_v9 = vld [vmem:[%s12755_s18 + $0xe40] ss:$24 sps:$4 sm:$0xff]  }
  0xfc   : > { %6995 = vmatpush2.bf16.msra.mxu1 %v10921_v10  ;;  %6955 = vmatprep.subr.bf16.mxu0 %v10926_v11  ;;  %v11003_v10 = vld [vmem:[%s12755_s18 + $0x1140] ss:$24 sps:$4 sm:$0xff]   ;;  %v11008_v11 = vld [vmem:[%s12755_s18 + $0xe14] ss:$24 sps:$4 sm:$0xff]  }
  0xfd   : > { %6996 = vmatprep.subr.bf16.mxu1 %v10929_v12  ;;  %v11011_v12 = vld [vmem:[%s12755_s18 + $0x1114] ss:$24 sps:$4 sm:$0xff]  }
  0xff   : > { %6956 = vmatpush2.bf16.msra.mxu0 %v10924_v13  ;;  %v11006_v13 = vld [vmem:[%s12755_s18 + $0xe10] ss:$24 sps:$4 sm:$0xff]  }
 0x100   : > { %6997 = vmatpush2.bf16.msra.mxu1 %v10927_v14  ;;  %7007 = vmatprep.subr.bf16.mxu0 %v10936_v15  ;;  %v11009_v14 = vld [vmem:[%s12755_s18 + $0x1110] ss:$24 sps:$4 sm:$0xff]   ;;  %v11014_v15 = vld [vmem:[%s12755_s18 + $0xde4] ss:$24 sps:$4 sm:$0xff]  }
 0x101   : > { %7048 = vmatprep.subr.bf16.mxu1 %v10939_v16  ;;  %v11017_v16 = vld [vmem:[%s12755_s18 + $0x10e4] ss:$24 sps:$4 sm:$0xff]  }
 0x102   : > { %6958 = vmatmul.mubr.bf16.vlgmr.msra.gmra.mxu0 %v12942_v17 }
 0x103   : > { %6999 = vmatmul.mubr.bf16.vlgmr.msra.gmra.mxu1 %v12946_v18  ;;  %7008 = vmatpush1.bf16.msra.mxu0 %v10934_v19  ;;  %v11012_v19 = vld [vmem:[%s12755_s18 + $0xde0] ss:$24 sps:$4 sm:$0xff]  }
 0x104   : > { %7049 = vmatpush1.bf16.msra.mxu1 %v10937_v20  ;;  %7009 = vmatprep.subr.bf16.mxu0 %v10942_v21  ;;  %v11015_v20 = vld [vmem:[%s12755_s18 + $0x10e0] ss:$24 sps:$4 sm:$0xff]   ;;  %v11020_v21 = vld [vmem:[%s12755_s18 + $0xdb4] ss:$24 sps:$4 sm:$0xff]  }
 0x105   : > { %7050 = vmatprep.subr.bf16.mxu1 %v10945_v22  ;;  %7039 = vmatprep.mubr.bf16.mxu0 %v12960_v25  ;;  %v11023_v22 = vld [vmem:[%s12755_s18 + $0x10b4] ss:$24 sps:$4 sm:$0xff]  }
 0x106   : > { %7080 = vmatprep.mubr.bf16.mxu1 %v12964_v26 }
 0x107   : > { %7010 = vmatpush1.bf16.msra.mxu0 %v10940_v27  ;;  %v11018_v27 = vld [vmem:[%s12755_s18 + $0xdb0] ss:$24 sps:$4 sm:$0xff]  }
 0x108   : > { %7051 = vmatpush1.bf16.msra.mxu1 %v10943_v28  ;;  %7011 = vmatprep.subr.bf16.mxu0 %v10948_v29  ;;  %v11021_v28 = vld [vmem:[%s12755_s18 + $0x10b0] ss:$24 sps:$4 sm:$0xff]   ;;  %v11026_v29 = vld [vmem:[%s12755_s18 + $0xd84] ss:$24 sps:$4 sm:$0xff]  }
 0x109   : > { %7052 = vmatprep.subr.bf16.mxu1 %v10951_v30  ;;  %v11029_v30 = vld [vmem:[%s12755_s18 + $0x1084] ss:$24 sps:$4 sm:$0xff]  }
 0x10b   : > { %7012 = vmatpush1.bf16.msra.mxu0 %v10946_v31  ;;  %v11024_v31 = vld [vmem:[%s12755_s18 + $0xd80] ss:$24 sps:$4 sm:$0xff]  }
 0x10c   : > { %7053 = vmatpush1.bf16.msra.mxu1 %v10949_v32  ;;  %7013 = vmatprep.subr.bf16.mxu0 %v10954_v33  ;;  %v11027_v32 = vld [vmem:[%s12755_s18 + $0x1080] ss:$24 sps:$4 sm:$0xff]   ;;  %v11036_v33 = vld [vmem:[%s12755_s18 + $0x1354] ss:$24 sps:$4 sm:$0xff]  }
 0x10d   : > { %7054 = vmatprep.subr.bf16.mxu1 %v10957_v34  ;;  %v11039_v34 = vld [vmem:[%s12755_s18 + $0x1654] ss:$24 sps:$4 sm:$0xff]  }
 0x10f   : > { %7014 = vmatpush1.bf16.msra.mxu0 %v10952_v35  ;;  %v11034_v35 = vld [vmem:[%s12755_s18 + $0x1350] ss:$24 sps:$4 sm:$0xff]  }
 0x110   : > { %7055 = vmatpush1.bf16.msra.mxu1 %v10955_v36  ;;  %7015 = vmatprep.subr.bf16.mxu0 %v10960_v39  ;;  %v11037_v36 = vld [vmem:[%s12755_s18 + $0x1650] ss:$24 sps:$4 sm:$0xff]   ;;  %v13034_v39 = vcombine.low %v12953_v23, %v12953_v23 }
 0x111   : > { %7056 = vmatprep.subr.bf16.mxu1 %v10963_v40  ;;  %v13038_v40 = vcombine.low %v12956_v24, %v12956_v24 }
 0x113   : > { %7016 = vmatpush1.bf16.msra.mxu0 %v10958_v41  ;;  %v13041_v41 = vld [vmem:[%s12822_s21 + $0x30] sm:$0xff] }
 0x114   : > { %7057 = vmatpush1.bf16.msra.mxu1 %v10961_v42  ;;  %7017 = vmatprep.subr.bf16.mxu0 %v10966_v43  ;;  %v13044_v42 = vld [vmem:[%s12822_s21 + $0x38] sm:$0xff]  ;;  %v11042_v43 = vld [vmem:[%s12755_s18 + $0x1324] ss:$24 sps:$4 sm:$0xff]   ;;  %v13050_v23 = vcombine.high %v13041_v41, %v13041_v41 }
 0x115   : > { %7058 = vmatprep.subr.bf16.mxu1 %v10969_v44  ;;  %v11045_v44 = vld [vmem:[%s12755_s18 + $0x1624] ss:$24 sps:$4 sm:$0xff]   ;;  %v13054_v24 = vcombine.high %v13044_v42, %v13044_v42 }
 0x117   : > { %7018 = vmatpush1.bf16.msra.mxu0 %v10964_v45  ;;  %v11040_v45 = vld [vmem:[%s12755_s18 + $0x1320] ss:$24 sps:$4 sm:$0xff]  }
 0x118   : > { %7059 = vmatpush1.bf16.msra.mxu1 %v10967_v46  ;;  %7019 = vmatprep.subr.bf16.mxu0 %v10972_v47  ;;  %v11043_v46 = vld [vmem:[%s12755_s18 + $0x1620] ss:$24 sps:$4 sm:$0xff]   ;;  %v11048_v47 = vld [vmem:[%s12755_s18 + $0x12f4] ss:$24 sps:$4 sm:$0xff]  }
 0x119   : > { %7060 = vmatprep.subr.bf16.mxu1 %v10975_v49  ;;  %v11051_v49 = vld [vmem:[%s12755_s18 + $0x15f4] ss:$24 sps:$4 sm:$0xff]  }
 0x11b   : > { %7020 = vmatpush1.bf16.msra.mxu0 %v10970_v50  ;;  %v11046_v50 = vld [vmem:[%s12755_s18 + $0x12f0] ss:$24 sps:$4 sm:$0xff]  }
 0x11c   : > { %7061 = vmatpush1.bf16.msra.mxu1 %v10973_v51  ;;  %7021 = vmatprep.subr.bf16.mxu0 %v10978_v53  ;;  %v11049_v51 = vld [vmem:[%s12755_s18 + $0x15f0] ss:$24 sps:$4 sm:$0xff]   ;;  %v11054_v53 = vld [vmem:[%s12755_s18 + $0x12c4] ss:$24 sps:$4 sm:$0xff]  }
 0x11d   : > { %7062 = vmatprep.subr.bf16.mxu1 %v10981_v54  ;;  %v11057_v54 = vld [vmem:[%s12755_s18 + $0x15c4] ss:$24 sps:$4 sm:$0xff]  }
 0x11f   : > { %7022 = vmatpush1.bf16.msra.mxu0 %v10976_v55  ;;  %v11052_v55 = vld [vmem:[%s12755_s18 + $0x12c0] ss:$24 sps:$4 sm:$0xff]  }
 0x120   : > { %7063 = vmatpush1.bf16.msra.mxu1 %v10979_v56  ;;  %7023 = vmatprep.subr.bf16.mxu0 %v10984_v57  ;;  %v11055_v56 = vld [vmem:[%s12755_s18 + $0x15c0] ss:$24 sps:$4 sm:$0xff]   ;;  %v11060_v57 = vld [vmem:[%s12755_s18 + $0x1294] ss:$24 sps:$4 sm:$0xff]  }
 0x121   : > { %7064 = vmatprep.subr.bf16.mxu1 %v10987_v58  ;;  %v11063_v58 = vld [vmem:[%s12755_s18 + $0x1594] ss:$24 sps:$4 sm:$0xff]  }
 0x123   : > { %7024 = vmatpush2.bf16.msra.mxu0 %v10982_v59  ;;  %v11058_v59 = vld [vmem:[%s12755_s18 + $0x1290] ss:$24 sps:$4 sm:$0xff]  }
 0x124   : > { %7065 = vmatpush2.bf16.msra.mxu1 %v10985_v60  ;;  %7025 = vmatprep.subr.bf16.mxu0 %v10990_v61  ;;  %v11061_v60 = vld [vmem:[%s12755_s18 + $0x1590] ss:$24 sps:$4 sm:$0xff]   ;;  %v11066_v61 = vld [vmem:[%s12755_s18 + $0x1264] ss:$24 sps:$4 sm:$0xff]  }
 0x125   : > { %7066 = vmatprep.subr.bf16.mxu1 %v10993_v62  ;;  %v11069_v62 = vld [vmem:[%s12755_s18 + $0x1564] ss:$24 sps:$4 sm:$0xff]  }
 0x127   : > { %7026 = vmatpush2.bf16.msra.mxu0 %v10988_v63  ;;  %v11064_v63 = vld [vmem:[%s12755_s18 + $0x1260] ss:$24 sps:$4 sm:$0xff]  }
 0x128   : > { %7067 = vmatpush2.bf16.msra.mxu1 %v10991_v0  ;;  %7027 = vmatprep.subr.bf16.mxu0 %v10996_v1  ;;  %v11067_v0 = vld [vmem:[%s12755_s18 + $0x1560] ss:$24 sps:$4 sm:$0xff]   ;;  %v11072_v1 = vld [vmem:[%s12755_s18 + $0x1234] ss:$24 sps:$4 sm:$0xff]  }
 0x129   : > { %7068 = vmatprep.subr.bf16.mxu1 %v10999_v2  ;;  %v11075_v2 = vld [vmem:[%s12755_s18 + $0x1534] ss:$24 sps:$4 sm:$0xff]  }
 0x12b   : > { %7028 = vmatpush2.bf16.msra.mxu0 %v10994_v3  ;;  %v11070_v3 = vld [vmem:[%s12755_s18 + $0x1230] ss:$24 sps:$4 sm:$0xff]  }
 0x12c   : > { %7069 = vmatpush2.bf16.msra.mxu1 %v10997_v4  ;;  %7029 = vmatprep.subr.bf16.mxu0 %v11002_v5  ;;  %v11073_v4 = vld [vmem:[%s12755_s18 + $0x1530] ss:$24 sps:$4 sm:$0xff]   ;;  %v11078_v5 = vld [vmem:[%s12755_s18 + $0x1204] ss:$24 sps:$4 sm:$0xff]  }
 0x12d   : > { %7070 = vmatprep.subr.bf16.mxu1 %v11005_v6  ;;  %v11081_v6 = vld [vmem:[%s12755_s18 + $0x1504] ss:$24 sps:$4 sm:$0xff]  }
 0x12f   : > { %7030 = vmatpush2.bf16.msra.mxu0 %v11000_v9  ;;  %v11076_v9 = vld [vmem:[%s12755_s18 + $0x1200] ss:$24 sps:$4 sm:$0xff]  }
 0x130   : > { %7071 = vmatpush2.bf16.msra.mxu1 %v11003_v10  ;;  %7031 = vmatprep.subr.bf16.mxu0 %v11008_v11  ;;  %v11079_v10 = vld [vmem:[%s12755_s18 + $0x1500] ss:$24 sps:$4 sm:$0xff]   ;;  %v11084_v11 = vld [vmem:[%s12755_s18 + $0x14d4] ss:$24 sps:$4 sm:$0xff]  }
 0x131   : > { %7072 = vmatprep.subr.bf16.mxu1 %v11011_v12  ;;  %v11087_v12 = vld [vmem:[%s12755_s18 + $0x17d4] ss:$24 sps:$4 sm:$0xff]  }
 0x133   : > { %7032 = vmatpush2.bf16.msra.mxu0 %v11006_v13  ;;  %v11082_v13 = vld [vmem:[%s12755_s18 + $0x14d0] ss:$24 sps:$4 sm:$0xff]  }
 0x134   : > { %7073 = vmatpush2.bf16.msra.mxu1 %v11009_v14  ;;  %7033 = vmatprep.subr.bf16.mxu0 %v11014_v15  ;;  %v11085_v14 = vld [vmem:[%s12755_s18 + $0x17d0] ss:$24 sps:$4 sm:$0xff]   ;;  %v11090_v15 = vld [vmem:[%s12755_s18 + $0x14a4] ss:$24 sps:$4 sm:$0xff]  }
 0x135   : > { %7074 = vmatprep.subr.bf16.mxu1 %v11017_v16  ;;  %v11093_v16 = vld [vmem:[%s12755_s18 + $0x17a4] ss:$24 sps:$4 sm:$0xff]  }
 0x137   : > { %7034 = vmatpush2.bf16.msra.mxu0 %v11012_v19  ;;  %v11088_v19 = vld [vmem:[%s12755_s18 + $0x14a0] ss:$24 sps:$4 sm:$0xff]  }
 0x138   : > { %7075 = vmatpush2.bf16.msra.mxu1 %v11015_v20  ;;  %7035 = vmatprep.subr.bf16.mxu0 %v11020_v21  ;;  %v11091_v20 = vld [vmem:[%s12755_s18 + $0x17a0] ss:$24 sps:$4 sm:$0xff]   ;;  %v11096_v21 = vld [vmem:[%s12755_s18 + $0x1474] ss:$24 sps:$4 sm:$0xff]  }
 0x139   : > { %7076 = vmatprep.subr.bf16.mxu1 %v11023_v22  ;;  %v11099_v22 = vld [vmem:[%s12755_s18 + $0x1774] ss:$24 sps:$4 sm:$0xff]  }
 0x13b   : > { %7036 = vmatpush2.bf16.msra.mxu0 %v11018_v27  ;;  %v11094_v27 = vld [vmem:[%s12755_s18 + $0x1470] ss:$24 sps:$4 sm:$0xff]  }
 0x13c   : > { %7077 = vmatpush2.bf16.msra.mxu1 %v11021_v28  ;;  %7037 = vmatprep.subr.bf16.mxu0 %v11026_v29  ;;  %v11097_v28 = vld [vmem:[%s12755_s18 + $0x1770] ss:$24 sps:$4 sm:$0xff]   ;;  %v11102_v29 = vld [vmem:[%s12755_s18 + $0x1444] ss:$24 sps:$4 sm:$0xff]  }
 0x13d   : > { %7078 = vmatprep.subr.bf16.mxu1 %v11029_v30  ;;  %v11105_v30 = vld [vmem:[%s12755_s18 + $0x1744] ss:$24 sps:$4 sm:$0xff]  }
 0x13f   : > { %7038 = vmatpush2.bf16.msra.mxu0 %v11024_v31  ;;  %v11100_v31 = vld [vmem:[%s12755_s18 + $0x1440] ss:$24 sps:$4 sm:$0xff]  }
 0x140   : > { %7079 = vmatpush2.bf16.msra.mxu1 %v11027_v32  ;;  %7089 = vmatprep.subr.bf16.mxu0 %v11036_v33  ;;  %v11103_v32 = vld [vmem:[%s12755_s18 + $0x1740] ss:$24 sps:$4 sm:$0xff]   ;;  %v11108_v33 = vld [vmem:[%s12755_s18 + $0x1414] ss:$24 sps:$4 sm:$0xff]  }
 0x141   : > { %7130 = vmatprep.subr.bf16.mxu1 %v11039_v34  ;;  %v11111_v34 = vld [vmem:[%s12755_s18 + $0x1714] ss:$24 sps:$4 sm:$0xff]  }
 0x142   : > { %7040 = vmatmul.mubr.bf16.vlgmr.msra.gmra.mxu0 %v13034_v39 }
 0x143   : > { %7081 = vmatmul.mubr.bf16.vlgmr.msra.gmra.mxu1 %v13038_v40  ;;  %7090 = vmatpush1.bf16.msra.mxu0 %v11034_v35  ;;  %v11106_v35 = vld [vmem:[%s12755_s18 + $0x1410] ss:$24 sps:$4 sm:$0xff]  }
 0x144   : > { %7131 = vmatpush1.bf16.msra.mxu1 %v11037_v36  ;;  %7091 = vmatprep.subr.bf16.mxu0 %v11042_v43  ;;  %v11109_v36 = vld [vmem:[%s12755_s18 + $0x1710] ss:$24 sps:$4 sm:$0xff]   ;;  %v11114_v43 = vld [vmem:[%s12755_s18 + $0x13e4] ss:$24 sps:$4 sm:$0xff]  }
 0x145   : > { %7132 = vmatprep.subr.bf16.mxu1 %v11045_v44  ;;  %7121 = vmatprep.mubr.bf16.mxu0 %v13050_v23  ;;  %v11117_v44 = vld [vmem:[%s12755_s18 + $0x16e4] ss:$24 sps:$4 sm:$0xff]  }
 0x146   : > { %7162 = vmatprep.mubr.bf16.mxu1 %v13054_v24 }
 0x147   : > { %7092 = vmatpush1.bf16.msra.mxu0 %v11040_v45  ;;  %v11112_v45 = vld [vmem:[%s12755_s18 + $0x13e0] ss:$24 sps:$4 sm:$0xff]  }
 0x148   : > { %7133 = vmatpush1.bf16.msra.mxu1 %v11043_v46  ;;  %7093 = vmatprep.subr.bf16.mxu0 %v11048_v47  ;;  %v11115_v46 = vld [vmem:[%s12755_s18 + $0x16e0] ss:$24 sps:$4 sm:$0xff]   ;;  %v11120_v47 = vld [vmem:[%s12755_s18 + $0x13b4] ss:$24 sps:$4 sm:$0xff]  }
 0x149   : > { %7134 = vmatprep.subr.bf16.mxu1 %v11051_v49  ;;  %v11123_v49 = vld [vmem:[%s12755_s18 + $0x16b4] ss:$24 sps:$4 sm:$0xff]  }
 0x14b   : > { %7094 = vmatpush1.bf16.msra.mxu0 %v11046_v50  ;;  %v11118_v50 = vld [vmem:[%s12755_s18 + $0x13b0] ss:$24 sps:$4 sm:$0xff]  }
 0x14c   : > { %7135 = vmatpush1.bf16.msra.mxu1 %v11049_v51  ;;  %7095 = vmatprep.subr.bf16.mxu0 %v11054_v53  ;;  %v11121_v51 = vld [vmem:[%s12755_s18 + $0x16b0] ss:$24 sps:$4 sm:$0xff]   ;;  %v11126_v53 = vld [vmem:[%s12755_s18 + $0x1384] ss:$24 sps:$4 sm:$0xff]  }
 0x14d   : > { %7136 = vmatprep.subr.bf16.mxu1 %v11057_v54  ;;  %v11129_v54 = vld [vmem:[%s12755_s18 + $0x1684] ss:$24 sps:$4 sm:$0xff]  }
 0x14f   : > { %7096 = vmatpush1.bf16.msra.mxu0 %v11052_v55  ;;  %v11124_v55 = vld [vmem:[%s12755_s18 + $0x1380] ss:$24 sps:$4 sm:$0xff]  }
 0x150   : > { %7137 = vmatpush1.bf16.msra.mxu1 %v11055_v56  ;;  %7097 = vmatprep.subr.bf16.mxu0 %v11060_v57  ;;  %v11127_v56 = vld [vmem:[%s12755_s18 + $0x1680] ss:$24 sps:$4 sm:$0xff]   ;;  %v11136_v57 = vld [vmem:[%s12755_s18 + $0x1954] ss:$24 sps:$4 sm:$0xff]  }
 0x151   : > { %7138 = vmatprep.subr.bf16.mxu1 %v11063_v58  ;;  %v11139_v58 = vld [vmem:[%s12755_s18 + $0x1c54] ss:$24 sps:$4 sm:$0xff]  }
 0x153   : > { %7098 = vmatpush1.bf16.msra.mxu0 %v11058_v59  ;;  %v13121_v59 = vld [vmem:[%s12822_s21 + $0x40] sm:$0xff] }
 0x154   : > { %7139 = vmatpush1.bf16.msra.mxu1 %v11061_v60  ;;  %7099 = vmatprep.subr.bf16.mxu0 %v11066_v61  ;;  %v13125_v60 = vcombine.low %v13041_v41, %v13041_v41  ;;  %v13129_v61 = vcombine.low %v13044_v42, %v13044_v42  ;;  %v13140_v41 = vcombine.high %v13121_v59, %v13121_v59 }
 0x155   : > { %7140 = vmatprep.subr.bf16.mxu1 %v11069_v62  ;;  %v13132_v62 = vld [vmem:[%s12822_s21 + $0x48] sm:$0xff] }
 0x156   : > { %v13144_v42 = vcombine.high %v13132_v62, %v13132_v62 }
 0x157   : > { %7100 = vmatpush1.bf16.msra.mxu0 %v11064_v63  ;;  %v11134_v63 = vld [vmem:[%s12755_s18 + $0x1950] ss:$24 sps:$4 sm:$0xff]  }
 0x158   : > { %7141 = vmatpush1.bf16.msra.mxu1 %v11067_v0  ;;  %7101 = vmatprep.subr.bf16.mxu0 %v11072_v1  ;;  %v11137_v0 = vld [vmem:[%s12755_s18 + $0x1c50] ss:$24 sps:$4 sm:$0xff]   ;;  %v11142_v1 = vld [vmem:[%s12755_s18 + $0x1924] ss:$24 sps:$4 sm:$0xff]  }
 0x159   : > { %7142 = vmatprep.subr.bf16.mxu1 %v11075_v2  ;;  %v11145_v2 = vld [vmem:[%s12755_s18 + $0x1c24] ss:$24 sps:$4 sm:$0xff]  }
 0x15b   : > { %7102 = vmatpush1.bf16.msra.mxu0 %v11070_v3 }
 0x15c   : > { %7143 = vmatpush1.bf16.msra.mxu1 %v11073_v4  ;;  %7103 = vmatprep.subr.bf16.mxu0 %v11078_v5  ;;  %v11140_v5 = vld [vmem:[%s12755_s18 + $0x1920] ss:$24 sps:$4 sm:$0xff]  }
 0x15d   : > { %7144 = vmatprep.subr.bf16.mxu1 %v11081_v6 }
 0x15f   : > { %7104 = vmatpush1.bf16.msra.mxu0 %v11076_v9  ;;  %v11143_v9 = vld [vmem:[%s12755_s18 + $0x1c20] ss:$24 sps:$4 sm:$0xff]  }
 0x160   : > { %7145 = vmatpush1.bf16.msra.mxu1 %v11079_v10  ;;  %7105 = vmatprep.subr.bf16.mxu0 %v11084_v11  ;;  %v11148_v10 = vld [vmem:[%s12755_s18 + $0x18f4] ss:$24 sps:$4 sm:$0xff]  }
 0x161   : > { %7146 = vmatprep.subr.bf16.mxu1 %v11087_v12 }
 0x163   : > { %7106 = vmatpush2.bf16.msra.mxu0 %v11082_v13  ;;  %v11151_v13 = vld [vmem:[%s12755_s18 + $0x1bf4] ss:$24 sps:$4 sm:$0xff]  }
 0x164   : > { %7147 = vmatpush2.bf16.msra.mxu1 %v11085_v14  ;;  %7107 = vmatprep.subr.bf16.mxu0 %v11090_v15 }
 0x165   : > { %7148 = vmatprep.subr.bf16.mxu1 %v11093_v16  ;;  %v11146_v16 = vld [vmem:[%s12755_s18 + $0x18f0] ss:$24 sps:$4 sm:$0xff]  }
 0x167   : > { %7108 = vmatpush2.bf16.msra.mxu0 %v11088_v19 }
 0x168   : > { %7149 = vmatpush2.bf16.msra.mxu1 %v11091_v20  ;;  %7109 = vmatprep.subr.bf16.mxu0 %v11096_v21  ;;  %v11149_v20 = vld [vmem:[%s12755_s18 + $0x1bf0] ss:$24 sps:$4 sm:$0xff]   ;;  %v11154_v21 = vld [vmem:[%s12755_s18 + $0x18c4] ss:$24 sps:$4 sm:$0xff]  }
 0x169   : > { %7150 = vmatprep.subr.bf16.mxu1 %v11099_v22 }
 0x16b   : > { %7110 = vmatpush2.bf16.msra.mxu0 %v11094_v27  ;;  %v11157_v27 = vld [vmem:[%s12755_s18 + $0x1bc4] ss:$24 sps:$4 sm:$0xff]  }
 0x16c   : > { %7151 = vmatpush2.bf16.msra.mxu1 %v11097_v28  ;;  %7111 = vmatprep.subr.bf16.mxu0 %v11102_v29  ;;  %v11152_v29 = vld [vmem:[%s12755_s18 + $0x18c0] ss:$24 sps:$4 sm:$0xff]  }
 0x16d   : > { %7152 = vmatprep.subr.bf16.mxu1 %v11105_v30  ;;  %v11155_v30 = vld [vmem:[%s12755_s18 + $0x1bc0] ss:$24 sps:$4 sm:$0xff]  }
 0x16f   : > { %7112 = vmatpush2.bf16.msra.mxu0 %v11100_v31  ;;  %v11160_v31 = vld [vmem:[%s12755_s18 + $0x1894] ss:$24 sps:$4 sm:$0xff]  }
 0x170   : > { %7153 = vmatpush2.bf16.msra.mxu1 %v11103_v32  ;;  %7113 = vmatprep.subr.bf16.mxu0 %v11108_v33  ;;  %v11163_v32 = vld [vmem:[%s12755_s18 + $0x1b94] ss:$24 sps:$4 sm:$0xff]   ;;  %v11158_v33 = vld [vmem:[%s12755_s18 + $0x1890] ss:$24 sps:$4 sm:$0xff]  }
 0x171   : > { %7154 = vmatprep.subr.bf16.mxu1 %v11111_v34  ;;  %v11161_v34 = vld [vmem:[%s12755_s18 + $0x1b90] ss:$24 sps:$4 sm:$0xff]  }
 0x173   : > { %7114 = vmatpush2.bf16.msra.mxu0 %v11106_v35  ;;  %v11166_v35 = vld [vmem:[%s12755_s18 + $0x1864] ss:$24 sps:$4 sm:$0xff]  }
 0x174   : > { %7155 = vmatpush2.bf16.msra.mxu1 %v11109_v36  ;;  %7115 = vmatprep.subr.bf16.mxu0 %v11114_v43  ;;  %v11169_v36 = vld [vmem:[%s12755_s18 + $0x1b64] ss:$24 sps:$4 sm:$0xff]   ;;  %v11164_v43 = vld [vmem:[%s12755_s18 + $0x1860] ss:$24 sps:$4 sm:$0xff]  }
 0x175   : > { %7156 = vmatprep.subr.bf16.mxu1 %v11117_v44  ;;  %v11167_v44 = vld [vmem:[%s12755_s18 + $0x1b60] ss:$24 sps:$4 sm:$0xff]  }
 0x177   : > { %7116 = vmatpush2.bf16.msra.mxu0 %v11112_v45  ;;  %v11172_v45 = vld [vmem:[%s12755_s18 + $0x1834] ss:$24 sps:$4 sm:$0xff]  }
 0x178   : > { %7157 = vmatpush2.bf16.msra.mxu1 %v11115_v46  ;;  %7117 = vmatprep.subr.bf16.mxu0 %v11120_v47  ;;  %v11175_v46 = vld [vmem:[%s12755_s18 + $0x1b34] ss:$24 sps:$4 sm:$0xff]   ;;  %v11170_v47 = vld [vmem:[%s12755_s18 + $0x1830] ss:$24 sps:$4 sm:$0xff]  }
 0x179   : > { %7158 = vmatprep.subr.bf16.mxu1 %v11123_v49  ;;  %v11173_v49 = vld [vmem:[%s12755_s18 + $0x1b30] ss:$24 sps:$4 sm:$0xff]  }
 0x17b   : > { %7118 = vmatpush2.bf16.msra.mxu0 %v11118_v50  ;;  %v11178_v50 = vld [vmem:[%s12755_s18 + $0x1804] ss:$24 sps:$4 sm:$0xff]  }
 0x17c   : > { %7159 = vmatpush2.bf16.msra.mxu1 %v11121_v51  ;;  %7119 = vmatprep.subr.bf16.mxu0 %v11126_v53  ;;  %v11181_v51 = vld [vmem:[%s12755_s18 + $0x1b04] ss:$24 sps:$4 sm:$0xff]   ;;  %v11176_v53 = vld [vmem:[%s12755_s18 + $0x1800] ss:$24 sps:$4 sm:$0xff]  }
 0x17d   : > { %7160 = vmatprep.subr.bf16.mxu1 %v11129_v54  ;;  %v11179_v54 = vld [vmem:[%s12755_s18 + $0x1b00] ss:$24 sps:$4 sm:$0xff]  }
 0x17f   : > { %7120 = vmatpush2.bf16.msra.mxu0 %v11124_v55  ;;  %v11184_v55 = vld [vmem:[%s12755_s18 + $0x1ad4] ss:$24 sps:$4 sm:$0xff]  }
 0x180   : > { %7161 = vmatpush2.bf16.msra.mxu1 %v11127_v56  ;;  %7171 = vmatprep.subr.bf16.mxu0 %v11136_v57  ;;  %v11187_v56 = vld [vmem:[%s12755_s18 + $0x1dd4] ss:$24 sps:$4 sm:$0xff]   ;;  %v11182_v57 = vld [vmem:[%s12755_s18 + $0x1ad0] ss:$24 sps:$4 sm:$0xff]  }
 0x181   : > { %7212 = vmatprep.subr.bf16.mxu1 %v11139_v58  ;;  %v11185_v58 = vld [vmem:[%s12755_s18 + $0x1dd0] ss:$24 sps:$4 sm:$0xff]  }
 0x182   : > { %v6877_v3 = vpop.f32.mrf.mxu0  ;;  %7122 = vmatmul.mubr.bf16.vlgmr.msra.gmra.mxu0 %v13125_v60 }
 0x183   : > { %v6918_v4 = vpop.f32.mrf.mxu1  ;;  %7163 = vmatmul.mubr.bf16.vlgmr.msra.gmra.mxu1 %v13129_v61  ;;  %7172 = vmatpush1.bf16.msra.mxu0 %v11134_v63  ;;  %v11190_v63 = vld [vmem:[%s12755_s18 + $0x1aa4] ss:$24 sps:$4 sm:$0xff]  }
 0x184   : > { %v13149_v6 = vadd.f32 %v6918_v4, %v6877_v3  ;;  %7213 = vmatpush1.bf16.msra.mxu1 %v11137_v0  ;;  %v6879_v11 = vpop.f32.mrf.mxu0  ;;  %7173 = vmatprep.subr.bf16.mxu0 %v11142_v1  ;;  %v11193_v0 = vld [vmem:[%s12755_s18 + $0x1da4] ss:$24 sps:$4 sm:$0xff]   ;;  %v11188_v1 = vld [vmem:[%s12755_s18 + $0x1aa0] ss:$24 sps:$4 sm:$0xff]   ;;  %v11196_v3 = vld [vmem:[%s12755_s18 + $0x1a74] ss:$24 sps:$4 sm:$0xff]  }
 0x185   : > { %v6920_v12 = vpop.f32.mrf.mxu1  ;;  %7214 = vmatprep.subr.bf16.mxu1 %v11145_v2  ;;  %7203 = vmatprep.mubr.bf16.mxu0 %v13140_v41  ;;  %v11191_v2 = vld [vmem:[%s12755_s18 + $0x1da0] ss:$24 sps:$4 sm:$0xff]   ;;  %v11199_v4 = vld [vmem:[%s12755_s18 + $0x1d74] ss:$24 sps:$4 sm:$0xff]  }
 0x186   : > { %v13154_v14 = vadd.f32 %v6920_v12, %v6879_v11  ;;  %7244 = vmatprep.mubr.bf16.mxu1 %v13144_v42  ;;  %v6881_v15 = vpop.f32.mrf.mxu0  ;;  %v11205_v11 = vld [vmem:[%s12755_s18 + $0x1d44] ss:$24 sps:$4 sm:$0xff]   ;;  %v11200_v12 = vld [vmem:[%s12755_s18 + $0x1a40] ss:$24 sps:$4 sm:$0xff]  }
 0x187   : > { %v6922_v19 = vpop.f32.mrf.mxu1  ;;  %7174 = vmatpush1.bf16.msra.mxu0 %v11140_v5  ;;  %v11194_v5 = vld [vmem:[%s12755_s18 + $0x1a70] ss:$24 sps:$4 sm:$0xff]   ;;  %v11208_v15 = vld [vmem:[%s12755_s18 + $0x1a14] ss:$24 sps:$4 sm:$0xff]  }
 0x188   : > { %7215 = vmatpush1.bf16.msra.mxu1 %v11143_v9  ;;  %v6882_v22 = vpop.f32.mrf.mxu0  ;;  %7175 = vmatprep.subr.bf16.mxu0 %v11148_v10  ;;  %v11197_v9 = vld [vmem:[%s12755_s18 + $0x1d70] ss:$24 sps:$4 sm:$0xff]   ;;  %v11202_v10 = vld [vmem:[%s12755_s18 + $0x1a44] ss:$24 sps:$4 sm:$0xff]  }
 0x189   : > { %7216 = vmatprep.subr.bf16.mxu1 %v11151_v13  ;;  %v6923_v28 = vpop.f32.mrf.mxu1  ;;  %v11203_v13 = vld [vmem:[%s12755_s18 + $0x1d40] ss:$24 sps:$4 sm:$0xff]   ;;  %v11206_v19 = vld [vmem:[%s12755_s18 + $0x1a10] ss:$24 sps:$4 sm:$0xff]   ;;  %v11217_v22 = vld [vmem:[%s12755_s18 + $0x1ce4] ss:$24 sps:$4 sm:$0xff]  }
 0x18a   : > { %v11215_v28 = vld [vmem:[%s12755_s18 + $0x1ce0] ss:$24 sps:$4 sm:$0xff]  }
 0x18b   : > { %7176 = vmatpush1.bf16.msra.mxu0 %v11146_v16  ;;  %v11211_v16 = vld [vmem:[%s12755_s18 + $0x1d14] ss:$24 sps:$4 sm:$0xff]  }
 0x18c   : > { %7217 = vmatpush1.bf16.msra.mxu1 %v11149_v20  ;;  %7177 = vmatprep.subr.bf16.mxu0 %v11154_v21  ;;  %v11209_v20 = vld [vmem:[%s12755_s18 + $0x1d10] ss:$24 sps:$4 sm:$0xff]   ;;  %v11214_v21 = vld [vmem:[%s12755_s18 + $0x19e4] ss:$24 sps:$4 sm:$0xff]  }
 0x18d   : > { %7218 = vmatprep.subr.bf16.mxu1 %v11157_v27  ;;  %v11212_v27 = vld [vmem:[%s12755_s18 + $0x19e0] ss:$24 sps:$4 sm:$0xff]  }
 0x18f   : > { %7178 = vmatpush1.bf16.msra.mxu0 %v11152_v29  ;;  %v11220_v29 = vld [vmem:[%s12755_s18 + $0x19b4] ss:$24 sps:$4 sm:$0xff]  }
 0x190   : > { %7219 = vmatpush1.bf16.msra.mxu1 %v11155_v30  ;;  %7179 = vmatprep.subr.bf16.mxu0 %v11160_v31  ;;  %v11223_v30 = vld [vmem:[%s12755_s18 + $0x1cb4] ss:$24 sps:$4 sm:$0xff]   ;;  %v11218_v31 = vld [vmem:[%s12755_s18 + $0x19b0] ss:$24 sps:$4 sm:$0xff]  }
 0x191   : > { %7220 = vmatprep.subr.bf16.mxu1 %v11163_v32  ;;  %v11221_v32 = vld [vmem:[%s12755_s18 + $0x1cb0] ss:$24 sps:$4 sm:$0xff]  }
 0x193   : > { %7180 = vmatpush1.bf16.msra.mxu0 %v11158_v33  ;;  %v11226_v33 = vld [vmem:[%s12755_s18 + $0x1984] ss:$24 sps:$4 sm:$0xff]  }
 0x194   : > { %7221 = vmatpush1.bf16.msra.mxu1 %v11161_v34  ;;  %7181 = vmatprep.subr.bf16.mxu0 %v11166_v35  ;;  %v11229_v34 = vld [vmem:[%s12755_s18 + $0x1c84] ss:$24 sps:$4 sm:$0xff]   ;;  %v11224_v35 = vld [vmem:[%s12755_s18 + $0x1980] ss:$24 sps:$4 sm:$0xff]  }
 0x195   : > { %7222 = vmatprep.subr.bf16.mxu1 %v11169_v36  ;;  %v11227_v36 = vld [vmem:[%s12755_s18 + $0x1c80] ss:$24 sps:$4 sm:$0xff]  }
 0x197   : > { %7182 = vmatpush1.bf16.msra.mxu0 %v11164_v43  ;;  %v11236_v43 = vld [vmem:[%s12755_s18 + $0x1f54] ss:$24 sps:$4 sm:$0xff]  }
 0x198   : > { %7223 = vmatpush1.bf16.msra.mxu1 %v11167_v44  ;;  %7183 = vmatprep.subr.bf16.mxu0 %v11172_v45  ;;  %v11239_v44 = vld [vmem:[%s12755_s18 + $0x15c] ss:$24 sps:$4 sm:$0xff]   ;;  %v13215_v45 = vld [vmem:[%s12822_s21 + $0x50] sm:$0xff] }
 0x199   : > { %7224 = vmatprep.subr.bf16.mxu1 %v11175_v46  ;;  %v11234_v46 = vld [vmem:[%s12755_s18 + $0x1f50] ss:$24 sps:$4 sm:$0xff]  }
 0x19b   : > { %7184 = vmatpush1.bf16.msra.mxu0 %v11170_v47  ;;  %v11237_v47 = vld [vmem:[%s12755_s18 + $0x158] ss:$24 sps:$4 sm:$0xff]  }
 0x19c   : > { %7225 = vmatpush1.bf16.msra.mxu1 %v11173_v49  ;;  %7185 = vmatprep.subr.bf16.mxu0 %v11178_v50  ;;  %v13221_v49 = vcombine.low %v13121_v59, %v13121_v59  ;;  %v13225_v50 = vcombine.low %v13132_v62, %v13132_v62 }
 0x19d   : > { %7226 = vmatprep.subr.bf16.mxu1 %v11181_v51  ;;  %v11242_v51 = vld [vmem:[%s12755_s18 + $0x1f24] ss:$24 sps:$4 sm:$0xff]  }
 0x19f   : > { %7186 = vmatpush1.bf16.msra.mxu0 %v11176_v53  ;;  %v11245_v53 = vld [vmem:[%s12755_s18 + $0x12c] ss:$24 sps:$4 sm:$0xff]  }
 0x1a0   : > { %7227 = vmatpush1.bf16.msra.mxu1 %v11179_v54  ;;  %7187 = vmatprep.subr.bf16.mxu0 %v11184_v55  ;;  %v11240_v54 = vld [vmem:[%s12755_s18 + $0x1f20] ss:$24 sps:$4 sm:$0xff]  }
 0x1a1   : > { %7228 = vmatprep.subr.bf16.mxu1 %v11187_v56  ;;  %v11243_v55 = vld [vmem:[%s12755_s18 + $0x128] ss:$24 sps:$4 sm:$0xff]   ;;  %v13233_v56 = vcombine.high %v13215_v45, %v13215_v45 }
 0x1a3   : > { %7188 = vmatpush2.bf16.msra.mxu0 %v11182_v57 }
 0x1a4   : > { %7229 = vmatpush2.bf16.msra.mxu1 %v11185_v58  ;;  %7189 = vmatprep.subr.bf16.mxu0 %v11190_v63 }
 0x1a5   : > { %7230 = vmatprep.subr.bf16.mxu1 %v11193_v0  ;;  %v11248_v0 = vld [vmem:[%s12755_s18 + $0x1ef4] ss:$24 sps:$4 sm:$0xff]  }
 0x1a7   : > { %7190 = vmatpush2.bf16.msra.mxu0 %v11188_v1  ;;  %v11251_v1 = vld [vmem:[%s12755_s18 + $0xfc] ss:$24 sps:$4 sm:$0xff]  }
 0x1a8   : > { %7231 = vmatpush2.bf16.msra.mxu1 %v11191_v2  ;;  %7191 = vmatprep.subr.bf16.mxu0 %v11196_v3 }
 0x1a9   : > { %7232 = vmatprep.subr.bf16.mxu1 %v11199_v4  ;;  %v11246_v4 = vld [vmem:[%s12755_s18 + $0x1ef0] ss:$24 sps:$4 sm:$0xff]  }
 0x1ab   : > { %7192 = vmatpush2.bf16.msra.mxu0 %v11194_v5  ;;  %v11249_v5 = vld [vmem:[%s12755_s18 + $0xf8] ss:$24 sps:$4 sm:$0xff]  }
 0x1ac   : > { %7233 = vmatpush2.bf16.msra.mxu1 %v11197_v9  ;;  %7193 = vmatprep.subr.bf16.mxu0 %v11202_v10 }
 0x1ad   : > { %7234 = vmatprep.subr.bf16.mxu1 %v11205_v11 }
 0x1af   : > { %7194 = vmatpush2.bf16.msra.mxu0 %v11200_v12  ;;  %v11257_v12 = vld [vmem:[%s12755_s18 + $0xcc] ss:$24 sps:$4 sm:$0xff]  }
 0x1b0   : > { %7235 = vmatpush2.bf16.msra.mxu1 %v11203_v13  ;;  %7195 = vmatprep.subr.bf16.mxu0 %v11208_v15  ;;  %v11252_v15 = vld [vmem:[%s12755_s18 + $0x1ec0] ss:$24 sps:$4 sm:$0xff]  }
 0x1b1   : > { %7236 = vmatprep.subr.bf16.mxu1 %v11211_v16  ;;  %v11255_v16 = vld [vmem:[%s12755_s18 + $0xc8] ss:$24 sps:$4 sm:$0xff]  }
 0x1b3   : > { %7196 = vmatpush2.bf16.msra.mxu0 %v11206_v19  ;;  %v11260_v19 = vld [vmem:[%s12755_s18 + $0x1e94] ss:$24 sps:$4 sm:$0xff]  }
 0x1b4   : > { %7237 = vmatpush2.bf16.msra.mxu1 %v11209_v20  ;;  %7197 = vmatprep.subr.bf16.mxu0 %v11214_v21  ;;  %v11263_v20 = vld [vmem:[%s12755_s18 + $0x9c] ss:$24 sps:$4 sm:$0xff]   ;;  %v11258_v21 = vld [vmem:[%s12755_s18 + $0x1e90] ss:$24 sps:$4 sm:$0xff]  }
 0x1b5   : > { %7238 = vmatprep.subr.bf16.mxu1 %v11217_v22  ;;  %v11261_v22 = vld [vmem:[%s12755_s18 + $0x98] ss:$24 sps:$4 sm:$0xff]  }
 0x1b7   : > { %7198 = vmatpush2.bf16.msra.mxu0 %v11212_v27  ;;  %v11266_v27 = vld [vmem:[%s12755_s18 + $0x1e64] ss:$24 sps:$4 sm:$0xff]  }
 0x1b8   : > { %7239 = vmatpush2.bf16.msra.mxu1 %v11215_v28  ;;  %7199 = vmatprep.subr.bf16.mxu0 %v11220_v29  ;;  %v11269_v28 = vld [vmem:[%s12755_s18 + $0x6c] ss:$24 sps:$4 sm:$0xff]   ;;  %v11264_v29 = vld [vmem:[%s12755_s18 + $0x1e60] ss:$24 sps:$4 sm:$0xff]  }
 0x1b9   : > { %7240 = vmatprep.subr.bf16.mxu1 %v11223_v30  ;;  %v11267_v30 = vld [vmem:[%s12755_s18 + $0x68] ss:$24 sps:$4 sm:$0xff]  }
 0x1bb   : > { %7200 = vmatpush2.bf16.msra.mxu0 %v11218_v31  ;;  %v11272_v31 = vld [vmem:[%s12755_s18 + $0x1e34] ss:$24 sps:$4 sm:$0xff]  }
 0x1bc   : > { %7241 = vmatpush2.bf16.msra.mxu1 %v11221_v32  ;;  %7201 = vmatprep.subr.bf16.mxu0 %v11226_v33  ;;  %v11275_v32 = vld [vmem:[%s12755_s18 + $0x3c] ss:$24 sps:$4 sm:$0xff]   ;;  %v11270_v33 = vld [vmem:[%s12755_s18 + $0x1e30] ss:$24 sps:$4 sm:$0xff]  }
 0x1bd   : > { %7242 = vmatprep.subr.bf16.mxu1 %v11229_v34  ;;  %v11273_v34 = vld [vmem:[%s12755_s18 + $0x38] ss:$24 sps:$4 sm:$0xff]  }
 0x1bf   : > { %7202 = vmatpush2.bf16.msra.mxu0 %v11224_v35  ;;  %v11278_v35 = vld [vmem:[%s12755_s18 + $0x1e04] ss:$24 sps:$4 sm:$0xff]  }
 0x1c0   : > { %7243 = vmatpush2.bf16.msra.mxu1 %v11227_v36  ;;  %7253 = vmatprep.subr.bf16.mxu0 %v11236_v43  ;;  %v11281_v36 = vld [vmem:[%s12755_s18 + $0xc] ss:$24 sps:$4 sm:$0xff]   ;;  %v11276_v43 = vld [vmem:[%s12755_s18 + $0x1e00] ss:$24 sps:$4 sm:$0xff]  }
 0x1c1   : > { %7294 = vmatprep.subr.bf16.mxu1 %v11239_v44  ;;  %v11279_v44 = vld [vmem:[%s12755_s18 + $0x8] ss:$24 sps:$4 sm:$0xff]  }
 0x1c2   : > { %v6959_v59 = vpop.f32.mrf.mxu0  ;;  %7204 = vmatmul.mubr.bf16.vlgmr.msra.gmra.mxu0 %v13221_v49 }
 0x1c3   : > { %7245 = vmatmul.mubr.bf16.vlgmr.msra.gmra.mxu1 %v13225_v50  ;;  %v7000_v62 = vpop.f32.mrf.mxu1  ;;  %v6960_v57 = vadd.f32 %v6959_v59, %v13149_v6  ;;  %7254 = vmatpush1.bf16.msra.mxu0 %v11234_v46  ;;  %v11284_v46 = vld [vmem:[%s12755_s18 + $0x20d4] ss:$24 sps:$4 sm:$0xff]   ;;  %v11288_v59 = vld [vmem:[%s12755_s18 + $0x20a0] ss:$24 sps:$4 sm:$0xff]  }
 0x1c4   : > { %7295 = vmatpush1.bf16.msra.mxu1 %v11237_v47  ;;  %v6961_v58 = vpop.f32.mrf.mxu0  ;;  %7255 = vmatprep.subr.bf16.mxu0 %v11242_v51  ;;  %v11287_v47 = vld [vmem:[%s12755_s18 + $0x2dc] ss:$24 sps:$4 sm:$0xff]   ;;  %v11282_v51 = vld [vmem:[%s12755_s18 + $0x20d0] ss:$24 sps:$4 sm:$0xff]  }
 0x1c5   : > { %v7002_v63 = vpop.f32.mrf.mxu1  ;;  %7296 = vmatprep.subr.bf16.mxu1 %v11245_v53  ;;  %v6962_v2 = vadd.f32 %v6961_v58, %v13154_v14  ;;  %v13241_v3 = vadd.f32 %v7000_v62, %v6960_v57  ;;  %7285 = vmatprep.mubr.bf16.mxu0 %v13233_v56  ;;  %v11254_v14 = vld [vmem:[%s12755_s18 + $0x1ec4] ss:$24 sps:$4 sm:$0xff]   ;;  %v11285_v53 = vld [vmem:[%s12755_s18 + $0x2d8] ss:$24 sps:$4 sm:$0xff]   ;;  %v11291_v62 = vld [vmem:[%s12755_s18 + $0x2a8] ss:$24 sps:$4 sm:$0xff]  }
 0x1c6   : > { %7326 = vmatprep.mubr.bf16.mxu1 %v12827_v48  ;;  %v6963_v6 = vpop.f32.mrf.mxu0  ;;  %v11296_v57 = vld [vmem:[%s12755_s18 + $0x2074] ss:$24 sps:$4 sm:$0xff]  }
 0x1c7   : > { %v7004_v9 = vpop.f32.mrf.mxu1  ;;  %v13247_v10 = vadd.f32 %v7002_v63, %v6962_v2  ;;  %7256 = vmatpush1.bf16.msra.mxu0 %v11240_v54  ;;  %v11290_v54 = vld [vmem:[%s12755_s18 + $0x20a4] ss:$24 sps:$4 sm:$0xff]   ;;  %v11294_v63 = vld [vmem:[%s12755_s18 + $0x2070] ss:$24 sps:$4 sm:$0xff]   ;;  %v11308_v6 = vld [vmem:[%s12755_s18 + $0x2014] ss:$24 sps:$4 sm:$0xff]  }
 0x1c8   : > { %7297 = vmatpush1.bf16.msra.mxu1 %v11243_v55  ;;  %v6964_v11 = vpop.f32.mrf.mxu0  ;;  %7257 = vmatprep.subr.bf16.mxu0 %v11248_v0  ;;  %v11293_v55 = vld [vmem:[%s12755_s18 + $0x2ac] ss:$24 sps:$4 sm:$0xff]   ;;  %v11299_v58 = vld [vmem:[%s12755_s18 + $0x27c] ss:$24 sps:$4 sm:$0xff]   ;;  %v11297_v0 = vld [vmem:[%s12755_s18 + $0x278] ss:$24 sps:$4 sm:$0xff]  }
 0x1c9   : > { %7298 = vmatprep.subr.bf16.mxu1 %v11251_v1  ;;  %v7005_v13 = vpop.f32.mrf.mxu1  ;;  %v11302_v1 = vld [vmem:[%s12755_s18 + $0x2044] ss:$24 sps:$4 sm:$0xff]   ;;  %v11306_v11 = vld [vmem:[%s12755_s18 + $0x2010] ss:$24 sps:$4 sm:$0xff]  }
 0x1ca   : > { %v11305_v2 = vld [vmem:[%s12755_s18 + $0x24c] ss:$24 sps:$4 sm:$0xff]   ;;  %v11311_v9 = vld [vmem:[%s12755_s18 + $0x21c] ss:$24 sps:$4 sm:$0xff]  }
 0x1cb   : > { %7258 = vmatpush1.bf16.msra.mxu0 %v11246_v4  ;;  %v11300_v4 = vld [vmem:[%s12755_s18 + $0x2040] ss:$24 sps:$4 sm:$0xff]   ;;  %v11317_v13 = vld [vmem:[%s12755_s18 + $0x1ec] ss:$24 sps:$4 sm:$0xff]  }
 0x1cc   : > { %7299 = vmatpush1.bf16.msra.mxu1 %v11249_v5  ;;  %7259 = vmatprep.subr.bf16.mxu0 %v11254_v14  ;;  %v11303_v5 = vld [vmem:[%s12755_s18 + $0x248] ss:$24 sps:$4 sm:$0xff]   ;;  %v11309_v14 = vld [vmem:[%s12755_s18 + $0x218] ss:$24 sps:$4 sm:$0xff]  }
 0x1cd   : > { %7300 = vmatprep.subr.bf16.mxu1 %v11257_v12  ;;  %v11314_v12 = vld [vmem:[%s12755_s18 + $0x1fe4] ss:$24 sps:$4 sm:$0xff]  }
 0x1cf   : > { %7260 = vmatpush1.bf16.msra.mxu0 %v11252_v15  ;;  %v11312_v15 = vld [vmem:[%s12755_s18 + $0x1fe0] ss:$24 sps:$4 sm:$0xff]  }
 0x1d0   : > { %7301 = vmatpush1.bf16.msra.mxu1 %v11255_v16  ;;  %7261 = vmatprep.subr.bf16.mxu0 %v11260_v19  ;;  %v11315_v16 = vld [vmem:[%s12755_s18 + $0x1e8] ss:$24 sps:$4 sm:$0xff]   ;;  %v11320_v19 = vld [vmem:[%s12755_s18 + $0x1fb4] ss:$24 sps:$4 sm:$0xff]  }
 0x1d1   : > { %7302 = vmatprep.subr.bf16.mxu1 %v11263_v20  ;;  %v11323_v20 = vld [vmem:[%s12755_s18 + $0x1bc] ss:$24 sps:$4 sm:$0xff]  }
 0x1d3   : > { %7262 = vmatpush1.bf16.msra.mxu0 %v11258_v21  ;;  %v11318_v21 = vld [vmem:[%s12755_s18 + $0x1fb0] ss:$24 sps:$4 sm:$0xff]  }
 0x1d4   : > { %7303 = vmatpush1.bf16.msra.mxu1 %v11261_v22  ;;  %7263 = vmatprep.subr.bf16.mxu0 %v11266_v27  ;;  %v11321_v22 = vld [vmem:[%s12755_s18 + $0x1b8] ss:$24 sps:$4 sm:$0xff]   ;;  %v11326_v27 = vld [vmem:[%s12755_s18 + $0x1f84] ss:$24 sps:$4 sm:$0xff]  }
 0x1d5   : > { %7304 = vmatprep.subr.bf16.mxu1 %v11269_v28  ;;  %v11329_v28 = vld [vmem:[%s12755_s18 + $0x18c] ss:$24 sps:$4 sm:$0xff]  }
 0x1d7   : > { %7264 = vmatpush1.bf16.msra.mxu0 %v11264_v29  ;;  %v11324_v29 = vld [vmem:[%s12755_s18 + $0x1f80] ss:$24 sps:$4 sm:$0xff]  }
 0x1d8   : > { %7305 = vmatpush1.bf16.msra.mxu1 %v11267_v30  ;;  %7265 = vmatprep.subr.bf16.mxu0 %v11272_v31  ;;  %v11327_v30 = vld [vmem:[%s12755_s18 + $0x188] ss:$24 sps:$4 sm:$0xff]   ;;  %v11334_v31 = vld [vmem:[%s12755_s18 + $0x45c] ss:$24 sps:$4 sm:$0xff]  }
 0x1d9   : > { %7306 = vmatprep.subr.bf16.mxu1 %v11275_v32  ;;  %v11337_v32 = vld [vmem:[%s12755_s18 + $0x75c] ss:$24 sps:$4 sm:$0xff]  }
 0x1db   : > { %7266 = vmatpush1.bf16.msra.mxu0 %v11270_v33  ;;  %v11332_v33 = vld [vmem:[%s12755_s18 + $0x458] ss:$24 sps:$4 sm:$0xff]  }
 0x1dc   : > { %7307 = vmatpush1.bf16.msra.mxu1 %v11273_v34  ;;  %7267 = vmatprep.subr.bf16.mxu0 %v11278_v35  ;;  %v11335_v34 = vld [vmem:[%s12755_s18 + $0x758] ss:$24 sps:$4 sm:$0xff]   ;;  %v13307_v35 = vcombine.low %v13215_v45, %v13215_v45 }
 0x1dd   : > { %7308 = vmatprep.subr.bf16.mxu1 %v11281_v36  ;;  %v11340_v36 = vld [vmem:[%s12755_s18 + $0x42c] ss:$24 sps:$4 sm:$0xff]  }
 0x1df   : > { %7268 = vmatpush1.bf16.msra.mxu0 %v11276_v43  ;;  %v11343_v43 = vld [vmem:[%s12755_s18 + $0x72c] ss:$24 sps:$4 sm:$0xff]  }
 0x1e0   : > { %7309 = vmatpush1.bf16.msra.mxu1 %v11279_v44  ;;  %7269 = vmatprep.subr.bf16.mxu0 %v11284_v46  ;;  %v11338_v44 = vld [vmem:[%s12755_s18 + $0x428] ss:$24 sps:$4 sm:$0xff]  }
 0x1e1   : > { %7310 = vmatprep.subr.bf16.mxu1 %v11287_v47  ;;  %v11341_v46 = vld [vmem:[%s12755_s18 + $0x728] ss:$24 sps:$4 sm:$0xff]  }
 0x1e3   : > { %7270 = vmatpush2.bf16.msra.mxu0 %v11282_v51 }
 0x1e4   : > { %7311 = vmatpush2.bf16.msra.mxu1 %v11285_v53  ;;  %7271 = vmatprep.subr.bf16.mxu0 %v11290_v54 }
 0x1e5   : > { %7312 = vmatprep.subr.bf16.mxu1 %v11293_v55  ;;  %v11346_v55 = vld [vmem:[%s12755_s18 + $0x3fc] ss:$24 sps:$4 sm:$0xff]  }
 0x1e7   : > { %7272 = vmatpush2.bf16.msra.mxu0 %v11288_v59  ;;  %v11349_v59 = vld [vmem:[%s12755_s18 + $0x6fc] ss:$24 sps:$4 sm:$0xff]  }
 0x1e8   : > { %7313 = vmatpush2.bf16.msra.mxu1 %v11291_v62  ;;  %7273 = vmatprep.subr.bf16.mxu0 %v11296_v57 }
 0x1e9   : > { %7314 = vmatprep.subr.bf16.mxu1 %v11299_v58  ;;  %v11344_v58 = vld [vmem:[%s12755_s18 + $0x3f8] ss:$24 sps:$4 sm:$0xff]  }
 0x1eb   : > { %7274 = vmatpush2.bf16.msra.mxu0 %v11294_v63  ;;  %v11347_v63 = vld [vmem:[%s12755_s18 + $0x6f8] ss:$24 sps:$4 sm:$0xff]  }
 0x1ec   : > { %7315 = vmatpush2.bf16.msra.mxu1 %v11297_v0  ;;  %7275 = vmatprep.subr.bf16.mxu0 %v11302_v1 }
 0x1ed   : > { %7316 = vmatprep.subr.bf16.mxu1 %v11305_v2 }
 0x1ef   : > { %7276 = vmatpush2.bf16.msra.mxu0 %v11300_v4  ;;  %v11355_v4 = vld [vmem:[%s12755_s18 + $0x6cc] ss:$24 sps:$4 sm:$0xff]  }
 0x1f0   : > { %7317 = vmatpush2.bf16.msra.mxu1 %v11303_v5  ;;  %7277 = vmatprep.subr.bf16.mxu0 %v11308_v6  ;;  %v11350_v6 = vld [vmem:[%s12755_s18 + $0x3c8] ss:$24 sps:$4 sm:$0xff]  }
 0x1f1   : > { %7318 = vmatprep.subr.bf16.mxu1 %v11311_v9  ;;  %v11353_v9 = vld [vmem:[%s12755_s18 + $0x6c8] ss:$24 sps:$4 sm:$0xff]  }
 0x1f3   : > { %7278 = vmatpush2.bf16.msra.mxu0 %v11306_v11  ;;  %v11358_v11 = vld [vmem:[%s12755_s18 + $0x39c] ss:$24 sps:$4 sm:$0xff]  }
 0x1f4   : > { %7319 = vmatpush2.bf16.msra.mxu1 %v11309_v14  ;;  %7279 = vmatprep.subr.bf16.mxu0 %v11314_v12  ;;  %v11361_v14 = vld [vmem:[%s12755_s18 + $0x69c] ss:$24 sps:$4 sm:$0xff]   ;;  %v11356_v12 = vld [vmem:[%s12755_s18 + $0x398] ss:$24 sps:$4 sm:$0xff]  }
 0x1f5   : > { %7320 = vmatprep.subr.bf16.mxu1 %v11317_v13  ;;  %v11359_v13 = vld [vmem:[%s12755_s18 + $0x698] ss:$24 sps:$4 sm:$0xff]  }
 0x1f7   : > { %7280 = vmatpush2.bf16.msra.mxu0 %v11312_v15  ;;  %v11364_v15 = vld [vmem:[%s12755_s18 + $0x36c] ss:$24 sps:$4 sm:$0xff]  }
 0x1f8   : > { %7321 = vmatpush2.bf16.msra.mxu1 %v11315_v16  ;;  %7281 = vmatprep.subr.bf16.mxu0 %v11320_v19  ;;  %v11367_v16 = vld [vmem:[%s12755_s18 + $0x66c] ss:$24 sps:$4 sm:$0xff]   ;;  %v11362_v19 = vld [vmem:[%s12755_s18 + $0x368] ss:$24 sps:$4 sm:$0xff]  }
 0x1f9   : > { %7322 = vmatprep.subr.bf16.mxu1 %v11323_v20  ;;  %v11365_v20 = vld [vmem:[%s12755_s18 + $0x668] ss:$24 sps:$4 sm:$0xff]  }
 0x1fb   : > { %7282 = vmatpush2.bf16.msra.mxu0 %v11318_v21  ;;  %v11370_v21 = vld [vmem:[%s12755_s18 + $0x33c] ss:$24 sps:$4 sm:$0xff]  }
 0x1fc   : > { %7323 = vmatpush2.bf16.msra.mxu1 %v11321_v22  ;;  %7283 = vmatprep.subr.bf16.mxu0 %v11326_v27  ;;  %v11373_v22 = vld [vmem:[%s12755_s18 + $0x63c] ss:$24 sps:$4 sm:$0xff]   ;;  %v11368_v27 = vld [vmem:[%s12755_s18 + $0x338] ss:$24 sps:$4 sm:$0xff]  }
 0x1fd   : > { %7324 = vmatprep.subr.bf16.mxu1 %v11329_v28  ;;  %v11371_v28 = vld [vmem:[%s12755_s18 + $0x638] ss:$24 sps:$4 sm:$0xff]  }
 0x1ff   : > { %7284 = vmatpush2.bf16.msra.mxu0 %v11324_v29  ;;  %v11376_v29 = vld [vmem:[%s12755_s18 + $0x30c] ss:$24 sps:$4 sm:$0xff]  }
 0x200   : > { %7325 = vmatpush2.bf16.msra.mxu1 %v11327_v30  ;;  %7335 = vmatprep.subr.bf16.mxu0 %v11334_v31  ;;  %v11379_v30 = vld [vmem:[%s12755_s18 + $0x60c] ss:$24 sps:$4 sm:$0xff]   ;;  %v11374_v31 = vld [vmem:[%s12755_s18 + $0x308] ss:$24 sps:$4 sm:$0xff]  }
 0x201   : > { %7376 = vmatprep.subr.bf16.mxu1 %v11337_v32  ;;  %v11377_v32 = vld [vmem:[%s12755_s18 + $0x608] ss:$24 sps:$4 sm:$0xff]  }
 0x202   : > { %v7041_v47 = vpop.f32.mrf.mxu0  ;;  %7286 = vmatmul.mubr.bf16.vlgmr.msra.gmra.mxu0 %v13307_v35 }
 0x203   : > { %7327 = vmatmul.mubr.bf16.vlgmr.msra.gmra.mxu1 %v12854_v7  ;;  %v7082_v51 = vpop.f32.mrf.mxu1  ;;  %v7042_v45 = vadd.f32 %v7041_v47, %v13241_v3  ;;  %7336 = vmatpush1.bf16.msra.mxu0 %v11332_v33  ;;  %v11382_v33 = vld [vmem:[%s12755_s18 + $0x5dc] ss:$24 sps:$4 sm:$0xff]   ;;  %v11386_v47 = vld [vmem:[%s12755_s18 + $0x5a8] ss:$24 sps:$4 sm:$0xff]  }
 0x204   : > { %7377 = vmatpush1.bf16.msra.mxu1 %v11335_v34  ;;  %v7043_v53 = vpop.f32.mrf.mxu0  ;;  %7337 = vmatprep.subr.bf16.mxu0 %v11340_v36  ;;  %v11385_v34 = vld [vmem:[%s12755_s18 + $0x8dc] ss:$24 sps:$4 sm:$0xff]   ;;  %v11380_v36 = vld [vmem:[%s12755_s18 + $0x5d8] ss:$24 sps:$4 sm:$0xff]  }
 0x205   : > { %v7084_v54 = vpop.f32.mrf.mxu1  ;;  %7378 = vmatprep.subr.bf16.mxu1 %v11343_v43  ;;  %v7044_v62 = vadd.f32 %v7043_v53, %v13247_v10  ;;  %v13319_v57 = vadd.f32 %v7082_v51, %v7042_v45  ;;  %7367 = vmatprep.mubr.bf16.mxu0 %v12832_v52  ;;  %v11352_v10 = vld [vmem:[%s12755_s18 + $0x3cc] ss:$24 sps:$4 sm:$0xff]   ;;  %v11383_v43 = vld [vmem:[%s12755_s18 + $0x8d8] ss:$24 sps:$4 sm:$0xff]   ;;  %v11389_v51 = vld [vmem:[%s12755_s18 + $0x8a8] ss:$24 sps:$4 sm:$0xff]  }
 0x206   : > { %7408 = vmatprep.mubr.bf16.mxu1 %v12894_v37  ;;  %v7045_v3 = vpop.f32.mrf.mxu0  ;;  %v11394_v45 = vld [vmem:[%s12755_s18 + $0x57c] ss:$24 sps:$4 sm:$0xff]  }
 0x207   : > { %v7086_v0 = vpop.f32.mrf.mxu1  ;;  %v13325_v1 = vadd.f32 %v7084_v54, %v7044_v62  ;;  %7338 = vmatpush1.bf16.msra.mxu0 %v11338_v44  ;;  %v11388_v44 = vld [vmem:[%s12755_s18 + $0x5ac] ss:$24 sps:$4 sm:$0xff]   ;;  %v11397_v53 = vld [vmem:[%s12755_s18 + $0x87c] ss:$24 sps:$4 sm:$0xff]   ;;  %v11392_v54 = vld [vmem:[%s12755_s18 + $0x578] ss:$24 sps:$4 sm:$0xff]  }
 0x208   : > { %7379 = vmatpush1.bf16.msra.mxu1 %v11341_v46  ;;  %v7046_v2 = vpop.f32.mrf.mxu0  ;;  %7339 = vmatprep.subr.bf16.mxu0 %v11346_v55  ;;  %v11391_v46 = vld [vmem:[%s12755_s18 + $0x8ac] ss:$24 sps:$4 sm:$0xff]   ;;  %v11395_v55 = vld [vmem:[%s12755_s18 + $0x878] ss:$24 sps:$4 sm:$0xff]   ;;  %v11406_v3 = vld [vmem:[%s12755_s18 + $0x51c] ss:$24 sps:$4 sm:$0xff]  }
 0x209   : > { %7380 = vmatprep.subr.bf16.mxu1 %v11349_v59  ;;  %v7087_v5 = vpop.f32.mrf.mxu1  ;;  %v11400_v59 = vld [vmem:[%s12755_s18 + $0x54c] ss:$24 sps:$4 sm:$0xff]   ;;  %v11409_v0 = vld [vmem:[%s12755_s18 + $0x81c] ss:$24 sps:$4 sm:$0xff]   ;;  %v11404_v2 = vld [vmem:[%s12755_s18 + $0x518] ss:$24 sps:$4 sm:$0xff]  }
 0x20a   : > { %v11403_v62 = vld [vmem:[%s12755_s18 + $0x84c] ss:$24 sps:$4 sm:$0xff]  }
 0x20b   : > { %7340 = vmatpush1.bf16.msra.mxu0 %v11344_v58  ;;  %v11398_v58 = vld [vmem:[%s12755_s18 + $0x548] ss:$24 sps:$4 sm:$0xff]   ;;  %v11415_v5 = vld [vmem:[%s12755_s18 + $0x7ec] ss:$24 sps:$4 sm:$0xff]  }
 0x20c   : > { %7381 = vmatpush1.bf16.msra.mxu1 %v11347_v63  ;;  %7341 = vmatprep.subr.bf16.mxu0 %v11352_v10  ;;  %v11401_v63 = vld [vmem:[%s12755_s18 + $0x848] ss:$24 sps:$4 sm:$0xff]   ;;  %v11407_v10 = vld [vmem:[%s12755_s18 + $0x818] ss:$24 sps:$4 sm:$0xff]  }
 0x20d   : > { %7382 = vmatprep.subr.bf16.mxu1 %v11355_v4  ;;  %v11412_v4 = vld [vmem:[%s12755_s18 + $0x4ec] ss:$24 sps:$4 sm:$0xff]  }
 0x20f   : > { %7342 = vmatpush1.bf16.msra.mxu0 %v11350_v6  ;;  %v11410_v6 = vld [vmem:[%s12755_s18 + $0x4e8] ss:$24 sps:$4 sm:$0xff]  }
 0x210   : > { %7383 = vmatpush1.bf16.msra.mxu1 %v11353_v9  ;;  %7343 = vmatprep.subr.bf16.mxu0 %v11358_v11  ;;  %v11413_v9 = vld [vmem:[%s12755_s18 + $0x7e8] ss:$24 sps:$4 sm:$0xff]   ;;  %v11418_v11 = vld [vmem:[%s12755_s18 + $0x4bc] ss:$24 sps:$4 sm:$0xff]  }
 0x211   : > { %7384 = vmatprep.subr.bf16.mxu1 %v11361_v14  ;;  %v11421_v14 = vld [vmem:[%s12755_s18 + $0x7bc] ss:$24 sps:$4 sm:$0xff]  }
 0x213   : > { %7344 = vmatpush1.bf16.msra.mxu0 %v11356_v12  ;;  %v11416_v12 = vld [vmem:[%s12755_s18 + $0x4b8] ss:$24 sps:$4 sm:$0xff]  }
 0x214   : > { %7385 = vmatpush1.bf16.msra.mxu1 %v11359_v13  ;;  %7345 = vmatprep.subr.bf16.mxu0 %v11364_v15  ;;  %v11419_v13 = vld [vmem:[%s12755_s18 + $0x7b8] ss:$24 sps:$4 sm:$0xff]   ;;  %v11424_v15 = vld [vmem:[%s12755_s18 + $0x48c] ss:$24 sps:$4 sm:$0xff]  }
 0x215   : > { %7386 = vmatprep.subr.bf16.mxu1 %v11367_v16  ;;  %v11427_v16 = vld [vmem:[%s12755_s18 + $0x78c] ss:$24 sps:$4 sm:$0xff]  }
 0x217   : > { %7346 = vmatpush1.bf16.msra.mxu0 %v11362_v19  ;;  %v11422_v19 = vld [vmem:[%s12755_s18 + $0x488] ss:$24 sps:$4 sm:$0xff]  }
 0x218   : > { %7387 = vmatpush1.bf16.msra.mxu1 %v11365_v20  ;;  %7347 = vmatprep.subr.bf16.mxu0 %v11370_v21  ;;  %v11425_v20 = vld [vmem:[%s12755_s18 + $0x788] ss:$24 sps:$4 sm:$0xff]   ;;  %v11430_v21 = vld [vmem:[%s12755_s18 + $0xa5c] ss:$24 sps:$4 sm:$0xff]  }
 0x219   : > { %7388 = vmatprep.subr.bf16.mxu1 %v11373_v22  ;;  %v11433_v22 = vld [vmem:[%s12755_s18 + $0xd5c] ss:$24 sps:$4 sm:$0xff]  }
 0x21b   : > { %7348 = vmatpush1.bf16.msra.mxu0 %v11368_v27  ;;  %v11428_v27 = vld [vmem:[%s12755_s18 + $0xa58] ss:$24 sps:$4 sm:$0xff]  }
 0x21c   : > { %7389 = vmatpush1.bf16.msra.mxu1 %v11371_v28  ;;  %7349 = vmatprep.subr.bf16.mxu0 %v11376_v29  ;;  %v11431_v28 = vld [vmem:[%s12755_s18 + $0xd58] ss:$24 sps:$4 sm:$0xff]   ;;  %v11436_v29 = vld [vmem:[%s12755_s18 + $0xa2c] ss:$24 sps:$4 sm:$0xff]  }
 0x21d   : > { %7390 = vmatprep.subr.bf16.mxu1 %v11379_v30  ;;  %v11439_v30 = vld [vmem:[%s12755_s18 + $0xd2c] ss:$24 sps:$4 sm:$0xff]  }
 0x21f   : > { %7350 = vmatpush1.bf16.msra.mxu0 %v11374_v31  ;;  %v11434_v31 = vld [vmem:[%s12755_s18 + $0xa28] ss:$24 sps:$4 sm:$0xff]  }
 0x220   : > { %7391 = vmatpush1.bf16.msra.mxu1 %v11377_v32  ;;  %7351 = vmatprep.subr.bf16.mxu0 %v11382_v33  ;;  %v11437_v32 = vld [vmem:[%s12755_s18 + $0xd28] ss:$24 sps:$4 sm:$0xff]  }
 0x221   : > { %7392 = vmatprep.subr.bf16.mxu1 %v11385_v34 }
 0x223   : > { %7352 = vmatpush2.bf16.msra.mxu0 %v11380_v36 }
 0x224   : > { %7393 = vmatpush2.bf16.msra.mxu1 %v11383_v43  ;;  %7353 = vmatprep.subr.bf16.mxu0 %v11388_v44 }
 0x225   : > { %7394 = vmatprep.subr.bf16.mxu1 %v11391_v46  ;;  %v11442_v46 = vld [vmem:[%s12755_s18 + $0x9fc] ss:$24 sps:$4 sm:$0xff]  }
 0x227   : > { %7354 = vmatpush2.bf16.msra.mxu0 %v11386_v47  ;;  %v11445_v47 = vld [vmem:[%s12755_s18 + $0xcfc] ss:$24 sps:$4 sm:$0xff]  }
 0x228   : > { %7395 = vmatpush2.bf16.msra.mxu1 %v11389_v51  ;;  %7355 = vmatprep.subr.bf16.mxu0 %v11394_v45 }
 0x229   : > { %7396 = vmatprep.subr.bf16.mxu1 %v11397_v53  ;;  %v11440_v53 = vld [vmem:[%s12755_s18 + $0x9f8] ss:$24 sps:$4 sm:$0xff]  }
 0x22b   : > { %7356 = vmatpush2.bf16.msra.mxu0 %v11392_v54  ;;  %v11443_v54 = vld [vmem:[%s12755_s18 + $0xcf8] ss:$24 sps:$4 sm:$0xff]  }
 0x22c   : > { %7397 = vmatpush2.bf16.msra.mxu1 %v11395_v55  ;;  %7357 = vmatprep.subr.bf16.mxu0 %v11400_v59 }
 0x22d   : > { %7398 = vmatprep.subr.bf16.mxu1 %v11403_v62 }
 0x22f   : > { %7358 = vmatpush2.bf16.msra.mxu0 %v11398_v58  ;;  %v11451_v58 = vld [vmem:[%s12755_s18 + $0xccc] ss:$24 sps:$4 sm:$0xff]  }
 0x230   : > { %7399 = vmatpush2.bf16.msra.mxu1 %v11401_v63  ;;  %7359 = vmatprep.subr.bf16.mxu0 %v11406_v3  ;;  %v11446_v3 = vld [vmem:[%s12755_s18 + $0x9c8] ss:$24 sps:$4 sm:$0xff]  }
 0x231   : > { %7400 = vmatprep.subr.bf16.mxu1 %v11409_v0  ;;  %v11449_v0 = vld [vmem:[%s12755_s18 + $0xcc8] ss:$24 sps:$4 sm:$0xff]  }
 0x233   : > { %7360 = vmatpush2.bf16.msra.mxu0 %v11404_v2  ;;  %v11454_v2 = vld [vmem:[%s12755_s18 + $0x99c] ss:$24 sps:$4 sm:$0xff]  }
 0x234   : > { %7401 = vmatpush2.bf16.msra.mxu1 %v11407_v10  ;;  %7361 = vmatprep.subr.bf16.mxu0 %v11412_v4  ;;  %v11457_v10 = vld [vmem:[%s12755_s18 + $0xc9c] ss:$24 sps:$4 sm:$0xff]   ;;  %v11452_v4 = vld [vmem:[%s12755_s18 + $0x998] ss:$24 sps:$4 sm:$0xff]  }
 0x235   : > { %7402 = vmatprep.subr.bf16.mxu1 %v11415_v5  ;;  %v11455_v5 = vld [vmem:[%s12755_s18 + $0xc98] ss:$24 sps:$4 sm:$0xff]  }
 0x237   : > { %7362 = vmatpush2.bf16.msra.mxu0 %v11410_v6  ;;  %v11460_v6 = vld [vmem:[%s12755_s18 + $0x96c] ss:$24 sps:$4 sm:$0xff]  }
 0x238   : > { %7403 = vmatpush2.bf16.msra.mxu1 %v11413_v9  ;;  %7363 = vmatprep.subr.bf16.mxu0 %v11418_v11  ;;  %v11463_v9 = vld [vmem:[%s12755_s18 + $0xc6c] ss:$24 sps:$4 sm:$0xff]   ;;  %v11458_v11 = vld [vmem:[%s12755_s18 + $0x968] ss:$24 sps:$4 sm:$0xff]  }
 0x239   : > { %7404 = vmatprep.subr.bf16.mxu1 %v11421_v14  ;;  %v11461_v14 = vld [vmem:[%s12755_s18 + $0xc68] ss:$24 sps:$4 sm:$0xff]  }
 0x23b   : > { %7364 = vmatpush2.bf16.msra.mxu0 %v11416_v12  ;;  %v11466_v12 = vld [vmem:[%s12755_s18 + $0x93c] ss:$24 sps:$4 sm:$0xff]  }
 0x23c   : > { %7405 = vmatpush2.bf16.msra.mxu1 %v11419_v13  ;;  %7365 = vmatprep.subr.bf16.mxu0 %v11424_v15  ;;  %v11469_v13 = vld [vmem:[%s12755_s18 + $0xc3c] ss:$24 sps:$4 sm:$0xff]   ;;  %v11464_v15 = vld [vmem:[%s12755_s18 + $0x938] ss:$24 sps:$4 sm:$0xff]  }
 0x23d   : > { %7406 = vmatprep.subr.bf16.mxu1 %v11427_v16  ;;  %v11467_v16 = vld [vmem:[%s12755_s18 + $0xc38] ss:$24 sps:$4 sm:$0xff]  }
 0x23f   : > { %7366 = vmatpush2.bf16.msra.mxu0 %v11422_v19  ;;  %v11472_v19 = vld [vmem:[%s12755_s18 + $0x90c] ss:$24 sps:$4 sm:$0xff]  }
 0x240   : > { %7407 = vmatpush2.bf16.msra.mxu1 %v11425_v20  ;;  %7417 = vmatprep.subr.bf16.mxu0 %v11430_v21  ;;  %v11475_v20 = vld [vmem:[%s12755_s18 + $0xc0c] ss:$24 sps:$4 sm:$0xff]   ;;  %v11470_v21 = vld [vmem:[%s12755_s18 + $0x908] ss:$24 sps:$4 sm:$0xff]  }
 0x241   : > { %7458 = vmatprep.subr.bf16.mxu1 %v11433_v22  ;;  %v11473_v22 = vld [vmem:[%s12755_s18 + $0xc08] ss:$24 sps:$4 sm:$0xff]  }
 0x242   : > { %v7123_v33 = vpop.f32.mrf.mxu0  ;;  %7368 = vmatmul.mubr.bf16.vlgmr.msra.gmra.mxu0 %v12856_v8 }
 0x243   : > { %7409 = vmatmul.mubr.bf16.vlgmr.msra.gmra.mxu1 %v12942_v17  ;;  %v7164_v34 = vpop.f32.mrf.mxu1  ;;  %v7124_v36 = vadd.f32 %v7123_v33, %v13319_v57  ;;  %7418 = vmatpush1.bf16.msra.mxu0 %v11428_v27  ;;  %v11478_v27 = vld [vmem:[%s12755_s18 + $0xbdc] ss:$24 sps:$4 sm:$0xff]   ;;  %v11482_v33 = vld [vmem:[%s12755_s18 + $0xba8] ss:$24 sps:$4 sm:$0xff]  }
 0x244   : > { %7459 = vmatpush1.bf16.msra.mxu1 %v11431_v28  ;;  %v7125_v43 = vpop.f32.mrf.mxu0  ;;  %7419 = vmatprep.subr.bf16.mxu0 %v11436_v29  ;;  %v11481_v28 = vld [vmem:[%s12755_s18 + $0xedc] ss:$24 sps:$4 sm:$0xff]   ;;  %v11476_v29 = vld [vmem:[%s12755_s18 + $0xbd8] ss:$24 sps:$4 sm:$0xff]  }
 0x245   : > { %v7166_v44 = vpop.f32.mrf.mxu1  ;;  %7460 = vmatprep.subr.bf16.mxu1 %v11439_v30  ;;  %v7126_v51 = vadd.f32 %v7125_v43, %v13325_v1  ;;  %v13393_v45 = vadd.f32 %v7164_v34, %v7124_v36  ;;  %7449 = vmatprep.mubr.bf16.mxu0 %v12898_v38  ;;  %v11448_v1 = vld [vmem:[%s12755_s18 + $0x9cc] ss:$24 sps:$4 sm:$0xff]   ;;  %v11479_v30 = vld [vmem:[%s12755_s18 + $0xed8] ss:$24 sps:$4 sm:$0xff]   ;;  %v11485_v34 = vld [vmem:[%s12755_s18 + $0xea8] ss:$24 sps:$4 sm:$0xff]  }
 0x246   : > { %7490 = vmatprep.mubr.bf16.mxu1 %v12960_v25  ;;  %v7127_v57 = vpop.f32.mrf.mxu0  ;;  %v11490_v36 = vld [vmem:[%s12755_s18 + $0xb7c] ss:$24 sps:$4 sm:$0xff]  }
 0x247   : > { %v7168_v55 = vpop.f32.mrf.mxu1  ;;  %v13399_v59 = vadd.f32 %v7166_v44, %v7126_v51  ;;  %7420 = vmatpush1.bf16.msra.mxu0 %v11434_v31  ;;  %v11484_v31 = vld [vmem:[%s12755_s18 + $0xbac] ss:$24 sps:$4 sm:$0xff]   ;;  %v11493_v43 = vld [vmem:[%s12755_s18 + $0xe7c] ss:$24 sps:$4 sm:$0xff]   ;;  %v11488_v44 = vld [vmem:[%s12755_s18 + $0xb78] ss:$24 sps:$4 sm:$0xff]  }
 0x248   : > { %7461 = vmatpush1.bf16.msra.mxu1 %v11437_v32  ;;  %v7128_v62 = vpop.f32.mrf.mxu0  ;;  %7421 = vmatprep.subr.bf16.mxu0 %v11442_v46  ;;  %v11487_v32 = vld [vmem:[%s12755_s18 + $0xeac] ss:$24 sps:$4 sm:$0xff]   ;;  %v11491_v46 = vld [vmem:[%s12755_s18 + $0xe78] ss:$24 sps:$4 sm:$0xff]   ;;  %v11497_v57 = vld [vmem:[%s12755_s18 + $0xe48] ss:$24 sps:$4 sm:$0xff]  }
 0x249   : > { %7462 = vmatprep.subr.bf16.mxu1 %v11445_v47  ;;  %v7169_v63 = vpop.f32.mrf.mxu1  ;;  %v11496_v47 = vld [vmem:[%s12755_s18 + $0xb4c] ss:$24 sps:$4 sm:$0xff]   ;;  %v11505_v55 = vld [vmem:[%s12755_s18 + $0xe1c] ss:$24 sps:$4 sm:$0xff]   ;;  %v11500_v62 = vld [vmem:[%s12755_s18 + $0xb18] ss:$24 sps:$4 sm:$0xff]  }
 0x24a   : > { %v11499_v51 = vld [vmem:[%s12755_s18 + $0xe4c] ss:$24 sps:$4 sm:$0xff]  }
 0x24b   : > { %7422 = vmatpush1.bf16.msra.mxu0 %v11440_v53  ;;  %v11494_v53 = vld [vmem:[%s12755_s18 + $0xb48] ss:$24 sps:$4 sm:$0xff]   ;;  %v11511_v63 = vld [vmem:[%s12755_s18 + $0xdec] ss:$24 sps:$4 sm:$0xff]  }
 0x24c   : > { %7463 = vmatpush1.bf16.msra.mxu1 %v11443_v54  ;;  %7423 = vmatprep.subr.bf16.mxu0 %v11448_v1  ;;  %v11502_v54 = vld [vmem:[%s12755_s18 + $0xb1c] ss:$24 sps:$4 sm:$0xff]   ;;  %v11503_v1 = vld [vmem:[%s12755_s18 + $0xe18] ss:$24 sps:$4 sm:$0xff]  }
 0x24d   : > { %7464 = vmatprep.subr.bf16.mxu1 %v11451_v58  ;;  %v11508_v58 = vld [vmem:[%s12755_s18 + $0xaec] ss:$24 sps:$4 sm:$0xff]  }
 0x24f   : > { %7424 = vmatpush1.bf16.msra.mxu0 %v11446_v3  ;;  %v11506_v3 = vld [vmem:[%s12755_s18 + $0xae8] ss:$24 sps:$4 sm:$0xff]  }
 0x250   : > { %7465 = vmatpush1.bf16.msra.mxu1 %v11449_v0  ;;  %7425 = vmatprep.subr.bf16.mxu0 %v11454_v2  ;;  %v11509_v0 = vld [vmem:[%s12755_s18 + $0xde8] ss:$24 sps:$4 sm:$0xff]   ;;  %v11514_v2 = vld [vmem:[%s12755_s18 + $0xabc] ss:$24 sps:$4 sm:$0xff]  }
 0x251   : > { %7466 = vmatprep.subr.bf16.mxu1 %v11457_v10  ;;  %v11517_v10 = vld [vmem:[%s12755_s18 + $0xdbc] ss:$24 sps:$4 sm:$0xff]  }
 0x253   : > { %7426 = vmatpush1.bf16.msra.mxu0 %v11452_v4  ;;  %v11512_v4 = vld [vmem:[%s12755_s18 + $0xab8] ss:$24 sps:$4 sm:$0xff]  }
 0x254   : > { %7467 = vmatpush1.bf16.msra.mxu1 %v11455_v5  ;;  %7427 = vmatprep.subr.bf16.mxu0 %v11460_v6  ;;  %v11515_v5 = vld [vmem:[%s12755_s18 + $0xdb8] ss:$24 sps:$4 sm:$0xff]   ;;  %v11520_v6 = vld [vmem:[%s12755_s18 + $0xa8c] ss:$24 sps:$4 sm:$0xff]  }
 0x255   : > { %7468 = vmatprep.subr.bf16.mxu1 %v11463_v9  ;;  %v11523_v9 = vld [vmem:[%s12755_s18 + $0xd8c] ss:$24 sps:$4 sm:$0xff]  }
 0x257   : > { %7428 = vmatpush1.bf16.msra.mxu0 %v11458_v11  ;;  %v11518_v11 = vld [vmem:[%s12755_s18 + $0xa88] ss:$24 sps:$4 sm:$0xff]  }
 0x258   : > { %7469 = vmatpush1.bf16.msra.mxu1 %v11461_v14  ;;  %7429 = vmatprep.subr.bf16.mxu0 %v11466_v12  ;;  %v11521_v14 = vld [vmem:[%s12755_s18 + $0xd88] ss:$24 sps:$4 sm:$0xff]   ;;  %v11526_v12 = vld [vmem:[%s12755_s18 + $0x105c] ss:$24 sps:$4 sm:$0xff]  }
 0x259   : > { %7470 = vmatprep.subr.bf16.mxu1 %v11469_v13  ;;  %v11529_v13 = vld [vmem:[%s12755_s18 + $0x135c] ss:$24 sps:$4 sm:$0xff]  }
 0x25b   : > { %7430 = vmatpush1.bf16.msra.mxu0 %v11464_v15  ;;  %v11524_v15 = vld [vmem:[%s12755_s18 + $0x1058] ss:$24 sps:$4 sm:$0xff]  }
 0x25c   : > { %7471 = vmatpush1.bf16.msra.mxu1 %v11467_v16  ;;  %7431 = vmatprep.subr.bf16.mxu0 %v11472_v19  ;;  %v11527_v16 = vld [vmem:[%s12755_s18 + $0x1358] ss:$24 sps:$4 sm:$0xff]   ;;  %v11532_v19 = vld [vmem:[%s12755_s18 + $0x102c] ss:$24 sps:$4 sm:$0xff]  }
 0x25d   : > { %7472 = vmatprep.subr.bf16.mxu1 %v11475_v20  ;;  %v11535_v20 = vld [vmem:[%s12755_s18 + $0x132c] ss:$24 sps:$4 sm:$0xff]  }
 0x25f   : > { %7432 = vmatpush1.bf16.msra.mxu0 %v11470_v21  ;;  %v11530_v21 = vld [vmem:[%s12755_s18 + $0x1028] ss:$24 sps:$4 sm:$0xff]  }
 0x260   : > { %7473 = vmatpush1.bf16.msra.mxu1 %v11473_v22  ;;  %7433 = vmatprep.subr.bf16.mxu0 %v11478_v27  ;;  %v11533_v22 = vld [vmem:[%s12755_s18 + $0x1328] ss:$24 sps:$4 sm:$0xff]  }
 0x261   : > { %7474 = vmatprep.subr.bf16.mxu1 %v11481_v28 }
 0x263   : > { %7434 = vmatpush2.bf16.msra.mxu0 %v11476_v29 }
 0x264   : > { %7475 = vmatpush2.bf16.msra.mxu1 %v11479_v30  ;;  %7435 = vmatprep.subr.bf16.mxu0 %v11484_v31  ;;  %v11538_v31 = vld [vmem:[%s12755_s18 + $0xffc] ss:$24 sps:$4 sm:$0xff]  }
 0x265   : > { %7476 = vmatprep.subr.bf16.mxu1 %v11487_v32  ;;  %v11541_v32 = vld [vmem:[%s12755_s18 + $0x12fc] ss:$24 sps:$4 sm:$0xff]  }
 0x267   : > { %7436 = vmatpush2.bf16.msra.mxu0 %v11482_v33  ;;  %v11536_v33 = vld [vmem:[%s12755_s18 + $0xff8] ss:$24 sps:$4 sm:$0xff]  }
 0x268   : > { %7477 = vmatpush2.bf16.msra.mxu1 %v11485_v34  ;;  %7437 = vmatprep.subr.bf16.mxu0 %v11490_v36  ;;  %v11539_v34 = vld [vmem:[%s12755_s18 + $0x12f8] ss:$24 sps:$4 sm:$0xff]  }
 0x269   : > { %7478 = vmatprep.subr.bf16.mxu1 %v11493_v43 }
 0x26b   : > { %7438 = vmatpush2.bf16.msra.mxu0 %v11488_v44 }
 0x26c   : > { %7479 = vmatpush2.bf16.msra.mxu1 %v11491_v46  ;;  %7439 = vmatprep.subr.bf16.mxu0 %v11496_v47  ;;  %v11544_v46 = vld [vmem:[%s12755_s18 + $0xfcc] ss:$24 sps:$4 sm:$0xff]  }
 0x26d   : > { %7480 = vmatprep.subr.bf16.mxu1 %v11499_v51  ;;  %v11547_v47 = vld [vmem:[%s12755_s18 + $0x12cc] ss:$24 sps:$4 sm:$0xff]  }
 0x26f   : > { %7440 = vmatpush2.bf16.msra.mxu0 %v11494_v53  ;;  %v11542_v53 = vld [vmem:[%s12755_s18 + $0xfc8] ss:$24 sps:$4 sm:$0xff]  }
 0x270   : > { %7481 = vmatpush2.bf16.msra.mxu1 %v11497_v57  ;;  %7441 = vmatprep.subr.bf16.mxu0 %v11502_v54  ;;  %v11545_v57 = vld [vmem:[%s12755_s18 + $0x12c8] ss:$24 sps:$4 sm:$0xff]   ;;  %v11550_v54 = vld [vmem:[%s12755_s18 + $0xf9c] ss:$24 sps:$4 sm:$0xff]  }
 0x271   : > { %7482 = vmatprep.subr.bf16.mxu1 %v11505_v55  ;;  %v11553_v55 = vld [vmem:[%s12755_s18 + $0x129c] ss:$24 sps:$4 sm:$0xff]  }
 0x273   : > { %7442 = vmatpush2.bf16.msra.mxu0 %v11500_v62  ;;  %v11548_v62 = vld [vmem:[%s12755_s18 + $0xf98] ss:$24 sps:$4 sm:$0xff]  }
 0x274   : > { %7483 = vmatpush2.bf16.msra.mxu1 %v11503_v1  ;;  %7443 = vmatprep.subr.bf16.mxu0 %v11508_v58  ;;  %v11551_v1 = vld [vmem:[%s12755_s18 + $0x1298] ss:$24 sps:$4 sm:$0xff]   ;;  %v11556_v58 = vld [vmem:[%s12755_s18 + $0xf6c] ss:$24 sps:$4 sm:$0xff]  }
 0x275   : > { %7484 = vmatprep.subr.bf16.mxu1 %v11511_v63  ;;  %v11559_v63 = vld [vmem:[%s12755_s18 + $0x126c] ss:$24 sps:$4 sm:$0xff]  }
 0x277   : > { %7444 = vmatpush2.bf16.msra.mxu0 %v11506_v3  ;;  %v11554_v3 = vld [vmem:[%s12755_s18 + $0xf68] ss:$24 sps:$4 sm:$0xff]  }
 0x278   : > { %7485 = vmatpush2.bf16.msra.mxu1 %v11509_v0  ;;  %7445 = vmatprep.subr.bf16.mxu0 %v11514_v2  ;;  %v11557_v0 = vld [vmem:[%s12755_s18 + $0x1268] ss:$24 sps:$4 sm:$0xff]   ;;  %v11562_v2 = vld [vmem:[%s12755_s18 + $0xf3c] ss:$24 sps:$4 sm:$0xff]  }
 0x279   : > { %7486 = vmatprep.subr.bf16.mxu1 %v11517_v10  ;;  %v11565_v10 = vld [vmem:[%s12755_s18 + $0x123c] ss:$24 sps:$4 sm:$0xff]  }
 0x27b   : > { %7446 = vmatpush2.bf16.msra.mxu0 %v11512_v4  ;;  %v11560_v4 = vld [vmem:[%s12755_s18 + $0xf38] ss:$24 sps:$4 sm:$0xff]  }
 0x27c   : > { %7487 = vmatpush2.bf16.msra.mxu1 %v11515_v5  ;;  %7447 = vmatprep.subr.bf16.mxu0 %v11520_v6  ;;  %v11563_v5 = vld [vmem:[%s12755_s18 + $0x1238] ss:$24 sps:$4 sm:$0xff]   ;;  %v11568_v6 = vld [vmem:[%s12755_s18 + $0xf0c] ss:$24 sps:$4 sm:$0xff]  }
 0x27d   : > { %7488 = vmatprep.subr.bf16.mxu1 %v11523_v9  ;;  %v11571_v9 = vld [vmem:[%s12755_s18 + $0x120c] ss:$24 sps:$4 sm:$0xff]  }
 0x27f   : > { %7448 = vmatpush2.bf16.msra.mxu0 %v11518_v11  ;;  %v11566_v11 = vld [vmem:[%s12755_s18 + $0xf08] ss:$24 sps:$4 sm:$0xff]  }
 0x280   : > { %7489 = vmatpush2.bf16.msra.mxu1 %v11521_v14  ;;  %7499 = vmatprep.subr.bf16.mxu0 %v11526_v12  ;;  %v11569_v14 = vld [vmem:[%s12755_s18 + $0x1208] ss:$24 sps:$4 sm:$0xff]   ;;  %v11574_v12 = vld [vmem:[%s12755_s18 + $0x11dc] ss:$24 sps:$4 sm:$0xff]  }
 0x281   : > { %7540 = vmatprep.subr.bf16.mxu1 %v11529_v13  ;;  %v11577_v13 = vld [vmem:[%s12755_s18 + $0x14dc] ss:$24 sps:$4 sm:$0xff]  }
 0x282   : > { %v13461_v27 = vpop.f32.mrf.mxu0  ;;  %7450 = vmatmul.mubr.bf16.vlgmr.msra.gmra.mxu0 %v12946_v18 }
 0x283   : > { %7491 = vmatmul.mubr.bf16.vlgmr.msra.gmra.mxu1 %v13034_v39  ;;  %v13465_v28 = vpop.f32.mrf.mxu1  ;;  %7500 = vmatpush1.bf16.msra.mxu0 %v11524_v15  ;;  %v11572_v15 = vld [vmem:[%s12755_s18 + $0x11d8] ss:$24 sps:$4 sm:$0xff]  }
 0x284   : > { %7541 = vmatpush1.bf16.msra.mxu1 %v11527_v16  ;;  %v13467_v29 = vpop.f32.mrf.mxu0  ;;  %7501 = vmatprep.subr.bf16.mxu0 %v11532_v19  ;;  %v11575_v16 = vld [vmem:[%s12755_s18 + $0x14d8] ss:$24 sps:$4 sm:$0xff]   ;;  %v11580_v19 = vld [vmem:[%s12755_s18 + $0x11ac] ss:$24 sps:$4 sm:$0xff]  }
 0x285   : > { %v13469_v30 = vpop.f32.mrf.mxu1  ;;  %7542 = vmatprep.subr.bf16.mxu1 %v11535_v20  ;;  %7531 = vmatprep.mubr.bf16.mxu0 %v12964_v26  ;;  %v11583_v20 = vld [vmem:[%s12755_s18 + $0x14ac] ss:$24 sps:$4 sm:$0xff]  }
 0x286   : > { %7572 = vmatprep.mubr.bf16.mxu1 %v13050_v23  ;;  %v7209_v36 = vpop.f32.mrf.mxu0 }
 0x287   : > { %v7250_v43 = vpop.f32.mrf.mxu1  ;;  %7502 = vmatpush1.bf16.msra.mxu0 %v11530_v21  ;;  %v11578_v21 = vld [vmem:[%s12755_s18 + $0x11a8] ss:$24 sps:$4 sm:$0xff]   ;;  %v11592_v36 = vld [vmem:[%s12755_s18 + $0x114c] ss:$24 sps:$4 sm:$0xff]  }
 0x288   : > { %7543 = vmatpush1.bf16.msra.mxu1 %v11533_v22  ;;  %v7210_v44 = vpop.f32.mrf.mxu0  ;;  %7503 = vmatprep.subr.bf16.mxu0 %v11538_v31  ;;  %v11581_v22 = vld [vmem:[%s12755_s18 + $0x14a8] ss:$24 sps:$4 sm:$0xff]   ;;  %v11586_v31 = vld [vmem:[%s12755_s18 + $0x117c] ss:$24 sps:$4 sm:$0xff]   ;;  %v11595_v43 = vld [vmem:[%s12755_s18 + $0x144c] ss:$24 sps:$4 sm:$0xff]  }
 0x289   : > { %7544 = vmatprep.subr.bf16.mxu1 %v11541_v32  ;;  %v7251_v51 = vpop.f32.mrf.mxu1  ;;  %v11589_v32 = vld [vmem:[%s12755_s18 + $0x147c] ss:$24 sps:$4 sm:$0xff]   ;;  %v11590_v44 = vld [vmem:[%s12755_s18 + $0x1148] ss:$24 sps:$4 sm:$0xff]  }
 0x28a   : > { %v11601_v51 = vld [vmem:[%s12755_s18 + $0x141c] ss:$24 sps:$4 sm:$0xff]  }
 0x28b   : > { %7504 = vmatpush1.bf16.msra.mxu0 %v11536_v33  ;;  %v11584_v33 = vld [vmem:[%s12755_s18 + $0x1178] ss:$24 sps:$4 sm:$0xff]  }
 0x28c   : > { %7545 = vmatpush1.bf16.msra.mxu1 %v11539_v34  ;;  %7505 = vmatprep.subr.bf16.mxu0 %v11544_v46  ;;  %v11587_v34 = vld [vmem:[%s12755_s18 + $0x1478] ss:$24 sps:$4 sm:$0xff]   ;;  %v11593_v46 = vld [vmem:[%s12755_s18 + $0x1448] ss:$24 sps:$4 sm:$0xff]  }
 0x28d   : > { %7546 = vmatprep.subr.bf16.mxu1 %v11547_v47  ;;  %v11598_v47 = vld [vmem:[%s12755_s18 + $0x111c] ss:$24 sps:$4 sm:$0xff]  }
 0x28f   : > { %7506 = vmatpush1.bf16.msra.mxu0 %v11542_v53  ;;  %v11596_v53 = vld [vmem:[%s12755_s18 + $0x1118] ss:$24 sps:$4 sm:$0xff]  }
 0x290   : > { %7547 = vmatpush1.bf16.msra.mxu1 %v11545_v57  ;;  %7507 = vmatprep.subr.bf16.mxu0 %v11550_v54  ;;  %v11599_v57 = vld [vmem:[%s12755_s18 + $0x1418] ss:$24 sps:$4 sm:$0xff]   ;;  %v11604_v54 = vld [vmem:[%s12755_s18 + $0x10ec] ss:$24 sps:$4 sm:$0xff]  }
 0x291   : > { %7548 = vmatprep.subr.bf16.mxu1 %v11553_v55  ;;  %v11607_v55 = vld [vmem:[%s12755_s18 + $0x13ec] ss:$24 sps:$4 sm:$0xff]  }
 0x293   : > { %7508 = vmatpush1.bf16.msra.mxu0 %v11548_v62  ;;  %v11602_v62 = vld [vmem:[%s12755_s18 + $0x10e8] ss:$24 sps:$4 sm:$0xff]  }
 0x294   : > { %7549 = vmatpush1.bf16.msra.mxu1 %v11551_v1  ;;  %7509 = vmatprep.subr.bf16.mxu0 %v11556_v58  ;;  %v11605_v1 = vld [vmem:[%s12755_s18 + $0x13e8] ss:$24 sps:$4 sm:$0xff]   ;;  %v11610_v58 = vld [vmem:[%s12755_s18 + $0x10bc] ss:$24 sps:$4 sm:$0xff]  }
 0x295   : > { %7550 = vmatprep.subr.bf16.mxu1 %v11559_v63  ;;  %v11613_v63 = vld [vmem:[%s12755_s18 + $0x13bc] ss:$24 sps:$4 sm:$0xff]  }
 0x297   : > { %7510 = vmatpush1.bf16.msra.mxu0 %v11554_v3  ;;  %v11608_v3 = vld [vmem:[%s12755_s18 + $0x10b8] ss:$24 sps:$4 sm:$0xff]  }
 0x298   : > { %7551 = vmatpush1.bf16.msra.mxu1 %v11557_v0  ;;  %7511 = vmatprep.subr.bf16.mxu0 %v11562_v2  ;;  %v11611_v0 = vld [vmem:[%s12755_s18 + $0x13b8] ss:$24 sps:$4 sm:$0xff]   ;;  %v11616_v2 = vld [vmem:[%s12755_s18 + $0x108c] ss:$24 sps:$4 sm:$0xff]  }
 0x299   : > { %7552 = vmatprep.subr.bf16.mxu1 %v11565_v10  ;;  %v11619_v10 = vld [vmem:[%s12755_s18 + $0x138c] ss:$24 sps:$4 sm:$0xff]  }
 0x29b   : > { %7512 = vmatpush1.bf16.msra.mxu0 %v11560_v4  ;;  %v11614_v4 = vld [vmem:[%s12755_s18 + $0x1088] ss:$24 sps:$4 sm:$0xff]  }
 0x29c   : > { %7553 = vmatpush1.bf16.msra.mxu1 %v11563_v5  ;;  %7513 = vmatprep.subr.bf16.mxu0 %v11568_v6  ;;  %v11617_v5 = vld [vmem:[%s12755_s18 + $0x1388] ss:$24 sps:$4 sm:$0xff]   ;;  %v11622_v6 = vld [vmem:[%s12755_s18 + $0x165c] ss:$24 sps:$4 sm:$0xff]  }
 0x29d   : > { %7554 = vmatprep.subr.bf16.mxu1 %v11571_v9  ;;  %v11625_v9 = vld [vmem:[%s12755_s18 + $0x195c] ss:$24 sps:$4 sm:$0xff]  }
 0x29f   : > { %7514 = vmatpush1.bf16.msra.mxu0 %v11566_v11  ;;  %v7206_v11 = vadd.f32 %v13461_v27, %v13393_v45  ;;  %v425_v45 = vld [vmem:[#allocation2 + $0x10] sm:$0xff] }
 0x2a0   : > { %7555 = vmatpush1.bf16.msra.mxu1 %v11569_v14  ;;  %7515 = vmatprep.subr.bf16.mxu0 %v11574_v12  ;;  %v11620_v14 = vld [vmem:[%s12755_s18 + $0x1658] ss:$24 sps:$4 sm:$0xff]  }
 0x2a1   : > { %7556 = vmatprep.subr.bf16.mxu1 %v11577_v13  ;;  %v11623_v12 = vld [vmem:[%s12755_s18 + $0x1958] ss:$24 sps:$4 sm:$0xff]   ;;  %v7208_v13 = vadd.f32 %v13467_v29, %v13399_v59 }
 0x2a3   : > { %7516 = vmatpush2.bf16.msra.mxu0 %v11572_v15  ;;  %v424_v15 = vld [vmem:[#allocation2 + $0x28] sm:$0xff]  ;;  %v7249_v27 = vadd.f32 %v13469_v30, %v7208_v13  ;;  %v11667_v13 = vld [vmem:[%s12755_s18 + $0x180c] ss:$24 sps:$4 sm:$0xff]  }
 0x2a4   : > { %7557 = vmatpush2.bf16.msra.mxu1 %v11575_v16  ;;  %7517 = vmatprep.subr.bf16.mxu0 %v11580_v19  ;;  %v11628_v16 = vld [vmem:[%s12755_s18 + $0x162c] ss:$24 sps:$4 sm:$0xff]  }
 0x2a5   : > { %7558 = vmatprep.subr.bf16.mxu1 %v11583_v20  ;;  %v11631_v19 = vld [vmem:[%s12755_s18 + $0x192c] ss:$24 sps:$4 sm:$0xff]   ;;  %v7247_v20 = vadd.f32 %v13465_v28, %v7206_v11  ;;  %v11634_v28 = vld [vmem:[%s12755_s18 + $0x15fc] ss:$24 sps:$4 sm:$0xff]   ;;  %v11656_v11 = vld [vmem:[%s12755_s18 + $0x1538] ss:$24 sps:$4 sm:$0xff]  }
 0x2a7   : > { %7518 = vmatpush2.bf16.msra.mxu0 %v11578_v21  ;;  %v11626_v21 = vld [vmem:[%s12755_s18 + $0x1628] ss:$24 sps:$4 sm:$0xff]  }
 0x2a8   : > { %7559 = vmatpush2.bf16.msra.mxu1 %v11581_v22  ;;  %7519 = vmatprep.subr.bf16.mxu0 %v11586_v31  ;;  %v11629_v22 = vld [vmem:[%s12755_s18 + $0x1928] ss:$24 sps:$4 sm:$0xff]  }
 0x2a9   : > { %7560 = vmatprep.subr.bf16.mxu1 %v11589_v32 }
 0x2ab   : > { %7520 = vmatpush2.bf16.msra.mxu0 %v11584_v33  ;;  %v11637_v33 = vld [vmem:[%s12755_s18 + $0x18fc] ss:$24 sps:$4 sm:$0xff]  }
 0x2ac   : > { %7561 = vmatpush2.bf16.msra.mxu1 %v11587_v34  ;;  %7521 = vmatprep.subr.bf16.mxu0 %v11592_v36 }
 0x2ad   : > { %7562 = vmatprep.subr.bf16.mxu1 %v11595_v43 }
 0x2af   : > { %7522 = vmatpush2.bf16.msra.mxu0 %v11590_v44  ;;  %v11632_v44 = vld [vmem:[%s12755_s18 + $0x15f8] ss:$24 sps:$4 sm:$0xff]  }
 0x2b0   : > { %7563 = vmatpush2.bf16.msra.mxu1 %v11593_v46  ;;  %7523 = vmatprep.subr.bf16.mxu0 %v11598_v47  ;;  %v11635_v46 = vld [vmem:[%s12755_s18 + $0x18f8] ss:$24 sps:$4 sm:$0xff]  }
 0x2b1   : > { %7564 = vmatprep.subr.bf16.mxu1 %v11601_v51 }
 0x2b3   : > { %7524 = vmatpush2.bf16.msra.mxu0 %v11596_v53 }
 0x2b4   : > { %7565 = vmatpush2.bf16.msra.mxu1 %v11599_v57  ;;  %7525 = vmatprep.subr.bf16.mxu0 %v11604_v54  ;;  %v11640_v57 = vld [vmem:[%s12755_s18 + $0x15cc] ss:$24 sps:$4 sm:$0xff]  }
 0x2b5   : > { %7566 = vmatprep.subr.bf16.mxu1 %v11607_v55  ;;  %v11643_v54 = vld [vmem:[%s12755_s18 + $0x18cc] ss:$24 sps:$4 sm:$0xff]  }
 0x2b7   : > { %7526 = vmatpush2.bf16.msra.mxu0 %v11602_v62  ;;  %v11638_v62 = vld [vmem:[%s12755_s18 + $0x15c8] ss:$24 sps:$4 sm:$0xff]  }
 0x2b8   : > { %7567 = vmatpush2.bf16.msra.mxu1 %v11605_v1  ;;  %7527 = vmatprep.subr.bf16.mxu0 %v11610_v58  ;;  %v11641_v1 = vld [vmem:[%s12755_s18 + $0x18c8] ss:$24 sps:$4 sm:$0xff]   ;;  %v11646_v58 = vld [vmem:[%s12755_s18 + $0x159c] ss:$24 sps:$4 sm:$0xff]  }
 0x2b9   : > { %7568 = vmatprep.subr.bf16.mxu1 %v11613_v63  ;;  %v11649_v63 = vld [vmem:[%s12755_s18 + $0x189c] ss:$24 sps:$4 sm:$0xff]  }
 0x2bb   : > { %7528 = vmatpush2.bf16.msra.mxu0 %v11608_v3  ;;  %v11644_v3 = vld [vmem:[%s12755_s18 + $0x1598] ss:$24 sps:$4 sm:$0xff]  }
 0x2bc   : > { %7569 = vmatpush2.bf16.msra.mxu1 %v11611_v0  ;;  %7529 = vmatprep.subr.bf16.mxu0 %v11616_v2  ;;  %v11647_v0 = vld [vmem:[%s12755_s18 + $0x1898] ss:$24 sps:$4 sm:$0xff]   ;;  %v11652_v2 = vld [vmem:[%s12755_s18 + $0x156c] ss:$24 sps:$4 sm:$0xff]  }
 0x2bd   : > { %7570 = vmatprep.subr.bf16.mxu1 %v11619_v10  ;;  %v11655_v10 = vld [vmem:[%s12755_s18 + $0x186c] ss:$24 sps:$4 sm:$0xff]  }
 0x2bf   : > { %7530 = vmatpush2.bf16.msra.mxu0 %v11614_v4  ;;  %v11650_v4 = vld [vmem:[%s12755_s18 + $0x1568] ss:$24 sps:$4 sm:$0xff]  }
 0x2c0   : > { %7571 = vmatpush2.bf16.msra.mxu1 %v11617_v5  ;;  %7581 = vmatprep.subr.bf16.mxu0 %v11622_v6  ;;  %v11653_v5 = vld [vmem:[%s12755_s18 + $0x1868] ss:$24 sps:$4 sm:$0xff]   ;;  %v11658_v6 = vld [vmem:[%s12755_s18 + $0x153c] ss:$24 sps:$4 sm:$0xff]  }
 0x2c1   : > { %7622 = vmatprep.subr.bf16.mxu1 %v11625_v9  ;;  %v11661_v9 = vld [vmem:[%s12755_s18 + $0x183c] ss:$24 sps:$4 sm:$0xff]  }
 0x2c2   : > { %v7287_v31 = vpop.f32.mrf.mxu0  ;;  %7532 = vmatmul.mubr.bf16.vlgmr.msra.gmra.mxu0 %v13038_v40 }
 0x2c3   : > { %7573 = vmatmul.mubr.bf16.vlgmr.msra.gmra.mxu1 %v13125_v60  ;;  %v13544_v59 = vpop.f32.mrf.mxu1  ;;  %v7288_v29 = vadd.f32 %v7287_v31, %v7247_v20  ;;  %7582 = vmatpush1.bf16.msra.mxu0 %v11620_v14  ;;  %v11659_v14 = vld [vmem:[%s12755_s18 + $0x1838] ss:$24 sps:$4 sm:$0xff]   ;;  %v11673_v20 = vld [vmem:[%s12755_s18 + $0x1adc] ss:$24 sps:$4 sm:$0xff]   ;;  %v11676_v31 = vld [vmem:[%s12755_s18 + $0x17ac] ss:$24 sps:$4 sm:$0xff]  }
 0x2c4   : > { %7623 = vmatpush1.bf16.msra.mxu1 %v11623_v12  ;;  %v7289_v32 = vpop.f32.mrf.mxu0  ;;  %7583 = vmatprep.subr.bf16.mxu0 %v11628_v16  ;;  %v11664_v12 = vld [vmem:[%s12755_s18 + $0x150c] ss:$24 sps:$4 sm:$0xff]   ;;  %v11665_v16 = vld [vmem:[%s12755_s18 + $0x1808] ss:$24 sps:$4 sm:$0xff]  }
 0x2c5   : > { %7624 = vmatprep.subr.bf16.mxu1 %v11631_v19  ;;  %v13549_v34 = vpop.f32.mrf.mxu1  ;;  %v8196_v36 = vadd.f32 %v7288_v29, %v424_v15  ;;  %v7290_v43 = vadd.f32 %v7289_v32, %v7249_v27  ;;  %7613 = vmatprep.mubr.bf16.mxu0 %v13054_v24  ;;  %v11662_v15 = vld [vmem:[%s12755_s18 + $0x1508] ss:$24 sps:$4 sm:$0xff]   ;;  %v11670_v19 = vld [vmem:[%s12755_s18 + $0x17dc] ss:$24 sps:$4 sm:$0xff]  }
 0x2c6   : > { %7654 = vmatprep.mubr.bf16.mxu1 %v13140_v41  ;;  %v7291_v30 = vpop.f32.mrf.mxu0  ;;  %v11674_v27 = vld [vmem:[%s12755_s18 + $0x17a8] ss:$24 sps:$4 sm:$0xff]   ;;  %v11682_v32 = vld [vmem:[%s12755_s18 + $0x177c] ss:$24 sps:$4 sm:$0xff]  }
 0x2c7   : > { %v7332_v47 = vpop.f32.mrf.mxu1  ;;  %8202 = vst [vmem:[#allocation2 + $0x28] sm:$0xff] %v8196_v36  ;;  %v8197_v51 = vadd.f32 %v7290_v43, %v425_v45  ;;  %7584 = vmatpush1.bf16.msra.mxu0 %v11626_v21  ;;  %v11668_v21 = vld [vmem:[%s12755_s18 + $0x17d8] ss:$24 sps:$4 sm:$0xff]   ;;  %v11679_v45 = vld [vmem:[%s12755_s18 + $0x1aac] ss:$24 sps:$4 sm:$0xff]  }
 0x2c8   : > { %7625 = vmatpush1.bf16.msra.mxu1 %v11629_v22  ;;  %v7292_v53 = vpop.f32.mrf.mxu0  ;;  %7585 = vmatprep.subr.bf16.mxu0 %v11634_v28  ;;  %v11671_v22 = vld [vmem:[%s12755_s18 + $0x1ad8] ss:$24 sps:$4 sm:$0xff]   ;;  %v11677_v29 = vld [vmem:[%s12755_s18 + $0x1aa8] ss:$24 sps:$4 sm:$0xff]   ;;  %v11685_v28 = vld [vmem:[%s12755_s18 + $0x1a7c] ss:$24 sps:$4 sm:$0xff]  }
 0x2c9   : > { %7626 = vmatprep.subr.bf16.mxu1 %v11637_v33  ;;  %v7333_v55 = vpop.f32.mrf.mxu1  ;;  %8203 = vst [vmem:[#allocation2 + $0x10] sm:$0xff] %v8197_v51  ;;  %v11680_v33 = vld [vmem:[%s12755_s18 + $0x1778] ss:$24 sps:$4 sm:$0xff]   ;;  %v11688_v43 = vld [vmem:[%s12755_s18 + $0x174c] ss:$24 sps:$4 sm:$0xff]  }
 0x2ca   : > { %v11683_v36 = vld [vmem:[%s12755_s18 + $0x1a78] ss:$24 sps:$4 sm:$0xff]   ;;  %v11689_v30 = vld [vmem:[%s12755_s18 + $0x1a48] ss:$24 sps:$4 sm:$0xff]   ;;  %v11694_v47 = vld [vmem:[%s12755_s18 + $0x171c] ss:$24 sps:$4 sm:$0xff]  }
 0x2cb   : > { %7586 = vmatpush1.bf16.msra.mxu0 %v11632_v44  ;;  %v11691_v44 = vld [vmem:[%s12755_s18 + $0x1a4c] ss:$24 sps:$4 sm:$0xff]   ;;  %v11697_v51 = vld [vmem:[%s12755_s18 + $0x1a1c] ss:$24 sps:$4 sm:$0xff]   ;;  %v11692_v53 = vld [vmem:[%s12755_s18 + $0x1718] ss:$24 sps:$4 sm:$0xff]  }
 0x2cc   : > { %7627 = vmatpush1.bf16.msra.mxu1 %v11635_v46  ;;  %7587 = vmatprep.subr.bf16.mxu0 %v11640_v57  ;;  %v11686_v46 = vld [vmem:[%s12755_s18 + $0x1748] ss:$24 sps:$4 sm:$0xff]   ;;  %v11695_v57 = vld [vmem:[%s12755_s18 + $0x1a18] ss:$24 sps:$4 sm:$0xff]   ;;  %v11703_v55 = vld [vmem:[%s12755_s18 + $0x19ec] ss:$24 sps:$4 sm:$0xff]  }
 0x2cd   : > { %7628 = vmatprep.subr.bf16.mxu1 %v11643_v54  ;;  %v11700_v54 = vld [vmem:[%s12755_s18 + $0x16ec] ss:$24 sps:$4 sm:$0xff]  }
 0x2cf   : > { %7588 = vmatpush1.bf16.msra.mxu0 %v11638_v62  ;;  %v11698_v62 = vld [vmem:[%s12755_s18 + $0x16e8] ss:$24 sps:$4 sm:$0xff]  }
 0x2d0   : > { %7629 = vmatpush1.bf16.msra.mxu1 %v11641_v1  ;;  %7589 = vmatprep.subr.bf16.mxu0 %v11646_v58  ;;  %v11701_v1 = vld [vmem:[%s12755_s18 + $0x19e8] ss:$24 sps:$4 sm:$0xff]   ;;  %v11706_v58 = vld [vmem:[%s12755_s18 + $0x16bc] ss:$24 sps:$4 sm:$0xff]  }
 0x2d1   : > { %7630 = vmatprep.subr.bf16.mxu1 %v11649_v63  ;;  %v11709_v63 = vld [vmem:[%s12755_s18 + $0x19bc] ss:$24 sps:$4 sm:$0xff]  }
 0x2d3   : > { %7590 = vmatpush1.bf16.msra.mxu0 %v11644_v3  ;;  %v11704_v3 = vld [vmem:[%s12755_s18 + $0x16b8] ss:$24 sps:$4 sm:$0xff]  }
 0x2d4   : > { %7631 = vmatpush1.bf16.msra.mxu1 %v11647_v0  ;;  %7591 = vmatprep.subr.bf16.mxu0 %v11652_v2  ;;  %v11707_v0 = vld [vmem:[%s12755_s18 + $0x19b8] ss:$24 sps:$4 sm:$0xff]   ;;  %v11712_v2 = vld [vmem:[%s12755_s18 + $0x168c] ss:$24 sps:$4 sm:$0xff]  }
 0x2d5   : > { %7632 = vmatprep.subr.bf16.mxu1 %v11655_v10  ;;  %v11715_v10 = vld [vmem:[%s12755_s18 + $0x198c] ss:$24 sps:$4 sm:$0xff]  }
 0x2d7   : > { %7592 = vmatpush1.bf16.msra.mxu0 %v11650_v4  ;;  %v11710_v4 = vld [vmem:[%s12755_s18 + $0x1688] ss:$24 sps:$4 sm:$0xff]  }
 0x2d8   : > { %7633 = vmatpush1.bf16.msra.mxu1 %v11653_v5  ;;  %7593 = vmatprep.subr.bf16.mxu0 %v11658_v6  ;;  %v11713_v5 = vld [vmem:[%s12755_s18 + $0x1988] ss:$24 sps:$4 sm:$0xff]   ;;  %v11718_v6 = vld [vmem:[%s12755_s18 + $0x1c5c] ss:$24 sps:$4 sm:$0xff]  }
 0x2d9   : > { %7634 = vmatprep.subr.bf16.mxu1 %v11661_v9  ;;  %v11721_v9 = vld [vmem:[%s12755_s18 + $0x1f5c] ss:$24 sps:$4 sm:$0xff]  }
 0x2db   : > { %7594 = vmatpush1.bf16.msra.mxu0 %v11656_v11  ;;  %v11716_v11 = vld [vmem:[%s12755_s18 + $0x1c58] ss:$24 sps:$4 sm:$0xff]  }
 0x2dc   : > { %7635 = vmatpush1.bf16.msra.mxu1 %v11659_v14  ;;  %7595 = vmatprep.subr.bf16.mxu0 %v11664_v12  ;;  %v11719_v14 = vld [vmem:[%s12755_s18 + $0x1f58] ss:$24 sps:$4 sm:$0xff]   ;;  %v11724_v12 = vld [vmem:[%s12755_s18 + $0x1c2c] ss:$24 sps:$4 sm:$0xff]  }
 0x2dd   : > { %7636 = vmatprep.subr.bf16.mxu1 %v11667_v13  ;;  %v11727_v13 = vld [vmem:[%s12755_s18 + $0x1f2c] ss:$24 sps:$4 sm:$0xff]  }
 0x2df   : > { %7596 = vmatpush1.bf16.msra.mxu0 %v11662_v15 }
 0x2e0   : > { %7637 = vmatpush1.bf16.msra.mxu1 %v11665_v16  ;;  %7597 = vmatprep.subr.bf16.mxu0 %v11670_v19 }
 0x2e1   : > { %7638 = vmatprep.subr.bf16.mxu1 %v11673_v20  ;;  %v11722_v20 = vld [vmem:[%s12755_s18 + $0x1c28] ss:$24 sps:$4 sm:$0xff]  }
 0x2e3   : > { %7598 = vmatpush2.bf16.msra.mxu0 %v11668_v21  ;;  %v11725_v21 = vld [vmem:[%s12755_s18 + $0x1f28] ss:$24 sps:$4 sm:$0xff]  }
 0x2e4   : > { %7639 = vmatpush2.bf16.msra.mxu1 %v11671_v22  ;;  %7599 = vmatprep.subr.bf16.mxu0 %v11676_v31 }
 0x2e5   : > { %7640 = vmatprep.subr.bf16.mxu1 %v11679_v45  ;;  %v11730_v45 = vld [vmem:[%s12755_s18 + $0x1bfc] ss:$24 sps:$4 sm:$0xff]  }
 0x2e7   : > { %7600 = vmatpush2.bf16.msra.mxu0 %v11674_v27  ;;  %v11733_v27 = vld [vmem:[%s12755_s18 + $0x1efc] ss:$24 sps:$4 sm:$0xff]  }
 0x2e8   : > { %7641 = vmatpush2.bf16.msra.mxu1 %v11677_v29  ;;  %7601 = vmatprep.subr.bf16.mxu0 %v11682_v32 }
 0x2e9   : > { %7642 = vmatprep.subr.bf16.mxu1 %v11685_v28 }
 0x2eb   : > { %7602 = vmatpush2.bf16.msra.mxu0 %v11680_v33 }
 0x2ec   : > { %7643 = vmatpush2.bf16.msra.mxu1 %v11683_v36  ;;  %7603 = vmatprep.subr.bf16.mxu0 %v11688_v43  ;;  %v11728_v36 = vld [vmem:[%s12755_s18 + $0x1bf8] ss:$24 sps:$4 sm:$0xff]  }
 0x2ed   : > { %7644 = vmatprep.subr.bf16.mxu1 %v11691_v44  ;;  %v11731_v43 = vld [vmem:[%s12755_s18 + $0x1ef8] ss:$24 sps:$4 sm:$0xff]  }
 0x2ef   : > { %7604 = vmatpush2.bf16.msra.mxu0 %v11686_v46  ;;  %v11739_v46 = vld [vmem:[%s12755_s18 + $0x1ecc] ss:$24 sps:$4 sm:$0xff]  }
 0x2f0   : > { %7645 = vmatpush2.bf16.msra.mxu1 %v11689_v30  ;;  %7605 = vmatprep.subr.bf16.mxu0 %v11694_v47  ;;  %v11734_v47 = vld [vmem:[%s12755_s18 + $0x1bc8] ss:$24 sps:$4 sm:$0xff]  }
 0x2f1   : > { %7646 = vmatprep.subr.bf16.mxu1 %v11697_v51  ;;  %v11737_v51 = vld [vmem:[%s12755_s18 + $0x1ec8] ss:$24 sps:$4 sm:$0xff]  }
 0x2f3   : > { %7606 = vmatpush2.bf16.msra.mxu0 %v11692_v53  ;;  %v11742_v53 = vld [vmem:[%s12755_s18 + $0x1b9c] ss:$24 sps:$4 sm:$0xff]  }
 0x2f4   : > { %7647 = vmatpush2.bf16.msra.mxu1 %v11695_v57  ;;  %7607 = vmatprep.subr.bf16.mxu0 %v11700_v54  ;;  %v11745_v57 = vld [vmem:[%s12755_s18 + $0x1e9c] ss:$24 sps:$4 sm:$0xff]   ;;  %v11740_v54 = vld [vmem:[%s12755_s18 + $0x1b98] ss:$24 sps:$4 sm:$0xff]  }
 0x2f5   : > { %7648 = vmatprep.subr.bf16.mxu1 %v11703_v55  ;;  %v11743_v55 = vld [vmem:[%s12755_s18 + $0x1e98] ss:$24 sps:$4 sm:$0xff]  }
 0x2f7   : > { %7608 = vmatpush2.bf16.msra.mxu0 %v11698_v62  ;;  %v11748_v62 = vld [vmem:[%s12755_s18 + $0x1b6c] ss:$24 sps:$4 sm:$0xff]  }
 0x2f8   : > { %7649 = vmatpush2.bf16.msra.mxu1 %v11701_v1  ;;  %7609 = vmatprep.subr.bf16.mxu0 %v11706_v58  ;;  %v11751_v1 = vld [vmem:[%s12755_s18 + $0x1e6c] ss:$24 sps:$4 sm:$0xff]   ;;  %v11746_v58 = vld [vmem:[%s12755_s18 + $0x1b68] ss:$24 sps:$4 sm:$0xff]  }
 0x2f9   : > { %7650 = vmatprep.subr.bf16.mxu1 %v11709_v63  ;;  %v11749_v63 = vld [vmem:[%s12755_s18 + $0x1e68] ss:$24 sps:$4 sm:$0xff]  }
 0x2fb   : > { %7610 = vmatpush2.bf16.msra.mxu0 %v11704_v3  ;;  %v11754_v3 = vld [vmem:[%s12755_s18 + $0x1b3c] ss:$24 sps:$4 sm:$0xff]  }
 0x2fc   : > { %7651 = vmatpush2.bf16.msra.mxu1 %v11707_v0  ;;  %7611 = vmatprep.subr.bf16.mxu0 %v11712_v2  ;;  %v11757_v0 = vld [vmem:[%s12755_s18 + $0x1e3c] ss:$24 sps:$4 sm:$0xff]   ;;  %v11752_v2 = vld [vmem:[%s12755_s18 + $0x1b38] ss:$24 sps:$4 sm:$0xff]  }
 0x2fd   : > { %7652 = vmatprep.subr.bf16.mxu1 %v11715_v10  ;;  %v11755_v10 = vld [vmem:[%s12755_s18 + $0x1e38] ss:$24 sps:$4 sm:$0xff]  }
 0x2ff   : > { %7612 = vmatpush2.bf16.msra.mxu0 %v11710_v4  ;;  %v11760_v4 = vld [vmem:[%s12755_s18 + $0x1b0c] ss:$24 sps:$4 sm:$0xff]  }
 0x300   : > { %7653 = vmatpush2.bf16.msra.mxu1 %v11713_v5  ;;  %7663 = vmatprep.subr.bf16.mxu0 %v11718_v6  ;;  %v11763_v5 = vld [vmem:[%s12755_s18 + $0x1e0c] ss:$24 sps:$4 sm:$0xff]   ;;  %v11758_v6 = vld [vmem:[%s12755_s18 + $0x1b08] ss:$24 sps:$4 sm:$0xff]  }
 0x301   : > { %7704 = vmatprep.subr.bf16.mxu1 %v11721_v9  ;;  %v11761_v9 = vld [vmem:[%s12755_s18 + $0x1e08] ss:$24 sps:$4 sm:$0xff]  }
 0x302   : > { %v7369_v15 = vpop.f32.mrf.mxu0  ;;  %7614 = vmatmul.mubr.bf16.vlgmr.msra.gmra.mxu0 %v13129_v61 }
 0x303   : > { %7655 = vmatmul.mubr.bf16.vlgmr.msra.gmra.mxu1 %v13221_v49  ;;  %v7410_v16 = vpop.f32.mrf.mxu1  ;;  %v7370_v19 = vadd.f32 %v7369_v15, %v13544_v59  ;;  %7664 = vmatpush1.bf16.msra.mxu0 %v11716_v11  ;;  %v11766_v11 = vld [vmem:[%s12755_s18 + $0x1ddc] ss:$24 sps:$4 sm:$0xff]   ;;  %v11772_v15 = vld [vmem:[%s12755_s18 + $0x1dac] ss:$24 sps:$4 sm:$0xff]  }
 0x304   : > { %7705 = vmatpush1.bf16.msra.mxu1 %v11719_v14  ;;  %v7371_v22 = vpop.f32.mrf.mxu0  ;;  %7665 = vmatprep.subr.bf16.mxu0 %v11724_v12  ;;  %v11769_v14 = vld [vmem:[%s12755_s18 + $0x20dc] ss:$24 sps:$4 sm:$0xff]   ;;  %v11764_v12 = vld [vmem:[%s12755_s18 + $0x1dd8] ss:$24 sps:$4 sm:$0xff]  }
 0x305   : > { %v7412_v31 = vpop.f32.mrf.mxu1  ;;  %7706 = vmatprep.subr.bf16.mxu1 %v11727_v13  ;;  %v7372_v29 = vadd.f32 %v7371_v22, %v13549_v34  ;;  %v13621_v32 = vadd.f32 %v7410_v16, %v7370_v19  ;;  %7695 = vmatprep.mubr.bf16.mxu0 %v13144_v42  ;;  %v11736_v34 = vld [vmem:[%s12755_s18 + $0x1bcc] ss:$24 sps:$4 sm:$0xff]   ;;  %v11767_v13 = vld [vmem:[%s12755_s18 + $0x20d8] ss:$24 sps:$4 sm:$0xff]   ;;  %v11770_v19 = vld [vmem:[%s12755_s18 + $0x1da8] ss:$24 sps:$4 sm:$0xff]  }
 0x306   : > { %7736 = vmatprep.mubr.bf16.mxu1 %v13233_v56  ;;  %v7373_v59 = vpop.f32.mrf.mxu0  ;;  %v11775_v16 = vld [vmem:[%s12755_s18 + $0x20ac] ss:$24 sps:$4 sm:$0xff]   ;;  %v11781_v22 = vld [vmem:[%s12755_s18 + $0x207c] ss:$24 sps:$4 sm:$0xff]  }
 0x307   : > { %v7414_v28 = vpop.f32.mrf.mxu1  ;;  %v13625_v33 = vadd.f32 %v7412_v31, %v7372_v29  ;;  %7666 = vmatpush1.bf16.msra.mxu0 %v11722_v20  ;;  %v11773_v20 = vld [vmem:[%s12755_s18 + $0x20a8] ss:$24 sps:$4 sm:$0xff]   ;;  %v11776_v31 = vld [vmem:[%s12755_s18 + $0x1d78] ss:$24 sps:$4 sm:$0xff]   ;;  %v11787_v29 = vld [vmem:[%s12755_s18 + $0x204c] ss:$24 sps:$4 sm:$0xff]  }
 0x308   : > { %7707 = vmatpush1.bf16.msra.mxu1 %v11725_v21  ;;  %v7374_v44 = vpop.f32.mrf.mxu0  ;;  %7667 = vmatprep.subr.bf16.mxu0 %v11730_v45  ;;  %v11778_v21 = vld [vmem:[%s12755_s18 + $0x1d7c] ss:$24 sps:$4 sm:$0xff]   ;;  %v11779_v45 = vld [vmem:[%s12755_s18 + $0x2078] ss:$24 sps:$4 sm:$0xff]   ;;  %v11782_v59 = vld [vmem:[%s12755_s18 + $0x1d48] ss:$24 sps:$4 sm:$0xff]  }
 0x309   : > { %7708 = vmatprep.subr.bf16.mxu1 %v11733_v27  ;;  %v7415_v30 = vpop.f32.mrf.mxu1  ;;  %v11784_v27 = vld [vmem:[%s12755_s18 + $0x1d4c] ss:$24 sps:$4 sm:$0xff]   ;;  %v11785_v28 = vld [vmem:[%s12755_s18 + $0x2048] ss:$24 sps:$4 sm:$0xff]   ;;  %v11788_v44 = vld [vmem:[%s12755_s18 + $0x1d18] ss:$24 sps:$4 sm:$0xff]  }
 0x30a   : > { %v11799_v30 = vld [vmem:[%s12755_s18 + $0x1fec] ss:$24 sps:$4 sm:$0xff]  }
 0x30b   : > { %7668 = vmatpush1.bf16.msra.mxu0 %v11728_v36  ;;  %v11790_v36 = vld [vmem:[%s12755_s18 + $0x1d1c] ss:$24 sps:$4 sm:$0xff]  }
 0x30c   : > { %7709 = vmatpush1.bf16.msra.mxu1 %v11731_v43  ;;  %7669 = vmatprep.subr.bf16.mxu0 %v11736_v34  ;;  %v11793_v43 = vld [vmem:[%s12755_s18 + $0x201c] ss:$24 sps:$4 sm:$0xff]   ;;  %v11791_v34 = vld [vmem:[%s12755_s18 + $0x2018] ss:$24 sps:$4 sm:$0xff]  }
 0x30d   : > { %7710 = vmatprep.subr.bf16.mxu1 %v11739_v46  ;;  %v11796_v46 = vld [vmem:[%s12755_s18 + $0x1cec] ss:$24 sps:$4 sm:$0xff]  }
 0x30f   : > { %7670 = vmatpush1.bf16.msra.mxu0 %v11734_v47  ;;  %v11794_v47 = vld [vmem:[%s12755_s18 + $0x1ce8] ss:$24 sps:$4 sm:$0xff]  }
 0x310   : > { %7711 = vmatpush1.bf16.msra.mxu1 %v11737_v51  ;;  %7671 = vmatprep.subr.bf16.mxu0 %v11742_v53  ;;  %v11797_v51 = vld [vmem:[%s12755_s18 + $0x1fe8] ss:$24 sps:$4 sm:$0xff]   ;;  %v11802_v53 = vld [vmem:[%s12755_s18 + $0x1cbc] ss:$24 sps:$4 sm:$0xff]  }
 0x311   : > { %7712 = vmatprep.subr.bf16.mxu1 %v11745_v57  ;;  %v11805_v57 = vld [vmem:[%s12755_s18 + $0x1fbc] ss:$24 sps:$4 sm:$0xff]  }
 0x313   : > { %7672 = vmatpush1.bf16.msra.mxu0 %v11740_v54  ;;  %v11800_v54 = vld [vmem:[%s12755_s18 + $0x1cb8] ss:$24 sps:$4 sm:$0xff]  }
 0x314   : > { %7713 = vmatpush1.bf16.msra.mxu1 %v11743_v55  ;;  %7673 = vmatprep.subr.bf16.mxu0 %v11748_v62  ;;  %v11803_v55 = vld [vmem:[%s12755_s18 + $0x1fb8] ss:$24 sps:$4 sm:$0xff]   ;;  %v11808_v62 = vld [vmem:[%s12755_s18 + $0x1c8c] ss:$24 sps:$4 sm:$0xff]  }
 0x315   : > { %7714 = vmatprep.subr.bf16.mxu1 %v11751_v1  ;;  %v11811_v1 = vld [vmem:[%s12755_s18 + $0x1f8c] ss:$24 sps:$4 sm:$0xff]  }
 0x317   : > { %7674 = vmatpush1.bf16.msra.mxu0 %v11746_v58  ;;  %v11806_v58 = vld [vmem:[%s12755_s18 + $0x1c88] ss:$24 sps:$4 sm:$0xff]  }
 0x318   : > { %7715 = vmatpush1.bf16.msra.mxu1 %v11749_v63  ;;  %7675 = vmatprep.subr.bf16.mxu0 %v11754_v3  ;;  %v11809_v63 = vld [vmem:[%s12755_s18 + $0x1f88] ss:$24 sps:$4 sm:$0xff]   ;;  %v11814_v3 = vld [vmem:[%s12755_s18 + $0x164] ss:$24 sps:$4 sm:$0xff]  }
 0x319   : > { %7716 = vmatprep.subr.bf16.mxu1 %v11757_v0  ;;  %v11817_v0 = vld [vmem:[%s12755_s18 + $0x464] ss:$24 sps:$4 sm:$0xff]  }
 0x31b   : > { %7676 = vmatpush1.bf16.msra.mxu0 %v11752_v2  ;;  %v11812_v2 = vld [vmem:[%s12755_s18 + $0x160] ss:$24 sps:$4 sm:$0xff]  }
 0x31c   : > { %7717 = vmatpush1.bf16.msra.mxu1 %v11755_v10  ;;  %7677 = vmatprep.subr.bf16.mxu0 %v11760_v4  ;;  %v11815_v10 = vld [vmem:[%s12755_s18 + $0x460] ss:$24 sps:$4 sm:$0xff]   ;;  %v11820_v4 = vld [vmem:[%s12755_s18 + $0x134] ss:$24 sps:$4 sm:$0xff]  }
 0x31d   : > { %7718 = vmatprep.subr.bf16.mxu1 %v11763_v5  ;;  %v11823_v5 = vld [vmem:[%s12755_s18 + $0x434] ss:$24 sps:$4 sm:$0xff]  }
 0x31f   : > { %7678 = vmatpush1.bf16.msra.mxu0 %v11758_v6 }
 0x320   : > { %7719 = vmatpush1.bf16.msra.mxu1 %v11761_v9  ;;  %7679 = vmatprep.subr.bf16.mxu0 %v11766_v11 }
 0x321   : > { %7720 = vmatprep.subr.bf16.mxu1 %v11769_v14  ;;  %v11818_v14 = vld [vmem:[%s12755_s18 + $0x130] ss:$24 sps:$4 sm:$0xff]  }
 0x323   : > { %7680 = vmatpush2.bf16.msra.mxu0 %v11764_v12  ;;  %v11821_v12 = vld [vmem:[%s12755_s18 + $0x430] ss:$24 sps:$4 sm:$0xff]  }
 0x324   : > { %7721 = vmatpush2.bf16.msra.mxu1 %v11767_v13  ;;  %7681 = vmatprep.subr.bf16.mxu0 %v11772_v15 }
 0x325   : > { %7722 = vmatprep.subr.bf16.mxu1 %v11775_v16  ;;  %v11826_v16 = vld [vmem:[%s12755_s18 + $0x104] ss:$24 sps:$4 sm:$0xff]  }
 0x327   : > { %7682 = vmatpush2.bf16.msra.mxu0 %v11770_v19  ;;  %v11829_v19 = vld [vmem:[%s12755_s18 + $0x404] ss:$24 sps:$4 sm:$0xff]  }
 0x328   : > { %7723 = vmatpush2.bf16.msra.mxu1 %v11773_v20  ;;  %7683 = vmatprep.subr.bf16.mxu0 %v11778_v21 }
 0x329   : > { %7724 = vmatprep.subr.bf16.mxu1 %v11781_v22 }
 0x32b   : > { %7684 = vmatpush2.bf16.msra.mxu0 %v11776_v31 }
 0x32c   : > { %7725 = vmatpush2.bf16.msra.mxu1 %v11779_v45  ;;  %7685 = vmatprep.subr.bf16.mxu0 %v11784_v27  ;;  %v11824_v45 = vld [vmem:[%s12755_s18 + $0x100] ss:$24 sps:$4 sm:$0xff]  }
 0x32d   : > { %7726 = vmatprep.subr.bf16.mxu1 %v11787_v29  ;;  %v11827_v27 = vld [vmem:[%s12755_s18 + $0x400] ss:$24 sps:$4 sm:$0xff]  }
 0x32f   : > { %7686 = vmatpush2.bf16.msra.mxu0 %v11782_v59  ;;  %v11830_v59 = vld [vmem:[%s12755_s18 + $0xd0] ss:$24 sps:$4 sm:$0xff]  }
 0x330   : > { %7727 = vmatpush2.bf16.msra.mxu1 %v11785_v28  ;;  %7687 = vmatprep.subr.bf16.mxu0 %v11790_v36  ;;  %v11833_v28 = vld [vmem:[%s12755_s18 + $0x3d0] ss:$24 sps:$4 sm:$0xff]   ;;  %v11838_v36 = vld [vmem:[%s12755_s18 + $0xa4] ss:$24 sps:$4 sm:$0xff]  }
 0x331   : > { %7728 = vmatprep.subr.bf16.mxu1 %v11793_v43  ;;  %v11841_v43 = vld [vmem:[%s12755_s18 + $0x3a4] ss:$24 sps:$4 sm:$0xff]  }
 0x333   : > { %7688 = vmatpush2.bf16.msra.mxu0 %v11788_v44  ;;  %v11836_v44 = vld [vmem:[%s12755_s18 + $0xa0] ss:$24 sps:$4 sm:$0xff]  }
 0x334   : > { %7729 = vmatpush2.bf16.msra.mxu1 %v11791_v34  ;;  %7689 = vmatprep.subr.bf16.mxu0 %v11796_v46  ;;  %v11839_v34 = vld [vmem:[%s12755_s18 + $0x3a0] ss:$24 sps:$4 sm:$0xff]   ;;  %v11844_v46 = vld [vmem:[%s12755_s18 + $0x74] ss:$24 sps:$4 sm:$0xff]  }
 0x335   : > { %7730 = vmatprep.subr.bf16.mxu1 %v11799_v30  ;;  %v11847_v30 = vld [vmem:[%s12755_s18 + $0x374] ss:$24 sps:$4 sm:$0xff]  }
 0x337   : > { %7690 = vmatpush2.bf16.msra.mxu0 %v11794_v47  ;;  %v11842_v47 = vld [vmem:[%s12755_s18 + $0x70] ss:$24 sps:$4 sm:$0xff]  }
 0x338   : > { %7731 = vmatpush2.bf16.msra.mxu1 %v11797_v51  ;;  %7691 = vmatprep.subr.bf16.mxu0 %v11802_v53  ;;  %v11845_v51 = vld [vmem:[%s12755_s18 + $0x370] ss:$24 sps:$4 sm:$0xff]   ;;  %v11850_v53 = vld [vmem:[%s12755_s18 + $0x44] ss:$24 sps:$4 sm:$0xff]  }
 0x339   : > { %7732 = vmatprep.subr.bf16.mxu1 %v11805_v57  ;;  %v11853_v57 = vld [vmem:[%s12755_s18 + $0x344] ss:$24 sps:$4 sm:$0xff]  }
 0x33b   : > { %7692 = vmatpush2.bf16.msra.mxu0 %v11800_v54  ;;  %v11848_v54 = vld [vmem:[%s12755_s18 + $0x40] ss:$24 sps:$4 sm:$0xff]  }
 0x33c   : > { %7733 = vmatpush2.bf16.msra.mxu1 %v11803_v55  ;;  %7693 = vmatprep.subr.bf16.mxu0 %v11808_v62  ;;  %v11851_v55 = vld [vmem:[%s12755_s18 + $0x340] ss:$24 sps:$4 sm:$0xff]   ;;  %v11856_v62 = vld [vmem:[%s12755_s18 + $0x14] ss:$24 sps:$4 sm:$0xff]  }
 0x33d   : > { %7734 = vmatprep.subr.bf16.mxu1 %v11811_v1  ;;  %v11859_v1 = vld [vmem:[%s12755_s18 + $0x314] ss:$24 sps:$4 sm:$0xff]  }
 0x33f   : > { %7694 = vmatpush2.bf16.msra.mxu0 %v11806_v58  ;;  %v11854_v58 = vld [vmem:[%s12755_s18 + $0x10] ss:$24 sps:$4 sm:$0xff]  }
 0x340   : > { %7735 = vmatpush2.bf16.msra.mxu1 %v11809_v63  ;;  %7745 = vmatprep.subr.bf16.mxu0 %v11814_v3  ;;  %v11857_v63 = vld [vmem:[%s12755_s18 + $0x310] ss:$24 sps:$4 sm:$0xff]   ;;  %v11862_v3 = vld [vmem:[%s12755_s18 + $0x2e4] ss:$24 sps:$4 sm:$0xff]  }
 0x341   : > { %7786 = vmatprep.subr.bf16.mxu1 %v11817_v0  ;;  %v11865_v0 = vld [vmem:[%s12755_s18 + $0x5e4] ss:$24 sps:$4 sm:$0xff]  }
 0x342   : > { %v7451_v6 = vpop.f32.mrf.mxu0  ;;  %7696 = vmatmul.mubr.bf16.vlgmr.msra.gmra.mxu0 %v13225_v50 }
 0x343   : > { %7737 = vmatmul.mubr.bf16.vlgmr.msra.gmra.mxu1 %v13307_v35  ;;  %v7492_v9 = vpop.f32.mrf.mxu1  ;;  %v7452_v11 = vadd.f32 %v7451_v6, %v13621_v32  ;;  %7746 = vmatpush1.bf16.msra.mxu0 %v11812_v2  ;;  %v11860_v2 = vld [vmem:[%s12755_s18 + $0x2e0] ss:$24 sps:$4 sm:$0xff]   ;;  %v11866_v6 = vld [vmem:[%s12755_s18 + $0x2b0] ss:$24 sps:$4 sm:$0xff]  }
 0x344   : > { %7787 = vmatpush1.bf16.msra.mxu1 %v11815_v10  ;;  %v7453_v13 = vpop.f32.mrf.mxu0  ;;  %7747 = vmatprep.subr.bf16.mxu0 %v11820_v4  ;;  %v11863_v10 = vld [vmem:[%s12755_s18 + $0x5e0] ss:$24 sps:$4 sm:$0xff]   ;;  %v11868_v4 = vld [vmem:[%s12755_s18 + $0x2b4] ss:$24 sps:$4 sm:$0xff]  }
 0x345   : > { %v7494_v15 = vpop.f32.mrf.mxu1  ;;  %7788 = vmatprep.subr.bf16.mxu1 %v11823_v5  ;;  %v7454_v20 = vadd.f32 %v7453_v13, %v13625_v33  ;;  %v13695_v21 = vadd.f32 %v7492_v9, %v7452_v11  ;;  %7777 = vmatprep.mubr.bf16.mxu0 %v12827_v48  ;;  %v11832_v48 = vld [vmem:[%s12755_s18 + $0xd4] ss:$24 sps:$4 sm:$0xff]   ;;  %v11869_v9 = vld [vmem:[%s12755_s18 + $0x5b0] ss:$24 sps:$4 sm:$0xff]   ;;  %v11874_v11 = vld [vmem:[%s12755_s18 + $0x284] ss:$24 sps:$4 sm:$0xff]  }
 0x346   : > { %7818 = vmatprep.mubr.bf16.mxu1 %v12832_v52  ;;  %v7455_v32 = vpop.f32.mrf.mxu0  ;;  %v11835_v33 = vld [vmem:[%s12755_s18 + $0x3d4] ss:$24 sps:$4 sm:$0xff]   ;;  %v11875_v13 = vld [vmem:[%s12755_s18 + $0x580] ss:$24 sps:$4 sm:$0xff]  }
 0x347   : > { %v7496_v22 = vpop.f32.mrf.mxu1  ;;  %v13699_v31 = vadd.f32 %v7494_v15, %v7454_v20  ;;  %7748 = vmatpush1.bf16.msra.mxu0 %v11818_v14  ;;  %v11871_v5 = vld [vmem:[%s12755_s18 + $0x5b4] ss:$24 sps:$4 sm:$0xff]   ;;  %v11877_v14 = vld [vmem:[%s12755_s18 + $0x584] ss:$24 sps:$4 sm:$0xff]   ;;  %v11881_v20 = vld [vmem:[%s12755_s18 + $0x550] ss:$24 sps:$4 sm:$0xff]  }
 0x348   : > { %7789 = vmatpush1.bf16.msra.mxu1 %v11821_v12  ;;  %v7456_v29 = vpop.f32.mrf.mxu0  ;;  %7749 = vmatprep.subr.bf16.mxu0 %v11826_v16  ;;  %v11872_v12 = vld [vmem:[%s12755_s18 + $0x280] ss:$24 sps:$4 sm:$0xff]   ;;  %v11880_v15 = vld [vmem:[%s12755_s18 + $0x254] ss:$24 sps:$4 sm:$0xff]   ;;  %v11886_v32 = vld [vmem:[%s12755_s18 + $0x224] ss:$24 sps:$4 sm:$0xff]  }
 0x349   : > { %7790 = vmatprep.subr.bf16.mxu1 %v11829_v19  ;;  %v7497_v52 = vpop.f32.mrf.mxu1  ;;  %v11883_v16 = vld [vmem:[%s12755_s18 + $0x554] ss:$24 sps:$4 sm:$0xff]   ;;  %v11878_v19 = vld [vmem:[%s12755_s18 + $0x250] ss:$24 sps:$4 sm:$0xff]   ;;  %v11889_v22 = vld [vmem:[%s12755_s18 + $0x524] ss:$24 sps:$4 sm:$0xff]  }
 0x34a   : > { %v11892_v29 = vld [vmem:[%s12755_s18 + $0x1f4] ss:$24 sps:$4 sm:$0xff]   ;;  %v11893_v52 = vld [vmem:[%s12755_s18 + $0x4f0] ss:$24 sps:$4 sm:$0xff]  }
 0x34b   : > { %7750 = vmatpush1.bf16.msra.mxu0 %v11824_v45  ;;  %v11884_v45 = vld [vmem:[%s12755_s18 + $0x220] ss:$24 sps:$4 sm:$0xff]  }
 0x34c   : > { %7791 = vmatpush1.bf16.msra.mxu1 %v11827_v27  ;;  %7751 = vmatprep.subr.bf16.mxu0 %v11832_v48  ;;  %v11887_v27 = vld [vmem:[%s12755_s18 + $0x520] ss:$24 sps:$4 sm:$0xff]   ;;  %v11895_v48 = vld [vmem:[%s12755_s18 + $0x4f4] ss:$24 sps:$4 sm:$0xff]  }
 0x34d   : > { %7792 = vmatprep.subr.bf16.mxu1 %v11835_v33  ;;  %v11890_v33 = vld [vmem:[%s12755_s18 + $0x1f0] ss:$24 sps:$4 sm:$0xff]  }
 0x34f   : > { %7752 = vmatpush1.bf16.msra.mxu0 %v11830_v59  ;;  %v11898_v59 = vld [vmem:[%s12755_s18 + $0x1c4] ss:$24 sps:$4 sm:$0xff]  }
 0x350   : > { %7793 = vmatpush1.bf16.msra.mxu1 %v11833_v28  ;;  %7753 = vmatprep.subr.bf16.mxu0 %v11838_v36  ;;  %v11901_v28 = vld [vmem:[%s12755_s18 + $0x4c4] ss:$24 sps:$4 sm:$0xff]   ;;  %v11896_v36 = vld [vmem:[%s12755_s18 + $0x1c0] ss:$24 sps:$4 sm:$0xff]  }
 0x351   : > { %7794 = vmatprep.subr.bf16.mxu1 %v11841_v43  ;;  %v11899_v43 = vld [vmem:[%s12755_s18 + $0x4c0] ss:$24 sps:$4 sm:$0xff]  }
 0x353   : > { %7754 = vmatpush1.bf16.msra.mxu0 %v11836_v44  ;;  %v11904_v44 = vld [vmem:[%s12755_s18 + $0x194] ss:$24 sps:$4 sm:$0xff]  }
 0x354   : > { %7795 = vmatpush1.bf16.msra.mxu1 %v11839_v34  ;;  %7755 = vmatprep.subr.bf16.mxu0 %v11844_v46  ;;  %v11907_v34 = vld [vmem:[%s12755_s18 + $0x494] ss:$24 sps:$4 sm:$0xff]   ;;  %v11902_v46 = vld [vmem:[%s12755_s18 + $0x190] ss:$24 sps:$4 sm:$0xff]  }
 0x355   : > { %7796 = vmatprep.subr.bf16.mxu1 %v11847_v30  ;;  %v11905_v30 = vld [vmem:[%s12755_s18 + $0x490] ss:$24 sps:$4 sm:$0xff]  }
 0x357   : > { %7756 = vmatpush1.bf16.msra.mxu0 %v11842_v47  ;;  %v11910_v47 = vld [vmem:[%s12755_s18 + $0x764] ss:$24 sps:$4 sm:$0xff]  }
 0x358   : > { %7797 = vmatpush1.bf16.msra.mxu1 %v11845_v51  ;;  %7757 = vmatprep.subr.bf16.mxu0 %v11850_v53  ;;  %v11913_v51 = vld [vmem:[%s12755_s18 + $0xa64] ss:$24 sps:$4 sm:$0xff]   ;;  %v11908_v53 = vld [vmem:[%s12755_s18 + $0x760] ss:$24 sps:$4 sm:$0xff]  }
 0x359   : > { %7798 = vmatprep.subr.bf16.mxu1 %v11853_v57  ;;  %v11911_v57 = vld [vmem:[%s12755_s18 + $0xa60] ss:$24 sps:$4 sm:$0xff]  }
 0x35b   : > { %7758 = vmatpush1.bf16.msra.mxu0 %v11848_v54  ;;  %v11916_v54 = vld [vmem:[%s12755_s18 + $0x734] ss:$24 sps:$4 sm:$0xff]  }
 0x35c   : > { %7799 = vmatpush1.bf16.msra.mxu1 %v11851_v55  ;;  %7759 = vmatprep.subr.bf16.mxu0 %v11856_v62  ;;  %v11919_v55 = vld [vmem:[%s12755_s18 + $0xa34] ss:$24 sps:$4 sm:$0xff]  }
 0x35d   : > { %7800 = vmatprep.subr.bf16.mxu1 %v11859_v1 }
 0x35f   : > { %7760 = vmatpush1.bf16.msra.mxu0 %v11854_v58 }
 0x360   : > { %7801 = vmatpush1.bf16.msra.mxu1 %v11857_v63  ;;  %7761 = vmatprep.subr.bf16.mxu0 %v11862_v3  ;;  %v11914_v63 = vld [vmem:[%s12755_s18 + $0x730] ss:$24 sps:$4 sm:$0xff]  }
 0x361   : > { %7802 = vmatprep.subr.bf16.mxu1 %v11865_v0  ;;  %v11917_v3 = vld [vmem:[%s12755_s18 + $0xa30] ss:$24 sps:$4 sm:$0xff]  }
 0x363   : > { %7762 = vmatpush2.bf16.msra.mxu0 %v11860_v2 }
 0x364   : > { %7803 = vmatpush2.bf16.msra.mxu1 %v11863_v10  ;;  %7763 = vmatprep.subr.bf16.mxu0 %v11868_v4  ;;  %v11922_v10 = vld [vmem:[%s12755_s18 + $0x704] ss:$24 sps:$4 sm:$0xff]  }
 0x365   : > { %7804 = vmatprep.subr.bf16.mxu1 %v11871_v5  ;;  %v11925_v4 = vld [vmem:[%s12755_s18 + $0xa04] ss:$24 sps:$4 sm:$0xff]  }
 0x367   : > { %7764 = vmatpush2.bf16.msra.mxu0 %v11866_v6 }
 0x368   : > { %7805 = vmatpush2.bf16.msra.mxu1 %v11869_v9  ;;  %7765 = vmatprep.subr.bf16.mxu0 %v11874_v11  ;;  %v11920_v9 = vld [vmem:[%s12755_s18 + $0x700] ss:$24 sps:$4 sm:$0xff]  }
 0x369   : > { %7806 = vmatprep.subr.bf16.mxu1 %v11877_v14  ;;  %v11923_v11 = vld [vmem:[%s12755_s18 + $0xa00] ss:$24 sps:$4 sm:$0xff]  }
 0x36b   : > { %7766 = vmatpush2.bf16.msra.mxu0 %v11872_v12  ;;  %v11926_v12 = vld [vmem:[%s12755_s18 + $0x6d0] ss:$24 sps:$4 sm:$0xff]  }
 0x36c   : > { %7807 = vmatpush2.bf16.msra.mxu1 %v11875_v13  ;;  %7767 = vmatprep.subr.bf16.mxu0 %v11880_v15  ;;  %v11929_v13 = vld [vmem:[%s12755_s18 + $0x9d0] ss:$24 sps:$4 sm:$0xff]   ;;  %v11934_v15 = vld [vmem:[%s12755_s18 + $0x6a4] ss:$24 sps:$4 sm:$0xff]  }
 0x36d   : > { %7808 = vmatprep.subr.bf16.mxu1 %v11883_v16  ;;  %v11937_v16 = vld [vmem:[%s12755_s18 + $0x9a4] ss:$24 sps:$4 sm:$0xff]  }
 0x36f   : > { %7768 = vmatpush2.bf16.msra.mxu0 %v11878_v19  ;;  %v11932_v19 = vld [vmem:[%s12755_s18 + $0x6a0] ss:$24 sps:$4 sm:$0xff]  }
 0x370   : > { %7809 = vmatpush2.bf16.msra.mxu1 %v11881_v20  ;;  %7769 = vmatprep.subr.bf16.mxu0 %v11886_v32  ;;  %v11935_v20 = vld [vmem:[%s12755_s18 + $0x9a0] ss:$24 sps:$4 sm:$0xff]   ;;  %v11940_v32 = vld [vmem:[%s12755_s18 + $0x674] ss:$24 sps:$4 sm:$0xff]  }
 0x371   : > { %7810 = vmatprep.subr.bf16.mxu1 %v11889_v22  ;;  %v11943_v22 = vld [vmem:[%s12755_s18 + $0x974] ss:$24 sps:$4 sm:$0xff]  }
 0x373   : > { %7770 = vmatpush2.bf16.msra.mxu0 %v11884_v45  ;;  %v11938_v45 = vld [vmem:[%s12755_s18 + $0x670] ss:$24 sps:$4 sm:$0xff]  }
 0x374   : > { %7811 = vmatpush2.bf16.msra.mxu1 %v11887_v27  ;;  %7771 = vmatprep.subr.bf16.mxu0 %v11892_v29  ;;  %v11941_v27 = vld [vmem:[%s12755_s18 + $0x970] ss:$24 sps:$4 sm:$0xff]   ;;  %v11946_v29 = vld [vmem:[%s12755_s18 + $0x644] ss:$24 sps:$4 sm:$0xff]  }
 0x375   : > { %7812 = vmatprep.subr.bf16.mxu1 %v11895_v48  ;;  %v11949_v48 = vld [vmem:[%s12755_s18 + $0x944] ss:$24 sps:$4 sm:$0xff]  }
 0x377   : > { %7772 = vmatpush2.bf16.msra.mxu0 %v11890_v33  ;;  %v11944_v33 = vld [vmem:[%s12755_s18 + $0x640] ss:$24 sps:$4 sm:$0xff]  }
 0x378   : > { %7813 = vmatpush2.bf16.msra.mxu1 %v11893_v52  ;;  %7773 = vmatprep.subr.bf16.mxu0 %v11898_v59  ;;  %v11947_v52 = vld [vmem:[%s12755_s18 + $0x940] ss:$24 sps:$4 sm:$0xff]   ;;  %v11952_v59 = vld [vmem:[%s12755_s18 + $0x614] ss:$24 sps:$4 sm:$0xff]  }
 0x379   : > { %7814 = vmatprep.subr.bf16.mxu1 %v11901_v28  ;;  %v11955_v28 = vld [vmem:[%s12755_s18 + $0x914] ss:$24 sps:$4 sm:$0xff]  }
 0x37b   : > { %7774 = vmatpush2.bf16.msra.mxu0 %v11896_v36  ;;  %v11950_v36 = vld [vmem:[%s12755_s18 + $0x610] ss:$24 sps:$4 sm:$0xff]  }
 0x37c   : > { %7815 = vmatpush2.bf16.msra.mxu1 %v11899_v43  ;;  %7775 = vmatprep.subr.bf16.mxu0 %v11904_v44  ;;  %v11953_v43 = vld [vmem:[%s12755_s18 + $0x910] ss:$24 sps:$4 sm:$0xff]   ;;  %v11958_v44 = vld [vmem:[%s12755_s18 + $0x8e4] ss:$24 sps:$4 sm:$0xff]  }
 0x37d   : > { %7816 = vmatprep.subr.bf16.mxu1 %v11907_v34  ;;  %v11961_v34 = vld [vmem:[%s12755_s18 + $0xbe4] ss:$24 sps:$4 sm:$0xff]  }
 0x37f   : > { %7776 = vmatpush2.bf16.msra.mxu0 %v11902_v46  ;;  %v11956_v46 = vld [vmem:[%s12755_s18 + $0x8e0] ss:$24 sps:$4 sm:$0xff]  }
 0x380   : > { %7817 = vmatpush2.bf16.msra.mxu1 %v11905_v30  ;;  %7827 = vmatprep.subr.bf16.mxu0 %v11910_v47  ;;  %v11959_v30 = vld [vmem:[%s12755_s18 + $0xbe0] ss:$24 sps:$4 sm:$0xff]   ;;  %v11964_v47 = vld [vmem:[%s12755_s18 + $0x8b4] ss:$24 sps:$4 sm:$0xff]  }
 0x381   : > { %7868 = vmatprep.subr.bf16.mxu1 %v11913_v51  ;;  %v11967_v51 = vld [vmem:[%s12755_s18 + $0xbb4] ss:$24 sps:$4 sm:$0xff]  }
 0x382   : > { %v7533_v62 = vpop.f32.mrf.mxu0  ;;  %7778 = vmatmul.mubr.bf16.vlgmr.msra.gmra.mxu0 %v12854_v7 }
 0x383   : > { %7819 = vmatmul.mubr.bf16.vlgmr.msra.gmra.mxu1 %v12856_v8  ;;  %v7574_v1 = vpop.f32.mrf.mxu1  ;;  %v7534_v58 = vadd.f32 %v7533_v62, %v13695_v21  ;;  %7828 = vmatpush1.bf16.msra.mxu0 %v11908_v53  ;;  %v11962_v53 = vld [vmem:[%s12755_s18 + $0x8b0] ss:$24 sps:$4 sm:$0xff]   ;;  %v11968_v62 = vld [vmem:[%s12755_s18 + $0x880] ss:$24 sps:$4 sm:$0xff]  }
 0x384   : > { %7869 = vmatpush1.bf16.msra.mxu1 %v11911_v57  ;;  %v7535_v0 = vpop.f32.mrf.mxu0  ;;  %7829 = vmatprep.subr.bf16.mxu0 %v11916_v54  ;;  %v11965_v57 = vld [vmem:[%s12755_s18 + $0xbb0] ss:$24 sps:$4 sm:$0xff]   ;;  %v11970_v54 = vld [vmem:[%s12755_s18 + $0x884] ss:$24 sps:$4 sm:$0xff]  }
 0x385   : > { %v7576_v2 = vpop.f32.mrf.mxu1  ;;  %7870 = vmatprep.subr.bf16.mxu1 %v11919_v55  ;;  %v7536_v7 = vadd.f32 %v7535_v0, %v13699_v31  ;;  %v13769_v8 = vadd.f32 %v7574_v1, %v7534_v58  ;;  %7859 = vmatprep.mubr.bf16.mxu0 %v12894_v37  ;;  %v11928_v37 = vld [vmem:[%s12755_s18 + $0x6d4] ss:$24 sps:$4 sm:$0xff]   ;;  %v11973_v55 = vld [vmem:[%s12755_s18 + $0xb84] ss:$24 sps:$4 sm:$0xff]   ;;  %v11971_v1 = vld [vmem:[%s12755_s18 + $0xb80] ss:$24 sps:$4 sm:$0xff]  }
 0x386   : > { %7900 = vmatprep.mubr.bf16.mxu1 %v12898_v38  ;;  %v7537_v21 = vpop.f32.mrf.mxu0  ;;  %v11931_v31 = vld [vmem:[%s12755_s18 + $0x9d4] ss:$24 sps:$4 sm:$0xff]   ;;  %v11977_v0 = vld [vmem:[%s12755_s18 + $0xb50] ss:$24 sps:$4 sm:$0xff]  }
 0x387   : > { %v7578_v5 = vpop.f32.mrf.mxu1  ;;  %v13773_v6 = vadd.f32 %v7576_v2, %v7536_v7  ;;  %7830 = vmatpush1.bf16.msra.mxu0 %v11914_v63  ;;  %v11976_v58 = vld [vmem:[%s12755_s18 + $0x854] ss:$24 sps:$4 sm:$0xff]   ;;  %v11982_v2 = vld [vmem:[%s12755_s18 + $0x824] ss:$24 sps:$4 sm:$0xff]   ;;  %v11983_v7 = vld [vmem:[%s12755_s18 + $0xb20] ss:$24 sps:$4 sm:$0xff]  }
 0x388   : > { %7871 = vmatpush1.bf16.msra.mxu1 %v11917_v3  ;;  %v7538_v14 = vpop.f32.mrf.mxu0  ;;  %7831 = vmatprep.subr.bf16.mxu0 %v11922_v10  ;;  %v11979_v63 = vld [vmem:[%s12755_s18 + $0xb54] ss:$24 sps:$4 sm:$0xff]   ;;  %v11974_v3 = vld [vmem:[%s12755_s18 + $0x850] ss:$24 sps:$4 sm:$0xff]   ;;  %v11985_v10 = vld [vmem:[%s12755_s18 + $0xb24] ss:$24 sps:$4 sm:$0xff]  }
 0x389   : > { %7872 = vmatprep.subr.bf16.mxu1 %v11925_v4  ;;  %v7579_v38 = vpop.f32.mrf.mxu1  ;;  %v11980_v4 = vld [vmem:[%s12755_s18 + $0x820] ss:$24 sps:$4 sm:$0xff]   ;;  %v11988_v21 = vld [vmem:[%s12755_s18 + $0x7f4] ss:$24 sps:$4 sm:$0xff]   ;;  %v11994_v14 = vld [vmem:[%s12755_s18 + $0x7c4] ss:$24 sps:$4 sm:$0xff]  }
 0x38a   : > { %v11991_v5 = vld [vmem:[%s12755_s18 + $0xaf4] ss:$24 sps:$4 sm:$0xff]   ;;  %v11995_v38 = vld [vmem:[%s12755_s18 + $0xac0] ss:$24 sps:$4 sm:$0xff]  }
 0x38b   : > { %7832 = vmatpush1.bf16.msra.mxu0 %v11920_v9  ;;  %v11986_v9 = vld [vmem:[%s12755_s18 + $0x7f0] ss:$24 sps:$4 sm:$0xff]  }
 0x38c   : > { %7873 = vmatpush1.bf16.msra.mxu1 %v11923_v11  ;;  %7833 = vmatprep.subr.bf16.mxu0 %v11928_v37  ;;  %v11989_v11 = vld [vmem:[%s12755_s18 + $0xaf0] ss:$24 sps:$4 sm:$0xff]   ;;  %v11997_v37 = vld [vmem:[%s12755_s18 + $0xac4] ss:$24 sps:$4 sm:$0xff]  }
 0x38d   : > { %7874 = vmatprep.subr.bf16.mxu1 %v11931_v31  ;;  %v11992_v31 = vld [vmem:[%s12755_s18 + $0x7c0] ss:$24 sps:$4 sm:$0xff]  }
 0x38f   : > { %7834 = vmatpush1.bf16.msra.mxu0 %v11926_v12  ;;  %v12000_v12 = vld [vmem:[%s12755_s18 + $0x794] ss:$24 sps:$4 sm:$0xff]  }
 0x390   : > { %7875 = vmatpush1.bf16.msra.mxu1 %v11929_v13  ;;  %7835 = vmatprep.subr.bf16.mxu0 %v11934_v15  ;;  %v12003_v13 = vld [vmem:[%s12755_s18 + $0xa94] ss:$24 sps:$4 sm:$0xff]   ;;  %v11998_v15 = vld [vmem:[%s12755_s18 + $0x790] ss:$24 sps:$4 sm:$0xff]  }
 0x391   : > { %7876 = vmatprep.subr.bf16.mxu1 %v11937_v16  ;;  %v12001_v16 = vld [vmem:[%s12755_s18 + $0xa90] ss:$24 sps:$4 sm:$0xff]  }
 0x393   : > { %7836 = vmatpush1.bf16.msra.mxu0 %v11932_v19  ;;  %v12006_v19 = vld [vmem:[%s12755_s18 + $0xd64] ss:$24 sps:$4 sm:$0xff]  }
 0x394   : > { %7877 = vmatpush1.bf16.msra.mxu1 %v11935_v20  ;;  %7837 = vmatprep.subr.bf16.mxu0 %v11940_v32  ;;  %v12009_v20 = vld [vmem:[%s12755_s18 + $0x1064] ss:$24 sps:$4 sm:$0xff]   ;;  %v12004_v32 = vld [vmem:[%s12755_s18 + $0xd60] ss:$24 sps:$4 sm:$0xff]  }
 0x395   : > { %7878 = vmatprep.subr.bf16.mxu1 %v11943_v22  ;;  %v12007_v22 = vld [vmem:[%s12755_s18 + $0x1060] ss:$24 sps:$4 sm:$0xff]  }
 0x397   : > { %7838 = vmatpush1.bf16.msra.mxu0 %v11938_v45  ;;  %v12012_v45 = vld [vmem:[%s12755_s18 + $0xd34] ss:$24 sps:$4 sm:$0xff]  }
 0x398   : > { %7879 = vmatpush1.bf16.msra.mxu1 %v11941_v27  ;;  %7839 = vmatprep.subr.bf16.mxu0 %v11946_v29  ;;  %v12015_v27 = vld [vmem:[%s12755_s18 + $0x1034] ss:$24 sps:$4 sm:$0xff]  }
 0x399   : > { %7880 = vmatprep.subr.bf16.mxu1 %v11949_v48 }
 0x39b   : > { %7840 = vmatpush1.bf16.msra.mxu0 %v11944_v33  ;;  %v12010_v33 = vld [vmem:[%s12755_s18 + $0xd30] ss:$24 sps:$4 sm:$0xff]  }
 0x39c   : > { %7881 = vmatpush1.bf16.msra.mxu1 %v11947_v52  ;;  %7841 = vmatprep.subr.bf16.mxu0 %v11952_v59  ;;  %v12013_v52 = vld [vmem:[%s12755_s18 + $0x1030] ss:$24 sps:$4 sm:$0xff]  }
 0x39d   : > { %7882 = vmatprep.subr.bf16.mxu1 %v11955_v28 }
 0x39f   : > { %7842 = vmatpush1.bf16.msra.mxu0 %v11950_v36  ;;  %v12018_v36 = vld [vmem:[%s12755_s18 + $0xd04] ss:$24 sps:$4 sm:$0xff]  }
 0x3a0   : > { %7883 = vmatpush1.bf16.msra.mxu1 %v11953_v43  ;;  %7843 = vmatprep.subr.bf16.mxu0 %v11958_v44  ;;  %v12016_v44 = vld [vmem:[%s12755_s18 + $0xd00] ss:$24 sps:$4 sm:$0xff]  }
 0x3a1   : > { %7884 = vmatprep.subr.bf16.mxu1 %v11961_v34  ;;  %v12019_v34 = vld [vmem:[%s12755_s18 + $0x1000] ss:$24 sps:$4 sm:$0xff]  }
 0x3a3   : > { %7844 = vmatpush2.bf16.msra.mxu0 %v11956_v46 }
 0x3a4   : > { %7885 = vmatpush2.bf16.msra.mxu1 %v11959_v30  ;;  %7845 = vmatprep.subr.bf16.mxu0 %v11964_v47  ;;  %v12024_v30 = vld [vmem:[%s12755_s18 + $0xcd4] ss:$24 sps:$4 sm:$0xff]  }
 0x3a5   : > { %7886 = vmatprep.subr.bf16.mxu1 %v11967_v51  ;;  %v12027_v47 = vld [vmem:[%s12755_s18 + $0xfd4] ss:$24 sps:$4 sm:$0xff]   ;;  %v12025_v51 = vld [vmem:[%s12755_s18 + $0xfd0] ss:$24 sps:$4 sm:$0xff]  }
 0x3a7   : > { %7846 = vmatpush2.bf16.msra.mxu0 %v11962_v53  ;;  %v12030_v53 = vld [vmem:[%s12755_s18 + $0xca4] ss:$24 sps:$4 sm:$0xff]  }
 0x3a8   : > { %7887 = vmatpush2.bf16.msra.mxu1 %v11965_v57  ;;  %7847 = vmatprep.subr.bf16.mxu0 %v11970_v54  ;;  %v12033_v57 = vld [vmem:[%s12755_s18 + $0xfa4] ss:$24 sps:$4 sm:$0xff]   ;;  %v12028_v54 = vld [vmem:[%s12755_s18 + $0xca0] ss:$24 sps:$4 sm:$0xff]  }
 0x3a9   : > { %7888 = vmatprep.subr.bf16.mxu1 %v11973_v55  ;;  %v12031_v55 = vld [vmem:[%s12755_s18 + $0xfa0] ss:$24 sps:$4 sm:$0xff]  }
 0x3ab   : > { %7848 = vmatpush2.bf16.msra.mxu0 %v11968_v62  ;;  %v12036_v62 = vld [vmem:[%s12755_s18 + $0xc74] ss:$24 sps:$4 sm:$0xff]  }
 0x3ac   : > { %7889 = vmatpush2.bf16.msra.mxu1 %v11971_v1  ;;  %7849 = vmatprep.subr.bf16.mxu0 %v11976_v58  ;;  %v12039_v1 = vld [vmem:[%s12755_s18 + $0xf74] ss:$24 sps:$4 sm:$0xff]   ;;  %v12034_v58 = vld [vmem:[%s12755_s18 + $0xc70] ss:$24 sps:$4 sm:$0xff]  }
 0x3ad   : > { %7890 = vmatprep.subr.bf16.mxu1 %v11979_v63  ;;  %v12037_v63 = vld [vmem:[%s12755_s18 + $0xf70] ss:$24 sps:$4 sm:$0xff]  }
 0x3af   : > { %7850 = vmatpush2.bf16.msra.mxu0 %v11974_v3  ;;  %v12042_v3 = vld [vmem:[%s12755_s18 + $0xc44] ss:$24 sps:$4 sm:$0xff]  }
 0x3b0   : > { %7891 = vmatpush2.bf16.msra.mxu1 %v11977_v0  ;;  %7851 = vmatprep.subr.bf16.mxu0 %v11982_v2  ;;  %v12045_v0 = vld [vmem:[%s12755_s18 + $0xf44] ss:$24 sps:$4 sm:$0xff]   ;;  %v12040_v2 = vld [vmem:[%s12755_s18 + $0xc40] ss:$24 sps:$4 sm:$0xff]  }
 0x3b1   : > { %7892 = vmatprep.subr.bf16.mxu1 %v11985_v10  ;;  %v12043_v10 = vld [vmem:[%s12755_s18 + $0xf40] ss:$24 sps:$4 sm:$0xff]  }
 0x3b3   : > { %7852 = vmatpush2.bf16.msra.mxu0 %v11980_v4  ;;  %v12048_v4 = vld [vmem:[%s12755_s18 + $0xc14] ss:$24 sps:$4 sm:$0xff]  }
 0x3b4   : > { %7893 = vmatpush2.bf16.msra.mxu1 %v11983_v7  ;;  %7853 = vmatprep.subr.bf16.mxu0 %v11988_v21  ;;  %v12051_v7 = vld [vmem:[%s12755_s18 + $0xf14] ss:$24 sps:$4 sm:$0xff]   ;;  %v12046_v21 = vld [vmem:[%s12755_s18 + $0xc10] ss:$24 sps:$4 sm:$0xff]  }
 0x3b5   : > { %7894 = vmatprep.subr.bf16.mxu1 %v11991_v5  ;;  %v12049_v5 = vld [vmem:[%s12755_s18 + $0xf10] ss:$24 sps:$4 sm:$0xff]  }
 0x3b7   : > { %7854 = vmatpush2.bf16.msra.mxu0 %v11986_v9  ;;  %v12054_v9 = vld [vmem:[%s12755_s18 + $0xee4] ss:$24 sps:$4 sm:$0xff]  }
 0x3b8   : > { %7895 = vmatpush2.bf16.msra.mxu1 %v11989_v11  ;;  %7855 = vmatprep.subr.bf16.mxu0 %v11994_v14  ;;  %v12057_v11 = vld [vmem:[%s12755_s18 + $0x11e4] ss:$24 sps:$4 sm:$0xff]   ;;  %v12052_v14 = vld [vmem:[%s12755_s18 + $0xee0] ss:$24 sps:$4 sm:$0xff]  }
 0x3b9   : > { %7896 = vmatprep.subr.bf16.mxu1 %v11997_v37  ;;  %v12055_v37 = vld [vmem:[%s12755_s18 + $0x11e0] ss:$24 sps:$4 sm:$0xff]  }
 0x3bb   : > { %7856 = vmatpush2.bf16.msra.mxu0 %v11992_v31  ;;  %v12060_v31 = vld [vmem:[%s12755_s18 + $0xeb4] ss:$24 sps:$4 sm:$0xff]  }
 0x3bc   : > { %7897 = vmatpush2.bf16.msra.mxu1 %v11995_v38  ;;  %7857 = vmatprep.subr.bf16.mxu0 %v12000_v12  ;;  %v12063_v38 = vld [vmem:[%s12755_s18 + $0x11b4] ss:$24 sps:$4 sm:$0xff]   ;;  %v12058_v12 = vld [vmem:[%s12755_s18 + $0xeb0] ss:$24 sps:$4 sm:$0xff]  }
 0x3bd   : > { %7898 = vmatprep.subr.bf16.mxu1 %v12003_v13  ;;  %v12061_v13 = vld [vmem:[%s12755_s18 + $0x11b0] ss:$24 sps:$4 sm:$0xff]  }
 0x3bf   : > { %7858 = vmatpush2.bf16.msra.mxu0 %v11998_v15  ;;  %v12066_v15 = vld [vmem:[%s12755_s18 + $0xe84] ss:$24 sps:$4 sm:$0xff]  }
 0x3c0   : > { %7899 = vmatpush2.bf16.msra.mxu1 %v12001_v16  ;;  %7909 = vmatprep.subr.bf16.mxu0 %v12006_v19  ;;  %v12069_v16 = vld [vmem:[%s12755_s18 + $0x1184] ss:$24 sps:$4 sm:$0xff]   ;;  %v12064_v19 = vld [vmem:[%s12755_s18 + $0xe80] ss:$24 sps:$4 sm:$0xff]  }
 0x3c1   : > { %7950 = vmatprep.subr.bf16.mxu1 %v12009_v20  ;;  %v12067_v20 = vld [vmem:[%s12755_s18 + $0x1180] ss:$24 sps:$4 sm:$0xff]  }
 0x3c2   : > { %v13835_v29 = vpop.f32.mrf.mxu0  ;;  %7860 = vmatmul.mubr.bf16.vlgmr.msra.gmra.mxu0 %v12942_v17  ;;  %v12021_v17 = vld [vmem:[%s12755_s18 + $0x1004] ss:$24 sps:$4 sm:$0xff]  }
 0x3c3   : > { %v13838_v48 = vpop.f32.mrf.mxu1  ;;  %7901 = vmatmul.mubr.bf16.vlgmr.msra.gmra.mxu1 %v12946_v18  ;;  %7910 = vmatpush1.bf16.msra.mxu0 %v12004_v32  ;;  %v12072_v32 = vld [vmem:[%s12755_s18 + $0xe54] ss:$24 sps:$4 sm:$0xff]  }
 0x3c4   : > { %7951 = vmatpush1.bf16.msra.mxu1 %v12007_v22  ;;  %v13843_v59 = vpop.f32.mrf.mxu0  ;;  %7911 = vmatprep.subr.bf16.mxu0 %v12012_v45  ;;  %v12075_v22 = vld [vmem:[%s12755_s18 + $0x1154] ss:$24 sps:$4 sm:$0xff]   ;;  %v12070_v45 = vld [vmem:[%s12755_s18 + $0xe50] ss:$24 sps:$4 sm:$0xff]  }
 0x3c5   : > { %v13845_v28 = vpop.f32.mrf.mxu1  ;;  %7952 = vmatprep.subr.bf16.mxu1 %v12015_v27  ;;  %7941 = vmatprep.mubr.bf16.mxu0 %v12960_v25  ;;  %v12073_v27 = vld [vmem:[%s12755_s18 + $0x1150] ss:$24 sps:$4 sm:$0xff]  }
 0x3c6   : > { %7982 = vmatprep.mubr.bf16.mxu1 %v12964_v26  ;;  %v7619_v18 = vpop.f32.mrf.mxu0  ;;  %v12022_v26 = vld [vmem:[%s12755_s18 + $0xcd0] ss:$24 sps:$4 sm:$0xff]  }
 0x3c7   : > { %v7660_v43 = vpop.f32.mrf.mxu1  ;;  %7912 = vmatpush1.bf16.msra.mxu0 %v12010_v33  ;;  %v12078_v33 = vld [vmem:[%s12755_s18 + $0xe24] ss:$24 sps:$4 sm:$0xff]   ;;  %v12084_v18 = vld [vmem:[%s12755_s18 + $0xdf4] ss:$24 sps:$4 sm:$0xff]  }
 0x3c8   : > { %7953 = vmatpush1.bf16.msra.mxu1 %v12013_v52  ;;  %v7620_v46 = vpop.f32.mrf.mxu0  ;;  %7913 = vmatprep.subr.bf16.mxu0 %v12018_v36  ;;  %v12081_v52 = vld [vmem:[%s12755_s18 + $0x1124] ss:$24 sps:$4 sm:$0xff]   ;;  %v12076_v36 = vld [vmem:[%s12755_s18 + $0xe20] ss:$24 sps:$4 sm:$0xff]   ;;  %v12087_v43 = vld [vmem:[%s12755_s18 + $0x10f4] ss:$24 sps:$4 sm:$0xff]  }
 0x3c9   : > { %7954 = vmatprep.subr.bf16.mxu1 %v12021_v17  ;;  %v7661_v25 = vpop.f32.mrf.mxu1  ;;  %v12079_v17 = vld [vmem:[%s12755_s18 + $0x1120] ss:$24 sps:$4 sm:$0xff]   ;;  %v12090_v46 = vld [vmem:[%s12755_s18 + $0xdc4] ss:$24 sps:$4 sm:$0xff]  }
 0x3ca   : > { %v12091_v25 = vld [vmem:[%s12755_s18 + $0x10c0] ss:$24 sps:$4 sm:$0xff]  }
 0x3cb   : > { %7914 = vmatpush1.bf16.msra.mxu0 %v12016_v44  ;;  %v12082_v44 = vld [vmem:[%s12755_s18 + $0xdf0] ss:$24 sps:$4 sm:$0xff]  }
 0x3cc   : > { %7955 = vmatpush1.bf16.msra.mxu1 %v12019_v34  ;;  %7915 = vmatprep.subr.bf16.mxu0 %v12024_v30  ;;  %v12085_v34 = vld [vmem:[%s12755_s18 + $0x10f0] ss:$24 sps:$4 sm:$0xff]   ;;  %v12093_v30 = vld [vmem:[%s12755_s18 + $0x10c4] ss:$24 sps:$4 sm:$0xff]  }
 0x3cd   : > { %7956 = vmatprep.subr.bf16.mxu1 %v12027_v47  ;;  %v12088_v47 = vld [vmem:[%s12755_s18 + $0xdc0] ss:$24 sps:$4 sm:$0xff]  }
 0x3cf   : > { %7916 = vmatpush1.bf16.msra.mxu0 %v12022_v26  ;;  %v12096_v26 = vld [vmem:[%s12755_s18 + $0xd94] ss:$24 sps:$4 sm:$0xff]  }
 0x3d0   : > { %7957 = vmatpush1.bf16.msra.mxu1 %v12025_v51  ;;  %7917 = vmatprep.subr.bf16.mxu0 %v12030_v53  ;;  %v12099_v51 = vld [vmem:[%s12755_s18 + $0x1094] ss:$24 sps:$4 sm:$0xff]   ;;  %v12094_v53 = vld [vmem:[%s12755_s18 + $0xd90] ss:$24 sps:$4 sm:$0xff]  }
 0x3d1   : > { %7958 = vmatprep.subr.bf16.mxu1 %v12033_v57  ;;  %v12097_v57 = vld [vmem:[%s12755_s18 + $0x1090] ss:$24 sps:$4 sm:$0xff]  }
 0x3d3   : > { %7918 = vmatpush1.bf16.msra.mxu0 %v12028_v54  ;;  %v12102_v54 = vld [vmem:[%s12755_s18 + $0x1364] ss:$24 sps:$4 sm:$0xff]  }
 0x3d4   : > { %7959 = vmatpush1.bf16.msra.mxu1 %v12031_v55  ;;  %7919 = vmatprep.subr.bf16.mxu0 %v12036_v62  ;;  %v12105_v55 = vld [vmem:[%s12755_s18 + $0x1664] ss:$24 sps:$4 sm:$0xff]   ;;  %v7616_v62 = vadd.f32 %v13835_v29, %v13769_v8 }
 0x3d5   : > { %7960 = vmatprep.subr.bf16.mxu1 %v12039_v1  ;;  %v7618_v1 = vadd.f32 %v13843_v59, %v13773_v6  ;;  %v12106_v59 = vld [vmem:[%s12755_s18 + $0x1330] ss:$24 sps:$4 sm:$0xff]  }
 0x3d7   : > { %7920 = vmatpush1.bf16.msra.mxu0 %v12034_v58  ;;  %v12100_v58 = vld [vmem:[%s12755_s18 + $0x1360] ss:$24 sps:$4 sm:$0xff]   ;;  %v7659_v6 = vadd.f32 %v13845_v28, %v7618_v1  ;;  %v427_v28 = vld [vmem:[#allocation2] sm:$0xff] }
 0x3d8   : > { %7961 = vmatpush1.bf16.msra.mxu1 %v12037_v63  ;;  %7921 = vmatprep.subr.bf16.mxu0 %v12042_v3  ;;  %v12103_v63 = vld [vmem:[%s12755_s18 + $0x1660] ss:$24 sps:$4 sm:$0xff]   ;;  %v12108_v3 = vld [vmem:[%s12755_s18 + $0x1334] ss:$24 sps:$4 sm:$0xff]   ;;  %v12157_v1 = vld [vmem:[%s12755_s18 + $0x17b0] ss:$24 sps:$4 sm:$0xff]  }
 0x3d9   : > { %7962 = vmatprep.subr.bf16.mxu1 %v12045_v0  ;;  %v12111_v0 = vld [vmem:[%s12755_s18 + $0x1634] ss:$24 sps:$4 sm:$0xff]  }
 0x3db   : > { %7922 = vmatpush1.bf16.msra.mxu0 %v12040_v2  ;;  %v7657_v2 = vadd.f32 %v13838_v48, %v7616_v62  ;;  %v12114_v48 = vld [vmem:[%s12755_s18 + $0x1304] ss:$24 sps:$4 sm:$0xff]   ;;  %v12154_v62 = vld [vmem:[%s12755_s18 + $0x14b0] ss:$24 sps:$4 sm:$0xff]  }
 0x3dc   : > { %7963 = vmatpush1.bf16.msra.mxu1 %v12043_v10  ;;  %7923 = vmatprep.subr.bf16.mxu0 %v12048_v4  ;;  %v12109_v4 = vld [vmem:[%s12755_s18 + $0x1630] ss:$24 sps:$4 sm:$0xff]  }
 0x3dd   : > { %7964 = vmatprep.subr.bf16.mxu1 %v12051_v7 }
 0x3df   : > { %7924 = vmatpush1.bf16.msra.mxu0 %v12046_v21  ;;  %v426_v21 = vld [vmem:[#allocation2 + $0x8] sm:$0xff] }
 0x3e0   : > { %7965 = vmatpush1.bf16.msra.mxu1 %v12049_v5  ;;  %7925 = vmatprep.subr.bf16.mxu0 %v12054_v9  ;;  %v12117_v9 = vld [vmem:[%s12755_s18 + $0x1604] ss:$24 sps:$4 sm:$0xff]  }
 0x3e1   : > { %7966 = vmatprep.subr.bf16.mxu1 %v12057_v11 }
 0x3e3   : > { %7926 = vmatpush2.bf16.msra.mxu0 %v12052_v14 }
 0x3e4   : > { %7967 = vmatpush2.bf16.msra.mxu1 %v12055_v37  ;;  %7927 = vmatprep.subr.bf16.mxu0 %v12060_v31 }
 0x3e5   : > { %7968 = vmatprep.subr.bf16.mxu1 %v12063_v38  ;;  %v12112_v38 = vld [vmem:[%s12755_s18 + $0x1300] ss:$24 sps:$4 sm:$0xff]  }
 0x3e7   : > { %7928 = vmatpush2.bf16.msra.mxu0 %v12058_v12  ;;  %v12115_v12 = vld [vmem:[%s12755_s18 + $0x1600] ss:$24 sps:$4 sm:$0xff]  }
 0x3e8   : > { %7969 = vmatpush2.bf16.msra.mxu1 %v12061_v13  ;;  %7929 = vmatprep.subr.bf16.mxu0 %v12066_v15  ;;  %v12120_v15 = vld [vmem:[%s12755_s18 + $0x12d4] ss:$24 sps:$4 sm:$0xff]  }
 0x3e9   : > { %7970 = vmatprep.subr.bf16.mxu1 %v12069_v16 }
 0x3eb   : > { %7930 = vmatpush2.bf16.msra.mxu0 %v12064_v19  ;;  %v12118_v19 = vld [vmem:[%s12755_s18 + $0x12d0] ss:$24 sps:$4 sm:$0xff]  }
 0x3ec   : > { %7971 = vmatpush2.bf16.msra.mxu1 %v12067_v20  ;;  %7931 = vmatprep.subr.bf16.mxu0 %v12072_v32  ;;  %v12121_v20 = vld [vmem:[%s12755_s18 + $0x15d0] ss:$24 sps:$4 sm:$0xff]   ;;  %v12126_v32 = vld [vmem:[%s12755_s18 + $0x12a4] ss:$24 sps:$4 sm:$0xff]  }
 0x3ed   : > { %7972 = vmatprep.subr.bf16.mxu1 %v12075_v22  ;;  %v12129_v22 = vld [vmem:[%s12755_s18 + $0x15a4] ss:$24 sps:$4 sm:$0xff]  }
 0x3ef   : > { %7932 = vmatpush2.bf16.msra.mxu0 %v12070_v45  ;;  %v12124_v45 = vld [vmem:[%s12755_s18 + $0x12a0] ss:$24 sps:$4 sm:$0xff]  }
 0x3f0   : > { %7973 = vmatpush2.bf16.msra.mxu1 %v12073_v27  ;;  %7933 = vmatprep.subr.bf16.mxu0 %v12078_v33  ;;  %v12127_v27 = vld [vmem:[%s12755_s18 + $0x15a0] ss:$24 sps:$4 sm:$0xff]   ;;  %v12132_v33 = vld [vmem:[%s12755_s18 + $0x1274] ss:$24 sps:$4 sm:$0xff]  }
 0x3f1   : > { %7974 = vmatprep.subr.bf16.mxu1 %v12081_v52  ;;  %v12135_v52 = vld [vmem:[%s12755_s18 + $0x1574] ss:$24 sps:$4 sm:$0xff]  }
 0x3f3   : > { %7934 = vmatpush2.bf16.msra.mxu0 %v12076_v36  ;;  %v12130_v36 = vld [vmem:[%s12755_s18 + $0x1270] ss:$24 sps:$4 sm:$0xff]  }
 0x3f4   : > { %7975 = vmatpush2.bf16.msra.mxu1 %v12079_v17  ;;  %7935 = vmatprep.subr.bf16.mxu0 %v12084_v18  ;;  %v12133_v17 = vld [vmem:[%s12755_s18 + $0x1570] ss:$24 sps:$4 sm:$0xff]   ;;  %v12138_v18 = vld [vmem:[%s12755_s18 + $0x1244] ss:$24 sps:$4 sm:$0xff]  }
 0x3f5   : > { %7976 = vmatprep.subr.bf16.mxu1 %v12087_v43  ;;  %v12141_v43 = vld [vmem:[%s12755_s18 + $0x1544] ss:$24 sps:$4 sm:$0xff]  }
 0x3f7   : > { %7936 = vmatpush2.bf16.msra.mxu0 %v12082_v44  ;;  %v12136_v44 = vld [vmem:[%s12755_s18 + $0x1240] ss:$24 sps:$4 sm:$0xff]  }
 0x3f8   : > { %7977 = vmatpush2.bf16.msra.mxu1 %v12085_v34  ;;  %7937 = vmatprep.subr.bf16.mxu0 %v12090_v46  ;;  %v12139_v34 = vld [vmem:[%s12755_s18 + $0x1540] ss:$24 sps:$4 sm:$0xff]   ;;  %v12144_v46 = vld [vmem:[%s12755_s18 + $0x1214] ss:$24 sps:$4 sm:$0xff]  }
 0x3f9   : > { %7978 = vmatprep.subr.bf16.mxu1 %v12093_v30  ;;  %v12147_v30 = vld [vmem:[%s12755_s18 + $0x1514] ss:$24 sps:$4 sm:$0xff]  }
 0x3fb   : > { %7938 = vmatpush2.bf16.msra.mxu0 %v12088_v47  ;;  %v12142_v47 = vld [vmem:[%s12755_s18 + $0x1210] ss:$24 sps:$4 sm:$0xff]  }
 0x3fc   : > { %7979 = vmatpush2.bf16.msra.mxu1 %v12091_v25  ;;  %7939 = vmatprep.subr.bf16.mxu0 %v12096_v26  ;;  %v12145_v25 = vld [vmem:[%s12755_s18 + $0x1510] ss:$24 sps:$4 sm:$0xff]   ;;  %v12150_v26 = vld [vmem:[%s12755_s18 + $0x14e4] ss:$24 sps:$4 sm:$0xff]  }
 0x3fd   : > { %7980 = vmatprep.subr.bf16.mxu1 %v12099_v51  ;;  %v12153_v51 = vld [vmem:[%s12755_s18 + $0x17e4] ss:$24 sps:$4 sm:$0xff]  }
 0x3ff   : > { %7940 = vmatpush2.bf16.msra.mxu0 %v12094_v53  ;;  %v12148_v53 = vld [vmem:[%s12755_s18 + $0x14e0] ss:$24 sps:$4 sm:$0xff]  }
 0x400   : > { %7981 = vmatpush2.bf16.msra.mxu1 %v12097_v57  ;;  %7991 = vmatprep.subr.bf16.mxu0 %v12102_v54  ;;  %v12151_v57 = vld [vmem:[%s12755_s18 + $0x17e0] ss:$24 sps:$4 sm:$0xff]   ;;  %v12156_v54 = vld [vmem:[%s12755_s18 + $0x14b4] ss:$24 sps:$4 sm:$0xff]  }
 0x401   : > { %8032 = vmatprep.subr.bf16.mxu1 %v12105_v55  ;;  %v12159_v55 = vld [vmem:[%s12755_s18 + $0x17b4] ss:$24 sps:$4 sm:$0xff]  }
 0x402   : > { %v7697_v10 = vpop.f32.mrf.mxu0  ;;  %7942 = vmatmul.mubr.bf16.vlgmr.msra.gmra.mxu0 %v13034_v39 }
 0x403   : > { %v7738_v8 = vpop.f32.mrf.mxu1  ;;  %7983 = vmatmul.mubr.bf16.vlgmr.msra.gmra.mxu1 %v13038_v40  ;;  %v7698_v29 = vadd.f32 %v7697_v10, %v7657_v2  ;;  %7992 = vmatpush1.bf16.msra.mxu0 %v12100_v58  ;;  %v12162_v58 = vld [vmem:[%s12755_s18 + $0x1484] ss:$24 sps:$4 sm:$0xff]   ;;  %v12168_v2 = vld [vmem:[%s12755_s18 + $0x1454] ss:$24 sps:$4 sm:$0xff]  }
 0x404   : > { %8033 = vmatpush1.bf16.msra.mxu1 %v12103_v63  ;;  %v7699_v7 = vpop.f32.mrf.mxu0  ;;  %7993 = vmatprep.subr.bf16.mxu0 %v12108_v3  ;;  %v12165_v63 = vld [vmem:[%s12755_s18 + $0x1784] ss:$24 sps:$4 sm:$0xff]   ;;  %v12160_v3 = vld [vmem:[%s12755_s18 + $0x1480] ss:$24 sps:$4 sm:$0xff]   ;;  %v12171_v10 = vld [vmem:[%s12755_s18 + $0x1754] ss:$24 sps:$4 sm:$0xff]  }
 0x405   : > { %v7740_v5 = vpop.f32.mrf.mxu1  ;;  %8034 = vmatprep.subr.bf16.mxu1 %v12111_v0  ;;  %v7700_v39 = vadd.f32 %v7699_v7, %v7659_v6  ;;  %v7739_v11 = vadd.f32 %v7738_v8, %v7698_v29  ;;  %8023 = vmatprep.mubr.bf16.mxu0 %v13050_v23  ;;  %v12123_v23 = vld [vmem:[%s12755_s18 + $0x15d4] ss:$24 sps:$4 sm:$0xff]   ;;  %v12163_v0 = vld [vmem:[%s12755_s18 + $0x1780] ss:$24 sps:$4 sm:$0xff]   ;;  %v12166_v8 = vld [vmem:[%s12755_s18 + $0x1450] ss:$24 sps:$4 sm:$0xff]  }
 0x406   : > { %8064 = vmatprep.mubr.bf16.mxu1 %v13054_v24  ;;  %v7701_v40 = vpop.f32.mrf.mxu0  ;;  %v12169_v6 = vld [vmem:[%s12755_s18 + $0x1750] ss:$24 sps:$4 sm:$0xff]   ;;  %v12174_v29 = vld [vmem:[%s12755_s18 + $0x1424] ss:$24 sps:$4 sm:$0xff]   ;;  %v12175_v7 = vld [vmem:[%s12755_s18 + $0x1720] ss:$24 sps:$4 sm:$0xff]  }
 0x407   : > { %v7742_v14 = vpop.f32.mrf.mxu1  ;;  %v8198_v37 = vadd.f32 %v7739_v11, %v426_v21  ;;  %v7741_v31 = vadd.f32 %v7740_v5, %v7700_v39  ;;  %7994 = vmatpush1.bf16.msra.mxu0 %v12106_v59  ;;  %v12177_v59 = vld [vmem:[%s12755_s18 + $0x1724] ss:$24 sps:$4 sm:$0xff]   ;;  %v12180_v21 = vld [vmem:[%s12755_s18 + $0x13f4] ss:$24 sps:$4 sm:$0xff]   ;;  %v12184_v40 = vld [vmem:[%s12755_s18 + $0x13c0] ss:$24 sps:$4 sm:$0xff]  }
 0x408   : > { %8035 = vmatpush1.bf16.msra.mxu1 %v12109_v4  ;;  %v7702_v13 = vpop.f32.mrf.mxu0  ;;  %7995 = vmatprep.subr.bf16.mxu0 %v12114_v48  ;;  %v12172_v4 = vld [vmem:[%s12755_s18 + $0x1420] ss:$24 sps:$4 sm:$0xff]   ;;  %v12183_v5 = vld [vmem:[%s12755_s18 + $0x16f4] ss:$24 sps:$4 sm:$0xff]   ;;  %v12178_v48 = vld [vmem:[%s12755_s18 + $0x13f0] ss:$24 sps:$4 sm:$0xff]  }
 0x409   : > { %8036 = vmatprep.subr.bf16.mxu1 %v12117_v9  ;;  %v7743_v24 = vpop.f32.mrf.mxu1  ;;  %8204 = vst [vmem:[#allocation2 + $0x8] sm:$0xff] %v8198_v37  ;;  %v8199_v16 = vadd.f32 %v7741_v31, %v427_v28  ;;  %v12181_v9 = vld [vmem:[%s12755_s18 + $0x16f0] ss:$24 sps:$4 sm:$0xff]   ;;  %v12186_v39 = vld [vmem:[%s12755_s18 + $0x13c4] ss:$24 sps:$4 sm:$0xff]  }
 0x40a   : > { %v12189_v11 = vld [vmem:[%s12755_s18 + $0x16c4] ss:$24 sps:$4 sm:$0xff]   ;;  %v12187_v28 = vld [vmem:[%s12755_s18 + $0x16c0] ss:$24 sps:$4 sm:$0xff]   ;;  %v12192_v14 = vld [vmem:[%s12755_s18 + $0x1394] ss:$24 sps:$4 sm:$0xff]  }
 0x40b   : > { %8205 = vst [vmem:[#allocation2] sm:$0xff] %v8199_v16  ;;  %7996 = vmatpush1.bf16.msra.mxu0 %v12112_v38  ;;  %v12195_v37 = vld [vmem:[%s12755_s18 + $0x1694] ss:$24 sps:$4 sm:$0xff]   ;;  %v12190_v31 = vld [vmem:[%s12755_s18 + $0x1390] ss:$24 sps:$4 sm:$0xff]  }
 0x40c   : > { %8037 = vmatpush1.bf16.msra.mxu1 %v12115_v12  ;;  %7997 = vmatprep.subr.bf16.mxu0 %v12120_v15  ;;  %v12193_v38 = vld [vmem:[%s12755_s18 + $0x1690] ss:$24 sps:$4 sm:$0xff]   ;;  %v12198_v12 = vld [vmem:[%s12755_s18 + $0x1964] ss:$24 sps:$4 sm:$0xff]   ;;  %v12196_v15 = vld [vmem:[%s12755_s18 + $0x1960] ss:$24 sps:$4 sm:$0xff]  }
 0x40d   : > { %8038 = vmatprep.subr.bf16.mxu1 %v12123_v23  ;;  %v12201_v13 = vld [vmem:[%s12755_s18 + $0x1c64] ss:$24 sps:$4 sm:$0xff]   ;;  %v12199_v23 = vld [vmem:[%s12755_s18 + $0x1c60] ss:$24 sps:$4 sm:$0xff]   ;;  %v12204_v24 = vld [vmem:[%s12755_s18 + $0x1934] ss:$24 sps:$4 sm:$0xff]  }
 0x40e   : > { %v12207_v16 = vld [vmem:[%s12755_s18 + $0x1c34] ss:$24 sps:$4 sm:$0xff]  }
 0x40f   : > { %7998 = vmatpush1.bf16.msra.mxu0 %v12118_v19 }
 0x410   : > { %8039 = vmatpush1.bf16.msra.mxu1 %v12121_v20  ;;  %7999 = vmatprep.subr.bf16.mxu0 %v12126_v32 }
 0x411   : > { %8040 = vmatprep.subr.bf16.mxu1 %v12129_v22  ;;  %v12202_v22 = vld [vmem:[%s12755_s18 + $0x1930] ss:$24 sps:$4 sm:$0xff]  }
 0x413   : > { %8000 = vmatpush1.bf16.msra.mxu0 %v12124_v45  ;;  %v12205_v45 = vld [vmem:[%s12755_s18 + $0x1c30] ss:$24 sps:$4 sm:$0xff]  }
 0x414   : > { %8041 = vmatpush1.bf16.msra.mxu1 %v12127_v27  ;;  %8001 = vmatprep.subr.bf16.mxu0 %v12132_v33 }
 0x415   : > { %8042 = vmatprep.subr.bf16.mxu1 %v12135_v52  ;;  %v12210_v52 = vld [vmem:[%s12755_s18 + $0x1904] ss:$24 sps:$4 sm:$0xff]  }
 0x417   : > { %8002 = vmatpush1.bf16.msra.mxu0 %v12130_v36  ;;  %v12213_v36 = vld [vmem:[%s12755_s18 + $0x1c04] ss:$24 sps:$4 sm:$0xff]  }
 0x418   : > { %8043 = vmatpush1.bf16.msra.mxu1 %v12133_v17  ;;  %8003 = vmatprep.subr.bf16.mxu0 %v12138_v18  ;;  %v12208_v18 = vld [vmem:[%s12755_s18 + $0x1900] ss:$24 sps:$4 sm:$0xff]  }
 0x419   : > { %8044 = vmatprep.subr.bf16.mxu1 %v12141_v43  ;;  %v12211_v43 = vld [vmem:[%s12755_s18 + $0x1c00] ss:$24 sps:$4 sm:$0xff]  }
 0x41b   : > { %8004 = vmatpush1.bf16.msra.mxu0 %v12136_v44 }
 0x41c   : > { %8045 = vmatpush1.bf16.msra.mxu1 %v12139_v34  ;;  %8005 = vmatprep.subr.bf16.mxu0 %v12144_v46  ;;  %v12216_v34 = vld [vmem:[%s12755_s18 + $0x18d4] ss:$24 sps:$4 sm:$0xff]  }
 0x41d   : > { %8046 = vmatprep.subr.bf16.mxu1 %v12147_v30  ;;  %v12219_v46 = vld [vmem:[%s12755_s18 + $0x1bd4] ss:$24 sps:$4 sm:$0xff]   ;;  %v12217_v30 = vld [vmem:[%s12755_s18 + $0x1bd0] ss:$24 sps:$4 sm:$0xff]  }
 0x41f   : > { %8006 = vmatpush1.bf16.msra.mxu0 %v12142_v47  ;;  %v12222_v47 = vld [vmem:[%s12755_s18 + $0x18a4] ss:$24 sps:$4 sm:$0xff]  }
 0x420   : > { %8047 = vmatpush1.bf16.msra.mxu1 %v12145_v25  ;;  %8007 = vmatprep.subr.bf16.mxu0 %v12150_v26  ;;  %v12225_v25 = vld [vmem:[%s12755_s18 + $0x1ba4] ss:$24 sps:$4 sm:$0xff]   ;;  %v12220_v26 = vld [vmem:[%s12755_s18 + $0x18a0] ss:$24 sps:$4 sm:$0xff]  }
 0x421   : > { %8048 = vmatprep.subr.bf16.mxu1 %v12153_v51  ;;  %v12223_v51 = vld [vmem:[%s12755_s18 + $0x1ba0] ss:$24 sps:$4 sm:$0xff]  }
 0x423   : > { %8008 = vmatpush2.bf16.msra.mxu0 %v12148_v53  ;;  %v12228_v53 = vld [vmem:[%s12755_s18 + $0x1874] ss:$24 sps:$4 sm:$0xff]  }
 0x424   : > { %8049 = vmatpush2.bf16.msra.mxu1 %v12151_v57  ;;  %8009 = vmatprep.subr.bf16.mxu0 %v12156_v54  ;;  %v12231_v57 = vld [vmem:[%s12755_s18 + $0x1b74] ss:$24 sps:$4 sm:$0xff]   ;;  %v12226_v54 = vld [vmem:[%s12755_s18 + $0x1870] ss:$24 sps:$4 sm:$0xff]  }
 0x425   : > { %8050 = vmatprep.subr.bf16.mxu1 %v12159_v55  ;;  %v12229_v55 = vld [vmem:[%s12755_s18 + $0x1b70] ss:$24 sps:$4 sm:$0xff]  }
 0x427   : > { %8010 = vmatpush2.bf16.msra.mxu0 %v12154_v62  ;;  %v12234_v62 = vld [vmem:[%s12755_s18 + $0x1844] ss:$24 sps:$4 sm:$0xff]  }
 0x428   : > { %8051 = vmatpush2.bf16.msra.mxu1 %v12157_v1  ;;  %8011 = vmatprep.subr.bf16.mxu0 %v12162_v58  ;;  %v12237_v1 = vld [vmem:[%s12755_s18 + $0x1b44] ss:$24 sps:$4 sm:$0xff]   ;;  %v12232_v58 = vld [vmem:[%s12755_s18 + $0x1840] ss:$24 sps:$4 sm:$0xff]  }
 0x429   : > { %8052 = vmatprep.subr.bf16.mxu1 %v12165_v63  ;;  %v12235_v63 = vld [vmem:[%s12755_s18 + $0x1b40] ss:$24 sps:$4 sm:$0xff]  }
 0x42b   : > { %8012 = vmatpush2.bf16.msra.mxu0 %v12160_v3  ;;  %v12240_v3 = vld [vmem:[%s12755_s18 + $0x1814] ss:$24 sps:$4 sm:$0xff]  }
 0x42c   : > { %8053 = vmatpush2.bf16.msra.mxu1 %v12163_v0  ;;  %8013 = vmatprep.subr.bf16.mxu0 %v12168_v2  ;;  %v12243_v0 = vld [vmem:[%s12755_s18 + $0x1b14] ss:$24 sps:$4 sm:$0xff]   ;;  %v12238_v2 = vld [vmem:[%s12755_s18 + $0x1810] ss:$24 sps:$4 sm:$0xff]  }
 0x42d   : > { %8054 = vmatprep.subr.bf16.mxu1 %v12171_v10  ;;  %v12241_v10 = vld [vmem:[%s12755_s18 + $0x1b10] ss:$24 sps:$4 sm:$0xff]  }
 0x42f   : > { %8014 = vmatpush2.bf16.msra.mxu0 %v12166_v8  ;;  %v12246_v8 = vld [vmem:[%s12755_s18 + $0x1ae4] ss:$24 sps:$4 sm:$0xff]  }
 0x430   : > { %8055 = vmatpush2.bf16.msra.mxu1 %v12169_v6  ;;  %8015 = vmatprep.subr.bf16.mxu0 %v12174_v29  ;;  %v12249_v6 = vld [vmem:[%s12755_s18 + $0x1de4] ss:$24 sps:$4 sm:$0xff]   ;;  %v12244_v29 = vld [vmem:[%s12755_s18 + $0x1ae0] ss:$24 sps:$4 sm:$0xff]  }
 0x431   : > { %8056 = vmatprep.subr.bf16.mxu1 %v12177_v59  ;;  %v12247_v59 = vld [vmem:[%s12755_s18 + $0x1de0] ss:$24 sps:$4 sm:$0xff]  }
 0x433   : > { %8016 = vmatpush2.bf16.msra.mxu0 %v12172_v4  ;;  %v12252_v4 = vld [vmem:[%s12755_s18 + $0x1ab4] ss:$24 sps:$4 sm:$0xff]  }
 0x434   : > { %8057 = vmatpush2.bf16.msra.mxu1 %v12175_v7  ;;  %8017 = vmatprep.subr.bf16.mxu0 %v12180_v21  ;;  %v12255_v7 = vld [vmem:[%s12755_s18 + $0x1db4] ss:$24 sps:$4 sm:$0xff]   ;;  %v12250_v21 = vld [vmem:[%s12755_s18 + $0x1ab0] ss:$24 sps:$4 sm:$0xff]  }
 0x435   : > { %8058 = vmatprep.subr.bf16.mxu1 %v12183_v5  ;;  %v12253_v5 = vld [vmem:[%s12755_s18 + $0x1db0] ss:$24 sps:$4 sm:$0xff]  }
 0x437   : > { %8018 = vmatpush2.bf16.msra.mxu0 %v12178_v48  ;;  %v12258_v48 = vld [vmem:[%s12755_s18 + $0x1a84] ss:$24 sps:$4 sm:$0xff]  }
 0x438   : > { %8059 = vmatpush2.bf16.msra.mxu1 %v12181_v9  ;;  %8019 = vmatprep.subr.bf16.mxu0 %v12186_v39  ;;  %v12261_v9 = vld [vmem:[%s12755_s18 + $0x1d84] ss:$24 sps:$4 sm:$0xff]   ;;  %v12256_v39 = vld [vmem:[%s12755_s18 + $0x1a80] ss:$24 sps:$4 sm:$0xff]  }
 0x439   : > { %8060 = vmatprep.subr.bf16.mxu1 %v12189_v11  ;;  %v12259_v11 = vld [vmem:[%s12755_s18 + $0x1d80] ss:$24 sps:$4 sm:$0xff]  }
 0x43b   : > { %8020 = vmatpush2.bf16.msra.mxu0 %v12184_v40  ;;  %v12264_v40 = vld [vmem:[%s12755_s18 + $0x1a54] ss:$24 sps:$4 sm:$0xff]  }
 0x43c   : > { %8061 = vmatpush2.bf16.msra.mxu1 %v12187_v28  ;;  %8021 = vmatprep.subr.bf16.mxu0 %v12192_v14  ;;  %v12267_v28 = vld [vmem:[%s12755_s18 + $0x1d54] ss:$24 sps:$4 sm:$0xff]   ;;  %v12262_v14 = vld [vmem:[%s12755_s18 + $0x1a50] ss:$24 sps:$4 sm:$0xff]  }
 0x43d   : > { %8062 = vmatprep.subr.bf16.mxu1 %v12195_v37  ;;  %v12265_v37 = vld [vmem:[%s12755_s18 + $0x1d50] ss:$24 sps:$4 sm:$0xff]  }
 0x43f   : > { %8022 = vmatpush2.bf16.msra.mxu0 %v12190_v31  ;;  %v12270_v31 = vld [vmem:[%s12755_s18 + $0x1a24] ss:$24 sps:$4 sm:$0xff]  }
 0x440   : > { %8063 = vmatpush2.bf16.msra.mxu1 %v12193_v38  ;;  %8073 = vmatprep.subr.bf16.mxu0 %v12198_v12  ;;  %v12273_v38 = vld [vmem:[%s12755_s18 + $0x1d24] ss:$24 sps:$4 sm:$0xff]   ;;  %v12268_v12 = vld [vmem:[%s12755_s18 + $0x1a20] ss:$24 sps:$4 sm:$0xff]  }
 0x441   : > { %8114 = vmatprep.subr.bf16.mxu1 %v12201_v13  ;;  %v12271_v13 = vld [vmem:[%s12755_s18 + $0x1d20] ss:$24 sps:$4 sm:$0xff]  }
 0x442   : > { %v7779_v19 = vpop.f32.mrf.mxu0  ;;  %8024 = vmatmul.mubr.bf16.vlgmr.msra.gmra.mxu0 %v13125_v60 }
 0x443   : > { %v7820_v20 = vpop.f32.mrf.mxu1  ;;  %8065 = vmatmul.mubr.bf16.vlgmr.msra.gmra.mxu1 %v13129_v61  ;;  %8074 = vmatpush1.bf16.msra.mxu0 %v12196_v15  ;;  %v12276_v15 = vld [vmem:[%s12755_s18 + $0x19f4] ss:$24 sps:$4 sm:$0xff]  }
 0x444   : > { %v13987_v32 = vadd.f32 %v7820_v20, %v7779_v19  ;;  %8115 = vmatpush1.bf16.msra.mxu1 %v12199_v23  ;;  %v7781_v27 = vpop.f32.mrf.mxu0  ;;  %8075 = vmatprep.subr.bf16.mxu0 %v12204_v24  ;;  %v12279_v23 = vld [vmem:[%s12755_s18 + $0x1cf4] ss:$24 sps:$4 sm:$0xff]   ;;  %v12274_v24 = vld [vmem:[%s12755_s18 + $0x19f0] ss:$24 sps:$4 sm:$0xff]   ;;  %v12282_v19 = vld [vmem:[%s12755_s18 + $0x19c4] ss:$24 sps:$4 sm:$0xff]  }
 0x445   : > { %v7822_v33 = vpop.f32.mrf.mxu1  ;;  %8116 = vmatprep.subr.bf16.mxu1 %v12207_v16  ;;  %8105 = vmatprep.mubr.bf16.mxu0 %v13140_v41  ;;  %v12277_v16 = vld [vmem:[%s12755_s18 + $0x1cf0] ss:$24 sps:$4 sm:$0xff]   ;;  %v12285_v20 = vld [vmem:[%s12755_s18 + $0x1cc4] ss:$24 sps:$4 sm:$0xff]  }
 0x446   : > { %v13993_v17 = vadd.f32 %v7822_v33, %v7781_v27  ;;  %8146 = vmatprep.mubr.bf16.mxu1 %v13144_v42  ;;  %v7783_v60 = vpop.f32.mrf.mxu0  ;;  %v12214_v42 = vld [vmem:[%s12755_s18 + $0x18d0] ss:$24 sps:$4 sm:$0xff]   ;;  %v12288_v27 = vld [vmem:[%s12755_s18 + $0x1994] ss:$24 sps:$4 sm:$0xff]  }
 0x447   : > { %v7824_v61 = vpop.f32.mrf.mxu1  ;;  %8076 = vmatpush1.bf16.msra.mxu0 %v12202_v22  ;;  %v12280_v22 = vld [vmem:[%s12755_s18 + $0x19c0] ss:$24 sps:$4 sm:$0xff]   ;;  %v12291_v33 = vld [vmem:[%s12755_s18 + $0x1c94] ss:$24 sps:$4 sm:$0xff]   ;;  %v12294_v60 = vld [vmem:[%s12755_s18 + $0x1f64] ss:$24 sps:$4 sm:$0xff]  }
 0x448   : > { %8117 = vmatpush1.bf16.msra.mxu1 %v12205_v45  ;;  %v7784_v44 = vpop.f32.mrf.mxu0  ;;  %8077 = vmatprep.subr.bf16.mxu0 %v12210_v52  ;;  %v12283_v45 = vld [vmem:[%s12755_s18 + $0x1cc0] ss:$24 sps:$4 sm:$0xff]   ;;  %v12286_v52 = vld [vmem:[%s12755_s18 + $0x1990] ss:$24 sps:$4 sm:$0xff]  }
 0x449   : > { %8118 = vmatprep.subr.bf16.mxu1 %v12213_v36  ;;  %v7825_v41 = vpop.f32.mrf.mxu1  ;;  %v12289_v36 = vld [vmem:[%s12755_s18 + $0x1c90] ss:$24 sps:$4 sm:$0xff]   ;;  %v12292_v61 = vld [vmem:[%s12755_s18 + $0x1f60] ss:$24 sps:$4 sm:$0xff]  }
 0x44b   : > { %8078 = vmatpush1.bf16.msra.mxu0 %v12208_v18  ;;  %v12297_v18 = vld [vmem:[%s12755_s18 + $0x1f34] ss:$24 sps:$4 sm:$0xff]  }
 0x44c   : > { %8119 = vmatpush1.bf16.msra.mxu1 %v12211_v43  ;;  %8079 = vmatprep.subr.bf16.mxu0 %v12216_v34 }
 0x44d   : > { %8120 = vmatprep.subr.bf16.mxu1 %v12219_v46  ;;  %v12295_v46 = vld [vmem:[%s12755_s18 + $0x1f30] ss:$24 sps:$4 sm:$0xff]  }
 0x44f   : > { %8080 = vmatpush1.bf16.msra.mxu0 %v12214_v42 }
 0x450   : > { %8121 = vmatpush1.bf16.msra.mxu1 %v12217_v30  ;;  %8081 = vmatprep.subr.bf16.mxu0 %v12222_v47  ;;  %v12300_v30 = vld [vmem:[%s12755_s18 + $0x1f04] ss:$24 sps:$4 sm:$0xff]  }
 0x451   : > { %8122 = vmatprep.subr.bf16.mxu1 %v12225_v25 }
 0x453   : > { %8082 = vmatpush1.bf16.msra.mxu0 %v12220_v26  ;;  %v12298_v26 = vld [vmem:[%s12755_s18 + $0x1f00] ss:$24 sps:$4 sm:$0xff]  }
 0x454   : > { %8123 = vmatpush1.bf16.msra.mxu1 %v12223_v51  ;;  %8083 = vmatprep.subr.bf16.mxu0 %v12228_v53  ;;  %v12303_v51 = vld [vmem:[%s12755_s18 + $0x1ed4] ss:$24 sps:$4 sm:$0xff]  }
 0x455   : > { %8124 = vmatprep.subr.bf16.mxu1 %v12231_v57  ;;  %v12306_v57 = vld [vmem:[%s12755_s18 + $0x1ea4] ss:$24 sps:$4 sm:$0xff]  }
 0x457   : > { %8084 = vmatpush1.bf16.msra.mxu0 %v12226_v54  ;;  %v12304_v54 = vld [vmem:[%s12755_s18 + $0x1ea0] ss:$24 sps:$4 sm:$0xff]  }
 0x458   : > { %8125 = vmatpush1.bf16.msra.mxu1 %v12229_v55  ;;  %8085 = vmatprep.subr.bf16.mxu0 %v12234_v62  ;;  %v12309_v55 = vld [vmem:[%s12755_s18 + $0x1e74] ss:$24 sps:$4 sm:$0xff]   ;;  %v12307_v62 = vld [vmem:[%s12755_s18 + $0x1e70] ss:$24 sps:$4 sm:$0xff]  }
 0x459   : > { %8126 = vmatprep.subr.bf16.mxu1 %v12237_v1  ;;  %v12312_v1 = vld [vmem:[%s12755_s18 + $0x1e44] ss:$24 sps:$4 sm:$0xff]  }
 0x45b   : > { %8086 = vmatpush1.bf16.msra.mxu0 %v12232_v58  ;;  %v12310_v58 = vld [vmem:[%s12755_s18 + $0x1e40] ss:$24 sps:$4 sm:$0xff]  }
 0x45c   : > { %8127 = vmatpush1.bf16.msra.mxu1 %v12235_v63  ;;  %8087 = vmatprep.subr.bf16.mxu0 %v12240_v3  ;;  %v12315_v63 = vld [vmem:[%s12755_s18 + $0x1e14] ss:$24 sps:$4 sm:$0xff]   ;;  %v12313_v3 = vld [vmem:[%s12755_s18 + $0x1e10] ss:$24 sps:$4 sm:$0xff]  }
 0x45d   : > { %8128 = vmatprep.subr.bf16.mxu1 %v12243_v0  ;;  %v12318_v0 = vld [vmem:[%s12755_s18 + $0x20e4] ss:$24 sps:$4 sm:$0xff]  }
 0x45f   : > { %8088 = vmatpush1.bf16.msra.mxu0 %v12238_v2  ;;  %v12316_v2 = vld [vmem:[%s12755_s18 + $0x20e0] ss:$24 sps:$4 sm:$0xff]  }
 0x460   : > { %8129 = vmatpush1.bf16.msra.mxu1 %v12241_v10  ;;  %8089 = vmatprep.subr.bf16.mxu0 %v12246_v8  ;;  %v12321_v10 = vld [vmem:[%s12755_s18 + $0x20b4] ss:$24 sps:$4 sm:$0xff]   ;;  %v12319_v8 = vld [vmem:[%s12755_s18 + $0x20b0] ss:$24 sps:$4 sm:$0xff]  }
 0x461   : > { %8130 = vmatprep.subr.bf16.mxu1 %v12249_v6  ;;  %v12324_v6 = vld [vmem:[%s12755_s18 + $0x2084] ss:$24 sps:$4 sm:$0xff]  }
 0x463   : > { %8090 = vmatpush2.bf16.msra.mxu0 %v12244_v29  ;;  %v12322_v29 = vld [vmem:[%s12755_s18 + $0x2080] ss:$24 sps:$4 sm:$0xff]  }
 0x464   : > { %8131 = vmatpush2.bf16.msra.mxu1 %v12247_v59  ;;  %8091 = vmatprep.subr.bf16.mxu0 %v12252_v4  ;;  %v12327_v59 = vld [vmem:[%s12755_s18 + $0x2054] ss:$24 sps:$4 sm:$0xff]   ;;  %v12325_v4 = vld [vmem:[%s12755_s18 + $0x2050] ss:$24 sps:$4 sm:$0xff]  }
 0x465   : > { %8132 = vmatprep.subr.bf16.mxu1 %v12255_v7  ;;  %v12330_v7 = vld [vmem:[%s12755_s18 + $0x2024] ss:$24 sps:$4 sm:$0xff]  }
 0x467   : > { %8092 = vmatpush2.bf16.msra.mxu0 %v12250_v21  ;;  %v12328_v21 = vld [vmem:[%s12755_s18 + $0x2020] ss:$24 sps:$4 sm:$0xff]  }
 0x468   : > { %8133 = vmatpush2.bf16.msra.mxu1 %v12253_v5  ;;  %8093 = vmatprep.subr.bf16.mxu0 %v12258_v48  ;;  %v12333_v5 = vld [vmem:[%s12755_s18 + $0x1ff4] ss:$24 sps:$4 sm:$0xff]   ;;  %v12331_v48 = vld [vmem:[%s12755_s18 + $0x1ff0] ss:$24 sps:$4 sm:$0xff]  }
 0x469   : > { %8134 = vmatprep.subr.bf16.mxu1 %v12261_v9  ;;  %v12336_v9 = vld [vmem:[%s12755_s18 + $0x1fc4] ss:$24 sps:$4 sm:$0xff]  }
 0x46b   : > { %8094 = vmatpush2.bf16.msra.mxu0 %v12256_v39  ;;  %v12334_v39 = vld [vmem:[%s12755_s18 + $0x1fc0] ss:$24 sps:$4 sm:$0xff]  }
 0x46c   : > { %8135 = vmatpush2.bf16.msra.mxu1 %v12259_v11  ;;  %8095 = vmatprep.subr.bf16.mxu0 %v12264_v40  ;;  %v12339_v11 = vld [vmem:[%s12755_s18 + $0x1f94] ss:$24 sps:$4 sm:$0xff]   ;;  %v12337_v40 = vld [vmem:[%s12755_s18 + $0x1f90] ss:$24 sps:$4 sm:$0xff]  }
 0x46d   : > { %8136 = vmatprep.subr.bf16.mxu1 %v12267_v28 }
 0x46f   : > { %8096 = vmatpush2.bf16.msra.mxu0 %v12262_v14 }
 0x470   : > { %8137 = vmatpush2.bf16.msra.mxu1 %v12265_v37  ;;  %8097 = vmatprep.subr.bf16.mxu0 %v12270_v31 }
 0x471   : > { %8138 = vmatprep.subr.bf16.mxu1 %v12273_v38 }
 0x473   : > { %8098 = vmatpush2.bf16.msra.mxu0 %v12268_v12 }
 0x474   : > { %8139 = vmatpush2.bf16.msra.mxu1 %v12271_v13  ;;  %8099 = vmatprep.subr.bf16.mxu0 %v12276_v15 }
 0x475   : > { %8140 = vmatprep.subr.bf16.mxu1 %v12279_v23 }
 0x477   : > { %8100 = vmatpush2.bf16.msra.mxu0 %v12274_v24 }
 0x478   : > { %8141 = vmatpush2.bf16.msra.mxu1 %v12277_v16  ;;  %8101 = vmatprep.subr.bf16.mxu0 %v12282_v19 }
 0x479   : > { %8142 = vmatprep.subr.bf16.mxu1 %v12285_v20 }
 0x47b   : > { %8102 = vmatpush2.bf16.msra.mxu0 %v12280_v22 }
 0x47c   : > { %8143 = vmatpush2.bf16.msra.mxu1 %v12283_v45  ;;  %8103 = vmatprep.subr.bf16.mxu0 %v12288_v27 }
 0x47d   : > { %8144 = vmatprep.subr.bf16.mxu1 %v12291_v33 }
 0x47f   : > { %8104 = vmatpush2.bf16.msra.mxu0 %v12286_v52 }
 0x480   : > { %8145 = vmatpush2.bf16.msra.mxu1 %v12289_v36  ;;  %8155 = vmatprep.subr.bf16.mxu0 %v12294_v60 }
 0x482   : > { %v7861_v43 = vpop.f32.mrf.mxu0  ;;  %8106 = vmatmul.mubr.bf16.vlgmr.msra.gmra.mxu0 %v13221_v49 }
 0x483   : > { %v7902_v44 = vpop.f32.mrf.mxu1  ;;  %8147 = vmatmul.mubr.bf16.vlgmr.msra.gmra.mxu1 %v13225_v50  ;;  %v7862_v34 = vadd.f32 %v7861_v43, %v13987_v32  ;;  %8156 = vmatpush1.bf16.msra.mxu0 %v12292_v61 }
 0x484   : > { %8187 = vmatprep.mubr.bf16.mxu0 %v13233_v56  ;;  %v7863_v41 = vpop.f32.mrf.mxu0  ;;  %8157 = vmatprep.subr.bf16.mxu0 %v12297_v18 }
 0x485   : > { %v7904_v42 = vpop.f32.mrf.mxu1  ;;  %v7864_v47 = vadd.f32 %v7863_v41, %v13993_v17  ;;  %v14061_v49 = vadd.f32 %v7902_v44, %v7862_v34  ;;  %v12301_v17 = vld [vmem:[%s12755_s18 + $0x1ed0] ss:$24 sps:$4 sm:$0xff]  }
 0x486   : > { %v7865_v25 = vpop.f32.mrf.mxu0 }
 0x487   : > { %v7906_v50 = vpop.f32.mrf.mxu1  ;;  %v14063_v32 = vadd.f32 %v7904_v42, %v7864_v47  ;;  %8158 = vmatpush1.bf16.msra.mxu0 %v12295_v46 }
 0x488   : > { %v7866_v56 = vpop.f32.mrf.mxu0  ;;  %8159 = vmatprep.subr.bf16.mxu0 %v12300_v30 }
 0x489   : > { %v7907_v53 = vpop.f32.mrf.mxu1 }
 0x48b   : > { %8160 = vmatpush1.bf16.msra.mxu0 %v12298_v26  ;;  %v428_v26 = vld [vmem:[#allocation2 + $0x18] sm:$0xff] }
 0x48c   : > { %8161 = vmatprep.subr.bf16.mxu0 %v12303_v51 }
 0x48f   : > { %8162 = vmatpush1.bf16.msra.mxu0 %v12301_v17  ;;  %v429_v17 = vld [vmem:[#allocation2 + $0x20] sm:$0xff] }
 0x490   : > { %8163 = vmatprep.subr.bf16.mxu0 %v12306_v57 }
 0x493   : > { %8164 = vmatpush1.bf16.msra.mxu0 %v12304_v54 }
 0x494   : > { %8165 = vmatprep.subr.bf16.mxu0 %v12309_v55 }
 0x497   : > { %8166 = vmatpush1.bf16.msra.mxu0 %v12307_v62 }
 0x498   : > { %8167 = vmatprep.subr.bf16.mxu0 %v12312_v1 }
 0x49b   : > { %8168 = vmatpush1.bf16.msra.mxu0 %v12310_v58 }
 0x49c   : > { %8169 = vmatprep.subr.bf16.mxu0 %v12315_v63 }
 0x49f   : > { %8170 = vmatpush1.bf16.msra.mxu0 %v12313_v3 }
 0x4a0   : > { %8171 = vmatprep.subr.bf16.mxu0 %v12318_v0 }
 0x4a3   : > { %8172 = vmatpush2.bf16.msra.mxu0 %v12316_v2 }
 0x4a4   : > { %8173 = vmatprep.subr.bf16.mxu0 %v12321_v10 }
 0x4a7   : > { %8174 = vmatpush2.bf16.msra.mxu0 %v12319_v8 }
 0x4a8   : > { %8175 = vmatprep.subr.bf16.mxu0 %v12324_v6 }
 0x4ab   : > { %8176 = vmatpush2.bf16.msra.mxu0 %v12322_v29 }
 0x4ac   : > { %8177 = vmatprep.subr.bf16.mxu0 %v12327_v59 }
 0x4af   : > { %8178 = vmatpush2.bf16.msra.mxu0 %v12325_v4 }
 0x4b0   : > { %8179 = vmatprep.subr.bf16.mxu0 %v12330_v7 }
 0x4b3   : > { %8180 = vmatpush2.bf16.msra.mxu0 %v12328_v21 }
 0x4b4   : > { %8181 = vmatprep.subr.bf16.mxu0 %v12333_v5 }
 0x4b7   : > { %8182 = vmatpush2.bf16.msra.mxu0 %v12331_v48 }
 0x4b8   : > { %8183 = vmatprep.subr.bf16.mxu0 %v12336_v9 }
 0x4bb   : > { %8184 = vmatpush2.bf16.msra.mxu0 %v12334_v39 }
 0x4bc   : > { %8185 = vmatprep.subr.bf16.mxu0 %v12339_v11 }
 0x4bf   : > { %8186 = vmatpush2.bf16.msra.mxu0 %v12337_v40 }
 0x4c2   : > { %v7943_v28 = vpop.f32.mrf.mxu0  ;;  %8188 = vmatmul.mubr.bf16.vlgmr.msra.gmra.mxu0 %v13307_v35 }
 0x4c3   : > { %v7984_v14 = vpop.f32.mrf.mxu1  ;;  %v7944_v37 = vadd.f32 %v7943_v28, %v14061_v49 }
 0x4c4   : > { %v7945_v31 = vpop.f32.mrf.mxu0 }
 0x4c5   : > { %v7986_v38 = vpop.f32.mrf.mxu1  ;;  %v7946_v12 = vadd.f32 %v7945_v31, %v14063_v32  ;;  %v7985_v13 = vadd.f32 %v7984_v14, %v7944_v37 }
 0x4c6   : > { %v7947_v15 = vpop.f32.mrf.mxu0 }
 0x4c7   : > { %v7988_v23 = vpop.f32.mrf.mxu1  ;;  %v7987_v24 = vadd.f32 %v7986_v38, %v7946_v12 }
 0x4c8   : > { %v7948_v16 = vpop.f32.mrf.mxu0 }
 0x4c9   : > { %v7989_v19 = vpop.f32.mrf.mxu1 }
 0x502   : > { %v8025_v20 = vpop.f32.mrf.mxu0 }
 0x503   : > { %v8066_v22 = vpop.f32.mrf.mxu1  ;;  %v8026_v45 = vadd.f32 %v8025_v20, %v7985_v13 }
 0x504   : > { %v8027_v27 = vpop.f32.mrf.mxu0 }
 0x505   : > { %v8068_v33 = vpop.f32.mrf.mxu1  ;;  %v8028_v52 = vadd.f32 %v8027_v27, %v7987_v24  ;;  %v8067_v35 = vadd.f32 %v8066_v22, %v8026_v45 }
 0x506   : > { %v8029_v36 = vpop.f32.mrf.mxu0 }
 0x507   : > { %v8070_v60 = vpop.f32.mrf.mxu1  ;;  %v8069_v61 = vadd.f32 %v8068_v33, %v8028_v52 }
 0x508   : > { %v8030_v18 = vpop.f32.mrf.mxu0 }
 0x509   : > { %v8071_v43 = vpop.f32.mrf.mxu1 }
 0x542   : > { %v8107_v44 = vpop.f32.mrf.mxu0 }
 0x543   : > { %v8148_v34 = vpop.f32.mrf.mxu1  ;;  %v8108_v25 = vadd.f32 %v8107_v44, %v8067_v35 }
 0x544   : > { %v8109_v46 = vpop.f32.mrf.mxu0 }
 0x545   : > { %v8150_v41 = vpop.f32.mrf.mxu1  ;;  %v8110_v50 = vadd.f32 %v8109_v46, %v8069_v61  ;;  %v8149_v32 = vadd.f32 %v8148_v34, %v8108_v25 }
 0x546   : > { %v8111_v42 = vpop.f32.mrf.mxu0 }
 0x547   : > { %v8152_v30 = vpop.f32.mrf.mxu1  ;;  %v8151_v51 = vadd.f32 %v8150_v41, %v8110_v50 }
 0x548   : > { %v8112_v47 = vpop.f32.mrf.mxu0 }
 0x549   : > { %v8153_v49 = vpop.f32.mrf.mxu1 }
 0x582   : > { %v8189_v56 = vpop.f32.mrf.mxu0 }
 0x583   : > { %v8190_v53 = vadd.f32 %v8189_v56, %v8149_v32 }
 0x584   : > { %v8191_v57 = vpop.f32.mrf.mxu0 }
 0x585   : > { %v8200_v54 = vadd.f32 %v8190_v53, %v428_v26  ;;  %v8192_v55 = vadd.f32 %v8191_v57, %v8151_v51  ;;  %8211 = sbr.rel (%p10420_p12) target bundleno = 1981 (0x7bd), region = 80 }
 0x586   : > { %v8193_v62 = vpop.f32.mrf.mxu0 }
 0x587   : > { %8206 = vst [vmem:[#allocation2 + $0x18] sm:$0xff] %v8200_v54  ;;  %v8201_v1 = vadd.f32 %v8192_v55, %v429_v17 }
 0x588   : > { %v8194_v58 = vpop.f32.mrf.mxu0 }
 0x589   : > { %8207 = vst [vmem:[#allocation2 + $0x20] sm:$0xff] %v8201_v1 }
 0x58a   : > { %v8308_v63 = vld [vmem:[#allocation7 + $0x170] sm:$0xff]  ;;  %v8307_v0 = vld [vmem:[#allocation7 + $0x168] sm:$0xff]  ;;  %v8305_v10 = vld [vmem:[#allocation7 + $0x158] sm:$0xff]  ;;  %vm12574_vm0 = vmmov 0  }
 0x58b   : > { %v8404_v3 = vld [vmem:[#allocation7 + $0x470] sm:$0xff]  ;;  %8567 = vmatprep.subr.mxu0 %v8308_v63  ;;  %v8403_v2 = vld [vmem:[#allocation7 + $0x468] sm:$0xff]  ;;  %v8401_v8 = vld [vmem:[#allocation7 + $0x458] sm:$0xff] }
 0x58c   : > { %8638 = vmatprep.subr.mxu1 %v8404_v3  ;;  %8568 = vmatpush1.msra.mxu0 %v8307_v0  ;;  %v8304_v6 = vld [vmem:[#allocation7 + $0x150] sm:$0xff]  ;;  %v8302_v59 = vld [vmem:[#allocation7 + $0x140] sm:$0xff]  ;;  %v8301_v7 = vld [vmem:[#allocation7 + $0x138] sm:$0xff] }
 0x58d   : > { %8639 = vmatpush1.msra.mxu1 %v8403_v2  ;;  %v8400_v29 = vld [vmem:[#allocation7 + $0x450] sm:$0xff]  ;;  %8569 = vmatprep.subr.mxu0 %v8305_v10  ;;  %v8398_v4 = vld [vmem:[#allocation7 + $0x440] sm:$0xff]  ;;  %v8397_v21 = vld [vmem:[#allocation7 + $0x438] sm:$0xff] }
 0x58e   : > { %8640 = vmatprep.subr.mxu1 %v8401_v8  ;;  %8570 = vmatpush1.msra.mxu0 %v8304_v6  ;;  %v8299_v5 = vld [vmem:[#allocation7 + $0x128] sm:$0xff]  ;;  %v8298_v9 = vld [vmem:[#allocation7 + $0x120] sm:$0xff]  ;;  %v8296_v11 = vld [vmem:[#allocation7 + $0x110] sm:$0xff] }
 0x58f   : > { %8641 = vmatpush1.msra.mxu1 %v8400_v29  ;;  %v8395_v48 = vld [vmem:[#allocation7 + $0x428] sm:$0xff]  ;;  %8571 = vmatprep.subr.mxu0 %v8302_v59  ;;  %v8394_v39 = vld [vmem:[#allocation7 + $0x420] sm:$0xff]  ;;  %v8392_v40 = vld [vmem:[#allocation7 + $0x410] sm:$0xff] }
 0x590   : > { %8642 = vmatprep.subr.mxu1 %v8398_v4  ;;  %8572 = vmatpush1.msra.mxu0 %v8301_v7  ;;  %v8295_v28 = vld [vmem:[#allocation7 + $0x108] sm:$0xff]  ;;  %v8293_v37 = vld [vmem:[#allocation7 + $0xf8] sm:$0xff]  ;;  %v8292_v38 = vld [vmem:[#allocation7 + $0xf0] sm:$0xff]  ;;  %v8220_v7 = vlaneseq }
 0x591   : > { %8643 = vmatpush1.msra.mxu1 %v8397_v21  ;;  %8573 = vmatprep.subr.mxu0 %v8299_v5  ;;  %v8391_v14 = vld [vmem:[#allocation7 + $0x408] sm:$0xff]  ;;  %v8389_v31 = vld [vmem:[#allocation7 + $0x3f8] sm:$0xff]  ;;  %v8388_v12 = vld [vmem:[#allocation7 + $0x3f0] sm:$0xff] }
 0x592   : > { %8644 = vmatprep.subr.mxu1 %v8395_v48  ;;  %8574 = vmatpush1.msra.mxu0 %v8298_v9  ;;  %v8290_v13 = vld [vmem:[#allocation7 + $0xe0] sm:$0xff]  ;;  %v8289_v23 = vld [vmem:[#allocation7 + $0xd8] sm:$0xff]  ;;  %v8287_v16 = vld [vmem:[#allocation7 + $0xc8] sm:$0xff] }
 0x593   : > { %8645 = vmatpush1.msra.mxu1 %v8394_v39  ;;  %8575 = vmatprep.subr.mxu0 %v8296_v11  ;;  %v8386_v15 = vld [vmem:[#allocation7 + $0x3e0] sm:$0xff]  ;;  %v8385_v24 = vld [vmem:[#allocation7 + $0x3d8] sm:$0xff]  ;;  %v8383_v19 = vld [vmem:[#allocation7 + $0x3c8] sm:$0xff] }
 0x594   : > { %8646 = vmatprep.subr.mxu1 %v8392_v40  ;;  %8576 = vmatpush1.msra.mxu0 %v8295_v28  ;;  %v8286_v20 = vld [vmem:[#allocation7 + $0xc0] sm:$0xff]  ;;  %v8284_v45 = vld [vmem:[#allocation7 + $0xb0] sm:$0xff]  ;;  %v8283_v33 = vld [vmem:[#allocation7 + $0xa8] sm:$0xff] }
 0x595   : > { %8647 = vmatpush1.msra.mxu1 %v8391_v14  ;;  %8577 = vmatprep.subr.mxu0 %v8293_v37  ;;  %v8382_v22 = vld [vmem:[#allocation7 + $0x3c0] sm:$0xff]  ;;  %v8380_v27 = vld [vmem:[#allocation7 + $0x3b0] sm:$0xff]  ;;  %v8379_v52 = vld [vmem:[#allocation7 + $0x3a8] sm:$0xff]  ;;  %v14096_v14 = vshrl.u32 %v8220_v7, 7 }
 0x596   : > { %8648 = vmatprep.subr.mxu1 %v8389_v31  ;;  %8578 = vmatpush1.msra.mxu0 %v8292_v38  ;;  %v8281_v35 = vld [vmem:[#allocation7 + $0x98] sm:$0xff]  ;;  %v8280_v60 = vld [vmem:[#allocation7 + $0x90] sm:$0xff]  ;;  %v8278_v18 = vld [vmem:[#allocation7 + $0x80] sm:$0xff] }
 0x597   : > { %8649 = vmatpush1.msra.mxu1 %v8388_v12  ;;  %8579 = vmatprep.subr.mxu0 %v8290_v13  ;;  %v8377_v36 = vld [vmem:[#allocation7 + $0x398] sm:$0xff]  ;;  %v8376_v61 = vld [vmem:[#allocation7 + $0x390] sm:$0xff]  ;;  %v8374_v43 = vld [vmem:[#allocation7 + $0x380] sm:$0xff]  ;;  %v8242_v13 = vsub.s32 5, %v14096_v14 }
 0x598   : > { %8650 = vmatprep.subr.mxu1 %v8386_v15  ;;  %8580 = vmatpush1.msra.mxu0 %v8289_v23  ;;  %v8277_v44 = vld [vmem:[#allocation7 + $0x78] sm:$0xff]  ;;  %v8275_v46 = vld [vmem:[#allocation7 + $0x68] sm:$0xff]  ;;  %v8274_v42 = vld [vmem:[#allocation7 + $0x60] sm:$0xff]  ;;  %v8238_v15 = vsub.s32 4, %v14096_v14 }
 0x599   : > { %8651 = vmatpush1.msra.mxu1 %v8385_v24  ;;  %8581 = vmatprep.subr.mxu0 %v8287_v16  ;;  %v8373_v34 = vld [vmem:[#allocation7 + $0x378] sm:$0xff]  ;;  %v8371_v41 = vld [vmem:[#allocation7 + $0x368] sm:$0xff]  ;;  %v8370_v30 = vld [vmem:[#allocation7 + $0x360] sm:$0xff] }
 0x59a   : > { %8652 = vmatprep.subr.mxu1 %v8383_v19  ;;  %8582 = vmatpush1.msra.mxu0 %v8286_v20  ;;  %v8272_v47 = vld [vmem:[#allocation7 + $0x50] sm:$0xff]  ;;  %v8271_v25 = vld [vmem:[#allocation7 + $0x48] sm:$0xff]  ;;  %v8269_v32 = vld [vmem:[#allocation7 + $0x38] sm:$0xff] }
 0x59b   : > { %8653 = vmatpush1.msra.mxu1 %v8382_v22  ;;  %8583 = vmatprep.subr.mxu0 %v8284_v45  ;;  %v8368_v49 = vld [vmem:[#allocation7 + $0x350] sm:$0xff]  ;;  %v8367_v50 = vld [vmem:[#allocation7 + $0x348] sm:$0xff]  ;;  %v8365_v26 = vld [vmem:[#allocation7 + $0x338] sm:$0xff] }
 0x59c   : > { %8654 = vmatprep.subr.mxu1 %v8380_v27  ;;  %8584 = vmatpush1.msra.mxu0 %v8283_v33  ;;  %v8268_v56 = vld [vmem:[#allocation7 + $0x30] sm:$0xff]  ;;  %v8266_v53 = vld [vmem:[#allocation7 + $0x20] sm:$0xff]  ;;  %v8265_v57 = vld [vmem:[#allocation7 + $0x18] sm:$0xff] }
 0x59d   : > { %8655 = vmatpush1.msra.mxu1 %v8379_v52  ;;  %8585 = vmatprep.subr.mxu0 %v8281_v35  ;;  %v8364_v51 = vld [vmem:[#allocation7 + $0x330] sm:$0xff]  ;;  %v8362_v17 = vld [vmem:[#allocation7 + $0x320] sm:$0xff]  ;;  %v8361_v54 = vld [vmem:[#allocation7 + $0x318] sm:$0xff] }
 0x59e   : > { %8656 = vmatprep.subr.mxu1 %v8377_v36  ;;  %8586 = vmatpush1.msra.mxu0 %v8280_v60  ;;  %v8263_v55 = vld [vmem:[#allocation7 + $0x8] sm:$0xff]  ;;  %v8262_v1 = vld [vmem:[#allocation7] sm:$0xff]  ;;  %v8356_v63 = vld [vmem:[#allocation7 + $0x2f0] sm:$0xff] }
 0x59f   : > { %8657 = vmatpush1.msra.mxu1 %v8376_v61  ;;  %8587 = vmatprep.subr.mxu0 %v8278_v18  ;;  %v8359_v62 = vld [vmem:[#allocation7 + $0x308] sm:$0xff]  ;;  %v8358_v58 = vld [vmem:[#allocation7 + $0x300] sm:$0xff]  ;;  %v8452_v3 = vld [vmem:[#allocation7 + $0x5f0] sm:$0xff] }
 0x5a0   : > { %8658 = vmatprep.subr.mxu1 %v8374_v43  ;;  %8588 = vmatpush1.msra.mxu0 %v8277_v44  ;;  %v8355_v0 = vld [vmem:[#allocation7 + $0x2e8] sm:$0xff]  ;;  %v8353_v10 = vld [vmem:[#allocation7 + $0x2d8] sm:$0xff]  ;;  %v8352_v6 = vld [vmem:[#allocation7 + $0x2d0] sm:$0xff] }
 0x5a1   : > { %8659 = vmatpush1.msra.mxu1 %v8373_v34  ;;  %8589 = vmatprep.subr.mxu0 %v8275_v46  ;;  %v8451_v2 = vld [vmem:[#allocation7 + $0x5e8] sm:$0xff]  ;;  %v8449_v8 = vld [vmem:[#allocation7 + $0x5d8] sm:$0xff]  ;;  %v8448_v29 = vld [vmem:[#allocation7 + $0x5d0] sm:$0xff] }
 0x5a2   : > { %8660 = vmatprep.subr.mxu1 %v8371_v41  ;;  %8590 = vmatpush1.msra.mxu0 %v8274_v42  ;;  %v8350_v59 = vld [vmem:[#allocation7 + $0x2c0] sm:$0xff]  ;;  %v8349_v21 = vld [vmem:[#allocation7 + $0x2b8] sm:$0xff]  ;;  %v8347_v48 = vld [vmem:[#allocation7 + $0x2a8] sm:$0xff]  ;;  %v8226_v41 = vsub.s32 1, %v14096_v14 }
 0x5a3   : > { %8661 = vmatpush1.msra.mxu1 %v8370_v30  ;;  %8591 = vmatprep.subr.mxu0 %v8272_v47  ;;  %v8446_v4 = vld [vmem:[#allocation7 + $0x5c0] sm:$0xff]  ;;  %v8445_v5 = vld [vmem:[#allocation7 + $0x5b8] sm:$0xff]  ;;  %v8443_v9 = vld [vmem:[#allocation7 + $0x5a8] sm:$0xff]  ;;  %v8222_v47 = vsub.s32 0, %v14096_v14 }
 0x5a4   : > { %8662 = vmatprep.subr.mxu1 %v8368_v49  ;;  %8592 = vmatpush1.msra.mxu0 %v8271_v25  ;;  %v8346_v39 = vld [vmem:[#allocation7 + $0x2a0] sm:$0xff]  ;;  %v8344_v40 = vld [vmem:[#allocation7 + $0x290] sm:$0xff]  ;;  %v8343_v37 = vld [vmem:[#allocation7 + $0x288] sm:$0xff] }
 0x5a5   : > { %8663 = vmatpush1.msra.mxu1 %v8367_v50  ;;  %8593 = vmatprep.subr.mxu0 %v8269_v32  ;;  %v8442_v11 = vld [vmem:[#allocation7 + $0x5a0] sm:$0xff]  ;;  %v8440_v28 = vld [vmem:[#allocation7 + $0x590] sm:$0xff]  ;;  %v8439_v31 = vld [vmem:[#allocation7 + $0x588] sm:$0xff]  ;;  %v8234_v50 = vsub.s32 3, %v14096_v14 }
 0x5a6   : > { %8664 = vmatprep.subr.mxu1 %v8365_v26  ;;  %8594 = vmatpush1.msra.mxu0 %v8268_v56  ;;  %v8341_v38 = vld [vmem:[#allocation7 + $0x278] sm:$0xff]  ;;  %v8340_v23 = vld [vmem:[#allocation7 + $0x270] sm:$0xff]  ;;  %v8338_v16 = vld [vmem:[#allocation7 + $0x260] sm:$0xff]  ;;  %v8230_v56 = vsub.s32 2, %v14096_v14 }
 0x5a7   : > { %8665 = vmatpush1.msra.mxu1 %v8364_v51  ;;  %8595 = vmatprep.subr.mxu0 %v8266_v53  ;;  %v8437_v12 = vld [vmem:[#allocation7 + $0x578] sm:$0xff]  ;;  %v8436_v24 = vld [vmem:[#allocation7 + $0x570] sm:$0xff]  ;;  %v8434_v19 = vld [vmem:[#allocation7 + $0x560] sm:$0xff] }
 0x5a8   : > { %8666 = vmatprep.subr.mxu1 %v8362_v17  ;;  %8596 = vmatpush1.msra.mxu0 %v8265_v57  ;;  %v8337_v20 = vld [vmem:[#allocation7 + $0x258] sm:$0xff]  ;;  %v8335_v27 = vld [vmem:[#allocation7 + $0x248] sm:$0xff]  ;;  %v8334_v36 = vld [vmem:[#allocation7 + $0x240] sm:$0xff] }
 0x5a9   : > { %8667 = vmatpush1.msra.mxu1 %v8361_v54  ;;  %8597 = vmatprep.subr.mxu0 %v8263_v55  ;;  %v8433_v22 = vld [vmem:[#allocation7 + $0x558] sm:$0xff]  ;;  %v8431_v33 = vld [vmem:[#allocation7 + $0x548] sm:$0xff]  ;;  %v8430_v60 = vld [vmem:[#allocation7 + $0x540] sm:$0xff] }
 0x5aa   : > { %8668 = vmatprep.subr.mxu1 %v8359_v62  ;;  %8598 = vmatpush1.msra.mxu0 %v8262_v1  ;;  %v8218_v45 = vld [vmem:[#allocation5] sm:$0x3f]  ;;  %v8332_v61 = vld [vmem:[#allocation7 + $0x230] sm:$0xff]  ;;  %v8331_v43 = vld [vmem:[#allocation7 + $0x228] sm:$0xff] }
 0x5ab   : > { %8669 = vmatpush1.msra.mxu1 %v8358_v58  ;;  %8599 = vmatprep.subr.mxu0 %v8356_v63  ;;  %v14100_v52 = vrot.slane %v8218_v45, %v8242_v13  ;;  %v14102_v35 = vrot.slane %v8218_v45, %v8238_v15  ;;  %v8428_v18 = vld [vmem:[#allocation7 + $0x530] sm:$0xff]  ;;  %v8427_v44 = vld [vmem:[#allocation7 + $0x528] sm:$0xff]  ;;  %v8329_v34 = vld [vmem:[#allocation7 + $0x218] sm:$0xff]  ;;  %v8227_v17 = vrot.slane %v8218_v45, %v8226_v41 }
 0x5ac   : > { %8670 = vmatprep.subr.mxu1 %v8452_v3  ;;  %8600 = vmatpush2.msra.mxu0 %v8355_v0  ;;  %v8425_v46 = vld [vmem:[#allocation7 + $0x518] sm:$0xff]  ;;  %v8328_v42 = vld [vmem:[#allocation7 + $0x210] sm:$0xff]  ;;  %v8326_v49 = vld [vmem:[#allocation7 + $0x200] sm:$0xff]  ;;  %v8223_v62 = vrot.slane %v8218_v45, %v8222_v47  ;;  %v8235_v3 = vrot.slane %v8218_v45, %v8234_v50 }
 0x5ad   : > { %8671 = vmatpush2.msra.mxu1 %v8451_v2  ;;  %8601 = vmatprep.subr.mxu0 %v8353_v10  ;;  %v8424_v30 = vld [vmem:[#allocation7 + $0x510] sm:$0xff]  ;;  %v8422_v25 = vld [vmem:[#allocation7 + $0x500] sm:$0xff]  ;;  %v8325_v32 = vld [vmem:[#allocation7 + $0x1f8] sm:$0xff] }
 0x5ae   : > { %8672 = vmatprep.subr.mxu1 %v8449_v8  ;;  %8602 = vmatpush2.msra.mxu0 %v8352_v6  ;;  %v8421_v26 = vld [vmem:[#allocation7 + $0x4f8] sm:$0xff]  ;;  %v8323_v51 = vld [vmem:[#allocation7 + $0x1e8] sm:$0xff]  ;;  %v8322_v57 = vld [vmem:[#allocation7 + $0x1e0] sm:$0xff]  ;;  %v8231_v8 = vrot.slane %v8218_v45, %v8230_v56 }
 0x5af   : > { %8673 = vmatpush2.msra.mxu1 %v8448_v29  ;;  %8603 = vmatprep.subr.mxu0 %v8350_v59  ;;  %v8419_v53 = vld [vmem:[#allocation7 + $0x4e8] sm:$0xff]  ;;  %v8418_v54 = vld [vmem:[#allocation7 + $0x4e0] sm:$0xff]  ;;  %v8320_v1 = vld [vmem:[#allocation7 + $0x1d0] sm:$0xff] }
 0x5b0   : > { %8674 = vmatprep.subr.mxu1 %v8446_v4  ;;  %8604 = vmatpush2.msra.mxu0 %v8349_v21  ;;  %v8213_v55 = vld [vmem:[#allocation2 + $0x10] sm:$0xff]  ;;  %v8416_v58 = vld [vmem:[#allocation7 + $0x4d0] sm:$0xff]  ;;  %v8319_v0 = vld [vmem:[#allocation7 + $0x1c8] sm:$0xff] }
 0x5b1   : > { %8675 = vmatpush2.msra.mxu1 %v8445_v5  ;;  %8605 = vmatprep.subr.mxu0 %v8347_v48  ;;  %v8212_v63 = vld [vmem:[#allocation2 + $0x28] sm:$0xff]  ;;  %v8415_v2 = vld [vmem:[#allocation7 + $0x4c8] sm:$0xff]  ;;  %v14114_v59 = vadd.f32 %v8227_v17, %v8213_v55  ;;  %v8314_v48 = vld [vmem:[#allocation7 + $0x1a0] sm:$0xff] }
 0x5b2   : > { %8676 = vmatprep.subr.mxu1 %v8443_v9  ;;  %8606 = vmatpush2.msra.mxu0 %v8346_v39  ;;  %v8215_v10 = vld [vmem:[#allocation2] sm:$0xff]  ;;  %v8317_v6 = vld [vmem:[#allocation7 + $0x1b8] sm:$0xff]  ;;  %v14116_v5 = vadd.f32 %v8223_v62, %v8212_v63  ;;  %v8410_v9 = vld [vmem:[#allocation7 + $0x4a0] sm:$0xff] }
 0x5b3   : > { %8677 = vmatpush2.msra.mxu1 %v8442_v11  ;;  %8607 = vmatprep.subr.mxu0 %v8344_v40  ;;  %v8413_v29 = vld [vmem:[#allocation7 + $0x4b8] sm:$0xff]  ;;  %v8316_v7 = vld [vmem:[#allocation7 + $0x1b0] sm:$0xff]  ;;  %v14118_v39 = vadd.f32 %v8235_v3, %v8215_v10  ;;  %v8406_v15 = vld [vmem:[#allocation7 + $0x480] sm:$0xff] }
 0x5b4   : > { %8678 = vmatprep.subr.mxu1 %v8440_v28  ;;  %8608 = vmatpush2.msra.mxu0 %v8343_v37  ;;  %v8214_v4 = vld [vmem:[#allocation2 + $0x8] sm:$0xff]  ;;  %v8311_v37 = vld [vmem:[#allocation7 + $0x188] sm:$0xff]  ;;  %v8256_v13 = vmax.f32 %v14116_v5, 0.0  ;;  %v8482_v17 = vld [vmem:[#allocation7 + $0x6e0] sm:$0xff] }
 0x5b5   : > { %8679 = vmatpush2.msra.mxu1 %v8439_v31  ;;  %8609 = vmatprep.subr.mxu0 %v8341_v38  ;;  %v8412_v21 = vld [vmem:[#allocation7 + $0x4b0] sm:$0xff]  ;;  %v8313_v11 = vld [vmem:[#allocation7 + $0x198] sm:$0xff]  ;;  %v14120_v28 = vadd.f32 %v8231_v8, %v8214_v4  ;;  %v8407_v31 = vld [vmem:[#allocation7 + $0x488] sm:$0xff]  ;;  %v8257_v38 = vmax.f32 %v14114_v59, 0.0 }
 0x5b6   : > { %8680 = vmatprep.subr.mxu1 %v8437_v12  ;;  %8610 = vmatpush2.msra.mxu0 %v8340_v23  ;;  %v8409_v40 = vld [vmem:[#allocation7 + $0x498] sm:$0xff]  ;;  %v8310_v12 = vld [vmem:[#allocation7 + $0x180] sm:$0xff]  ;;  %v8259_v23 = vmax.f32 %v14118_v39, 0.0  ;;  %v8291_v55 = vld [vmem:[#allocation7 + $0xe8] sm:$0xff] }
 0x5b7   : > { %8681 = vmatpush2.msra.mxu1 %v8436_v24  ;;  %8611 = vmatprep.subr.mxu0 %v8338_v16  ;;  %v8500_v24 = vld [vmem:[#allocation7 + $0x770] sm:$0xff]  ;;  %v8258_v16 = vmax.f32 %v14120_v28, 0.0  ;;  %v8497_v45 = vld [vmem:[#allocation7 + $0x758] sm:$0xff]  ;;  %v8479_v62 = vld [vmem:[#allocation7 + $0x6c8] sm:$0xff] }
 0x5b8   : > { %8682 = vmatprep.subr.mxu1 %v8434_v19  ;;  %8612 = vmatpush2.msra.mxu0 %v8337_v20  ;;  %v8357_v19 = vld [vmem:[#allocation7 + $0x2f8] sm:$0xff]  ;;  %v8499_v20 = vld [vmem:[#allocation7 + $0x768] sm:$0xff]  ;;  %v8288_v63 = vld [vmem:[#allocation7 + $0xd0] sm:$0xff] }
 0x5b9   : > { %8683 = vmatpush2.msra.mxu1 %v8433_v22  ;;  %8613 = vmatprep.subr.mxu0 %v8335_v27  ;;  %v8309_v22 = vld [vmem:[#allocation7 + $0x178] sm:$0xff]  ;;  %v8354_v27 = vld [vmem:[#allocation7 + $0x2e0] sm:$0xff]  ;;  %v8476_v3 = vld [vmem:[#allocation7 + $0x6b0] sm:$0xff] }
 0x5ba   : > { %8684 = vmatprep.subr.mxu1 %v8431_v33  ;;  %8614 = vmatpush2.msra.mxu0 %v8334_v36  ;;  %v8496_v33 = vld [vmem:[#allocation7 + $0x750] sm:$0xff]  ;;  %v8306_v36 = vld [vmem:[#allocation7 + $0x160] sm:$0xff]  ;;  %v8297_v50 = vld [vmem:[#allocation7 + $0x118] sm:$0xff] }
 0x5bb   : > { %8685 = vmatpush2.msra.mxu1 %v8430_v60  ;;  %8615 = vmatprep.subr.mxu0 %v8332_v61  ;;  %v8494_v60 = vld [vmem:[#allocation7 + $0x740] sm:$0xff]  ;;  %v8351_v61 = vld [vmem:[#allocation7 + $0x2c8] sm:$0xff]  ;;  %v8285_v10 = vld [vmem:[#allocation7 + $0xb8] sm:$0xff] }
 0x5bc   : > { %8686 = vmatprep.subr.mxu1 %v8428_v18  ;;  %8616 = vmatpush2.msra.mxu0 %v8331_v43  ;;  %v8493_v18 = vld [vmem:[#allocation7 + $0x738] sm:$0xff]  ;;  %v8303_v43 = vld [vmem:[#allocation7 + $0x148] sm:$0xff]  ;;  %v8282_v4 = vld [vmem:[#allocation7 + $0xa0] sm:$0xff] }
 0x5bd   : > { %8687 = vmatpush2.msra.mxu1 %v8427_v44  ;;  %8617 = vmatprep.subr.mxu0 %v8329_v34  ;;  %v8491_v44 = vld [vmem:[#allocation7 + $0x728] sm:$0xff]  ;;  %v8348_v34 = vld [vmem:[#allocation7 + $0x2b0] sm:$0xff]  ;;  %v8473_v8 = vld [vmem:[#allocation7 + $0x698] sm:$0xff] }
 0x5be   : > { %8688 = vmatprep.subr.mxu1 %v8425_v46  ;;  %8618 = vmatpush2.msra.mxu0 %v8328_v42  ;;  %v8490_v46 = vld [vmem:[#allocation7 + $0x720] sm:$0xff]  ;;  %v8300_v42 = vld [vmem:[#allocation7 + $0x130] sm:$0xff]  ;;  %v8399_v59 = vld [vmem:[#allocation7 + $0x448] sm:$0xff] }
 0x5bf   : > { %8689 = vmatpush2.msra.mxu1 %v8424_v30  ;;  %8619 = vmatprep.subr.mxu0 %v8326_v49  ;;  %v8488_v30 = vld [vmem:[#allocation7 + $0x710] sm:$0xff]  ;;  %v8345_v49 = vld [vmem:[#allocation7 + $0x298] sm:$0xff]  ;;  %v8535_v5 = vld [vmem:[#allocation7 + $0x888] sm:$0xff] }
 0x5c0   : > { %8690 = vmatprep.subr.mxu1 %v8422_v25  ;;  %8620 = vmatpush2.msra.mxu0 %v8325_v32  ;;  %v8487_v25 = vld [vmem:[#allocation7 + $0x708] sm:$0xff]  ;;  %v8485_v32 = vld [vmem:[#allocation7 + $0x6f8] sm:$0xff] }
 0x5c1   : > { %8691 = vmatpush2.msra.mxu1 %v8421_v26  ;;  %8621 = vmatprep.subr.mxu0 %v8323_v51  ;;  %v8342_v26 = vld [vmem:[#allocation7 + $0x280] sm:$0xff]  ;;  %v8484_v51 = vld [vmem:[#allocation7 + $0x6f0] sm:$0xff]  ;;  %v8495_v39 = vld [vmem:[#allocation7 + $0x748] sm:$0xff] }
 0x5c2   : > { %8692 = vmatprep.subr.mxu1 %v8419_v53  ;;  %8622 = vmatpush2.msra.mxu0 %v8322_v57  ;;  %v8294_v53 = vld [vmem:[#allocation7 + $0x100] sm:$0xff]  ;;  %v8339_v57 = vld [vmem:[#allocation7 + $0x268] sm:$0xff] }
 0x5c3   : > { %8693 = vmatpush2.msra.mxu1 %v8418_v54  ;;  %8623 = vmatprep.subr.mxu0 %v8320_v1  ;;  %v8481_v54 = vld [vmem:[#allocation7 + $0x6d8] sm:$0xff]  ;;  %v8336_v1 = vld [vmem:[#allocation7 + $0x250] sm:$0xff] }
 0x5c4   : > { %8694 = vmatprep.subr.mxu1 %v8416_v58  ;;  %8624 = vmatpush2.msra.mxu0 %v8319_v0  ;;  %v8478_v58 = vld [vmem:[#allocation7 + $0x6c0] sm:$0xff]  ;;  %v8333_v0 = vld [vmem:[#allocation7 + $0x238] sm:$0xff]  ;;  %v9006_v28 = vld [vmem:[#allocation10 + $0x68] sm:$0xff] }
 0x5c5   : > { %8695 = vmatpush2.msra.mxu1 %v8415_v2  ;;  %8625 = vmatprep.subr.mxu0 %v8317_v6  ;;  %v8475_v2 = vld [vmem:[#allocation7 + $0x6a8] sm:$0xff]  ;;  %v8330_v6 = vld [vmem:[#allocation7 + $0x220] sm:$0xff] }
 0x5c6   : > { %8696 = vmatprep.subr.mxu1 %v8413_v29  ;;  %8626 = vmatpush2.msra.mxu0 %v8316_v7  ;;  %v8472_v29 = vld [vmem:[#allocation7 + $0x690] sm:$0xff]  ;;  %v8470_v7 = vld [vmem:[#allocation7 + $0x680] sm:$0xff] }
 0x5c7   : > { %8697 = vmatpush2.msra.mxu1 %v8412_v21  ;;  %8627 = vmatprep.subr.mxu0 %v8314_v48  ;;  %v8327_v21 = vld [vmem:[#allocation7 + $0x208] sm:$0xff]  ;;  %v8469_v48 = vld [vmem:[#allocation7 + $0x678] sm:$0xff] }
 0x5c8   : > { %8698 = vmatprep.subr.mxu1 %v8410_v9  ;;  %8628 = vmatpush2.msra.mxu0 %v8313_v11  ;;  %v8279_v9 = vld [vmem:[#allocation7 + $0x88] sm:$0xff] }
 0x5c9   : > { %8699 = vmatpush2.msra.mxu1 %v8409_v40  ;;  %8629 = vmatprep.subr.mxu0 %v8311_v37  ;;  %v8467_v11 = vld [vmem:[#allocation7 + $0x668] sm:$0xff]  ;;  %v8324_v40 = vld [vmem:[#allocation7 + $0x1f0] sm:$0xff]  ;;  %v8466_v37 = vld [vmem:[#allocation7 + $0x660] sm:$0xff] }
 0x5ca   : > { %8700 = vmatprep.subr.mxu1 %v8407_v31  ;;  %8630 = vmatpush2.msra.mxu0 %v8310_v12  ;;  %v8276_v31 = vld [vmem:[#allocation7 + $0x70] sm:$0xff] }
 0x5cb   : > { %8631 = vmatprep.mubr.f32.mxu0 %v8257_v38  ;;  %8701 = vmatpush2.msra.mxu1 %v8406_v15  ;;  %v8464_v12 = vld [vmem:[#allocation7 + $0x650] sm:$0xff]  ;;  %v8321_v15 = vld [vmem:[#allocation7 + $0x1d8] sm:$0xff] }
 0x5cc   : > { %8632 = vmatmul.mubr.f32.vlgmr.msra.gmra.mxu0 %v8256_v13  ;;  %8702 = vmatprep.mubr.f32.mxu1 %v8259_v23 }
 0x5cd   : > { %8709 = vmatprep.subr.mxu0 %v8500_v24  ;;  %10425 = vmatprep.subr.mxu1 %v8357_v19  ;;  %v8463_v24 = vld [vmem:[#allocation7 + $0x648] sm:$0xff]  ;;  %v8273_v19 = vld [vmem:[#allocation7 + $0x58] sm:$0xff] }
 0x5ce   : > { %8703 = vmatmul.mubr.f32.vlgmr.msra.gmra.mxu1 %v8258_v16  ;;  %8710 = vmatpush1.msra.mxu0 %v8499_v20  ;;  %v8461_v20 = vld [vmem:[#allocation7 + $0x638] sm:$0xff] }
 0x5cf   : > { %10426 = vmatpush3.msra.mxu1 %v8309_v22  ;;  %8711 = vmatprep.subr.mxu0 %v8497_v45  ;;  %v8318_v22 = vld [vmem:[#allocation7 + $0x1c0] sm:$0xff]  ;;  %v8460_v45 = vld [vmem:[#allocation7 + $0x630] sm:$0xff] }
 0x5d0   : > { %10427 = vmatprep.subr.mxu1 %v8354_v27  ;;  %8712 = vmatpush1.msra.mxu0 %v8496_v33  ;;  %v8270_v27 = vld [vmem:[#allocation7 + $0x40] sm:$0xff] }
 0x5d1   : > { %10428 = vmatpush3.msra.mxu1 %v8306_v36  ;;  %8713 = vmatprep.subr.mxu0 %v8494_v60  ;;  %v8458_v33 = vld [vmem:[#allocation7 + $0x620] sm:$0xff]  ;;  %v8315_v36 = vld [vmem:[#allocation7 + $0x1a8] sm:$0xff]  ;;  %v8457_v60 = vld [vmem:[#allocation7 + $0x618] sm:$0xff] }
 0x5d2   : > { %10429 = vmatprep.subr.mxu1 %v8351_v61  ;;  %8714 = vmatpush1.msra.mxu0 %v8493_v18  ;;  %v8267_v61 = vld [vmem:[#allocation7 + $0x28] sm:$0xff] }
 0x5d3   : > { %10430 = vmatpush3.msra.mxu1 %v8303_v43  ;;  %8715 = vmatprep.subr.mxu0 %v8491_v44  ;;  %v8455_v18 = vld [vmem:[#allocation7 + $0x608] sm:$0xff]  ;;  %v8312_v43 = vld [vmem:[#allocation7 + $0x190] sm:$0xff]  ;;  %v8454_v44 = vld [vmem:[#allocation7 + $0x600] sm:$0xff] }
 0x5d4   : > { %10431 = vmatprep.subr.mxu1 %v8348_v34  ;;  %8716 = vmatpush1.msra.mxu0 %v8490_v46  ;;  %v8264_v34 = vld [vmem:[#allocation7 + $0x10] sm:$0xff] }
 0x5d5   : > { %10432 = vmatpush3.msra.mxu1 %v8300_v42  ;;  %8717 = vmatprep.subr.mxu0 %v8488_v30  ;;  %v8548_v46 = vld [vmem:[#allocation7 + $0x8f0] sm:$0xff]  ;;  %v8453_v42 = vld [vmem:[#allocation7 + $0x5f8] sm:$0xff]  ;;  %v8547_v30 = vld [vmem:[#allocation7 + $0x8e8] sm:$0xff] }
 0x5d6   : > { %10433 = vmatprep.subr.mxu1 %v8345_v49  ;;  %8718 = vmatpush1.msra.mxu0 %v8487_v25  ;;  %v8545_v49 = vld [vmem:[#allocation7 + $0x8d8] sm:$0xff] }
 0x5d7   : > { %10434 = vmatpush3.msra.mxu1 %v8297_v50  ;;  %8719 = vmatprep.subr.mxu0 %v8485_v32  ;;  %v8405_v25 = vld [vmem:[#allocation7 + $0x478] sm:$0xff]  ;;  %v8544_v50 = vld [vmem:[#allocation7 + $0x8d0] sm:$0xff]  ;;  %v8450_v32 = vld [vmem:[#allocation7 + $0x5e0] sm:$0xff] }
 0x5d8   : > { %10435 = vmatprep.subr.mxu1 %v8342_v26  ;;  %8720 = vmatpush1.msra.mxu0 %v8484_v51  ;;  %v8542_v26 = vld [vmem:[#allocation7 + $0x8c0] sm:$0xff] }
 0x5d9   : > { %10436 = vmatpush3.msra.mxu1 %v8294_v53  ;;  %8721 = vmatprep.subr.mxu0 %v8482_v17  ;;  %v8402_v51 = vld [vmem:[#allocation7 + $0x460] sm:$0xff]  ;;  %v8541_v53 = vld [vmem:[#allocation7 + $0x8b8] sm:$0xff]  ;;  %v8447_v17 = vld [vmem:[#allocation7 + $0x5c8] sm:$0xff] }
 0x5da   : > { %10437 = vmatprep.subr.mxu1 %v8339_v57  ;;  %8722 = vmatpush1.msra.mxu0 %v8481_v54  ;;  %v8539_v57 = vld [vmem:[#allocation7 + $0x8a8] sm:$0xff]  ;;  %v8444_v54 = vld [vmem:[#allocation7 + $0x5b0] sm:$0xff] }
 0x5db   : > { %10438 = vmatpush3.msra.mxu1 %v8291_v55  ;;  %8723 = vmatprep.subr.mxu0 %v8479_v62  ;;  %v8536_v55 = vld [vmem:[#allocation7 + $0x890] sm:$0xff] }
 0x5dc   : > { %10439 = vmatprep.subr.mxu1 %v8336_v1  ;;  %8724 = vmatpush1.msra.mxu0 %v8478_v58  ;;  %v8396_v62 = vld [vmem:[#allocation7 + $0x430] sm:$0xff]  ;;  %v8533_v1 = vld [vmem:[#allocation7 + $0x878] sm:$0xff] }
 0x5dd   : > { %10440 = vmatpush3.msra.mxu1 %v8288_v63  ;;  %8725 = vmatprep.subr.mxu0 %v8476_v3  ;;  %v8393_v58 = vld [vmem:[#allocation7 + $0x418] sm:$0xff]  ;;  %v8532_v63 = vld [vmem:[#allocation7 + $0x870] sm:$0xff]  ;;  %v8438_v3 = vld [vmem:[#allocation7 + $0x580] sm:$0xff] }
 0x5de   : > { %10441 = vmatprep.subr.mxu1 %v8333_v0  ;;  %8726 = vmatpush1.msra.mxu0 %v8475_v2  ;;  %v8530_v0 = vld [vmem:[#allocation7 + $0x860] sm:$0xff] }
 0x5df   : > { %10442 = vmatpush3.msra.mxu1 %v8285_v10  ;;  %8727 = vmatprep.subr.mxu0 %v8473_v8  ;;  %v8390_v2 = vld [vmem:[#allocation7 + $0x400] sm:$0xff]  ;;  %v8529_v10 = vld [vmem:[#allocation7 + $0x858] sm:$0xff]  ;;  %v8435_v8 = vld [vmem:[#allocation7 + $0x568] sm:$0xff] }
 0x5e0   : > { %10443 = vmatprep.subr.mxu1 %v8330_v6  ;;  %8728 = vmatpush1.msra.mxu0 %v8472_v29  ;;  %v8527_v6 = vld [vmem:[#allocation7 + $0x848] sm:$0xff] }
 0x5e1   : > { %10444 = vmatpush3.msra.mxu1 %v8282_v4  ;;  %8729 = vmatprep.subr.mxu0 %v8470_v7  ;;  %v8387_v29 = vld [vmem:[#allocation7 + $0x3e8] sm:$0xff]  ;;  %v8526_v4 = vld [vmem:[#allocation7 + $0x840] sm:$0xff]  ;;  %v8432_v7 = vld [vmem:[#allocation7 + $0x550] sm:$0xff] }
 0x5e2   : > { %10445 = vmatprep.subr.mxu1 %v8327_v21  ;;  %8730 = vmatpush1.msra.mxu0 %v8469_v48  ;;  %v8524_v21 = vld [vmem:[#allocation7 + $0x830] sm:$0xff] }
 0x5e3   : > { %10446 = vmatpush3.msra.mxu1 %v8279_v9  ;;  %8731 = vmatprep.subr.mxu0 %v8467_v11  ;;  %v8384_v48 = vld [vmem:[#allocation7 + $0x3d0] sm:$0xff]  ;;  %v8523_v9 = vld [vmem:[#allocation7 + $0x828] sm:$0xff]  ;;  %v8429_v11 = vld [vmem:[#allocation7 + $0x538] sm:$0xff] }
 0x5e4   : > { %10447 = vmatprep.subr.mxu1 %v8324_v40  ;;  %8732 = vmatpush1.msra.mxu0 %v8466_v37  ;;  %v8521_v40 = vld [vmem:[#allocation7 + $0x818] sm:$0xff] }
 0x5e5   : > { %10448 = vmatpush3.msra.mxu1 %v8276_v31  ;;  %8733 = vmatprep.subr.mxu0 %v8464_v12  ;;  %v8381_v37 = vld [vmem:[#allocation7 + $0x3b8] sm:$0xff]  ;;  %v8520_v31 = vld [vmem:[#allocation7 + $0x810] sm:$0xff]  ;;  %v8426_v12 = vld [vmem:[#allocation7 + $0x520] sm:$0xff] }
 0x5e6   : > { %10449 = vmatprep.subr.mxu1 %v8321_v15  ;;  %8734 = vmatpush1.msra.mxu0 %v8463_v24  ;;  %v8518_v15 = vld [vmem:[#allocation7 + $0x800] sm:$0xff] }
 0x5e7   : > { %10450 = vmatpush3.msra.mxu1 %v8273_v19  ;;  %8735 = vmatprep.subr.mxu0 %v8461_v20  ;;  %v8378_v24 = vld [vmem:[#allocation7 + $0x3a0] sm:$0xff]  ;;  %v8517_v19 = vld [vmem:[#allocation7 + $0x7f8] sm:$0xff]  ;;  %v8423_v20 = vld [vmem:[#allocation7 + $0x508] sm:$0xff] }
 0x5e8   : > { %10451 = vmatprep.subr.mxu1 %v8318_v22  ;;  %8736 = vmatpush1.msra.mxu0 %v8460_v45  ;;  %v8515_v22 = vld [vmem:[#allocation7 + $0x7e8] sm:$0xff] }
 0x5e9   : > { %10452 = vmatpush3.msra.mxu1 %v8270_v27  ;;  %8737 = vmatprep.subr.mxu0 %v8458_v33  ;;  %v8375_v45 = vld [vmem:[#allocation7 + $0x388] sm:$0xff]  ;;  %v8514_v27 = vld [vmem:[#allocation7 + $0x7e0] sm:$0xff]  ;;  %v8420_v33 = vld [vmem:[#allocation7 + $0x4f0] sm:$0xff] }
 0x5ea   : > { %10453 = vmatprep.subr.mxu1 %v8315_v36  ;;  %8738 = vmatpush1.msra.mxu0 %v8457_v60  ;;  %v8512_v36 = vld [vmem:[#allocation7 + $0x7d0] sm:$0xff] }
 0x5eb   : > { %10454 = vmatpush3.msra.mxu1 %v8267_v61  ;;  %8739 = vmatprep.subr.mxu0 %v8455_v18  ;;  %v8217_v60 = vld [vmem:[#allocation2 + $0x20] sm:$0xff] }
 0x5ec   : > { %10455 = vmatprep.subr.mxu1 %v8312_v43  ;;  %8740 = vmatpush1.msra.mxu0 %v8454_v44  ;;  %v8372_v61 = vld [vmem:[#allocation7 + $0x370] sm:$0xff]  ;;  %v8511_v18 = vld [vmem:[#allocation7 + $0x7c8] sm:$0xff]  ;;  %v8417_v43 = vld [vmem:[#allocation7 + $0x4d8] sm:$0xff] }
 0x5ed   : > { %10456 = vmatpush3.msra.mxu1 %v8264_v34  ;;  %8741 = vmatprep.subr.mxu0 %v8548_v46  ;;  %v8509_v44 = vld [vmem:[#allocation7 + $0x7b8] sm:$0xff]  ;;  %v8216_v34 = vld [vmem:[#allocation2 + $0x18] sm:$0xff] }
 0x5ee   : > { %8844 = vmatprep.mubr.f32.mxu1 %v8257_v38  ;;  %10460 = vmatprep.subr.mxu1 %v8453_v42  ;;  %v8538_v38 = vld [vmem:[#allocation7 + $0x8a0] sm:$0xff]  ;;  %v8369_v46 = vld [vmem:[#allocation7 + $0x358] sm:$0xff]  ;;  %v8508_v42 = vld [vmem:[#allocation7 + $0x7b0] sm:$0xff] }
 0x5ef   : > { %8742 = vmatpush2.msra.mxu0 %v8547_v30  ;;  %8845 = vmatmul.mubr.f32.vlgmr.msra.gmra.mxu1 %v8256_v13  ;;  %v8441_v13 = vld [vmem:[#allocation7 + $0x598] sm:$0xff]  ;;  %v8255_v30 = vadd.f32 %v14100_v52, %v8217_v60 }
 0x5f0   : > { %8743 = vmatprep.subr.mxu0 %v8545_v49  ;;  %10461 = vmatpush3.msra.mxu1 %v8405_v25  ;;  %v8414_v49 = vld [vmem:[#allocation7 + $0x4c0] sm:$0xff]  ;;  %v9015_v60 = vld [vmem:[#allocation10 + $0xb0] sm:$0xff] }
 0x5f1   : > { %8744 = vmatpush2.msra.mxu0 %v8544_v50  ;;  %10462 = vmatprep.subr.mxu1 %v8450_v32  ;;  %v8506_v25 = vld [vmem:[#allocation7 + $0x7a0] sm:$0xff]  ;;  %v8505_v32 = vld [vmem:[#allocation7 + $0x798] sm:$0xff]  ;;  %v8261_v52 = vmax.f32 %v8255_v30, 0.0 }
 0x5f2   : > { %8745 = vmatprep.subr.mxu0 %v8542_v26  ;;  %10463 = vmatpush3.msra.mxu1 %v8402_v51  ;;  %v8366_v50 = vld [vmem:[#allocation7 + $0x340] sm:$0xff]  ;;  %v14140_v26 = vadd.f32 %v14102_v35, %v8216_v34  ;;  %v8411_v51 = vld [vmem:[#allocation7 + $0x4a8] sm:$0xff]  ;;  %v8549_v35 = vld [vmem:[#allocation7 + $0x8f8] sm:$0xff] }
 0x5f3   : > { %8746 = vmatpush2.msra.mxu0 %v8541_v53  ;;  %10464 = vmatprep.subr.mxu1 %v8447_v17  ;;  %v8503_v53 = vld [vmem:[#allocation7 + $0x788] sm:$0xff]  ;;  %v8468_v34 = vld [vmem:[#allocation7 + $0x670] sm:$0xff]  ;;  %v8510_v30 = vld [vmem:[#allocation7 + $0x7c0] sm:$0xff] }
 0x5f4   : > { %8747 = vmatprep.subr.mxu0 %v8539_v57  ;;  %10465 = vmatpush3.msra.mxu1 %v8399_v59  ;;  %v8363_v17 = vld [vmem:[#allocation7 + $0x328] sm:$0xff]  ;;  %v8502_v57 = vld [vmem:[#allocation7 + $0x780] sm:$0xff]  ;;  %v8408_v59 = vld [vmem:[#allocation7 + $0x490] sm:$0xff] }
 0x5f5   : > { %8748 = vmatpush2.msra.mxu0 %v8538_v38  ;;  %10466 = vmatprep.subr.mxu1 %v8444_v54  ;;  %v8360_v38 = vld [vmem:[#allocation7 + $0x310] sm:$0xff]  ;;  %v8260_v54 = vmax.f32 %v14140_v26, 0.0  ;;  %v8993_v26 = vld [vmem:[#allocation10] sm:$0xff] }
 0x5f6   : > { %8749 = vmatprep.subr.mxu0 %v8536_v55  ;;  %10467 = vmatpush3.msra.mxu1 %v8396_v62  ;;  %v8501_v55 = vld [vmem:[#allocation7 + $0x778] sm:$0xff]  ;;  %v8546_v62 = vld [vmem:[#allocation7 + $0x8e0] sm:$0xff] }
 0x5f7   : > { %8750 = vmatpush2.msra.mxu0 %v8535_v5  ;;  %10468 = vmatprep.subr.mxu1 %v8441_v13  ;;  %v8498_v5 = vld [vmem:[#allocation7 + $0x760] sm:$0xff] }
 0x5f8   : > { %8751 = vmatprep.subr.mxu0 %v8533_v1  ;;  %10469 = vmatpush3.msra.mxu1 %v8393_v58  ;;  %v9024_v13 = vld [vmem:[#allocation10 + $0xf8] sm:$0xff]  ;;  %v9023_v58 = vld [vmem:[#allocation10 + $0xf0] sm:$0xff] }
 0x5f9   : > { %8752 = vmatpush2.msra.mxu0 %v8532_v63  ;;  %10470 = vmatprep.subr.mxu1 %v8438_v3  ;;  %v9008_v1 = vld [vmem:[#allocation10 + $0x78] sm:$0xff]  ;;  %v8543_v63 = vld [vmem:[#allocation7 + $0x8c8] sm:$0xff]  ;;  %v9007_v3 = vld [vmem:[#allocation10 + $0x70] sm:$0xff] }
 0x5fa   : > { %8753 = vmatprep.subr.mxu0 %v8530_v0  ;;  %10471 = vmatpush3.msra.mxu1 %v8390_v2  ;;  %v8540_v0 = vld [vmem:[#allocation7 + $0x8b0] sm:$0xff]  ;;  %v9021_v2 = vld [vmem:[#allocation10 + $0xe0] sm:$0xff] }
 0x5fb   : > { %8754 = vmatpush2.msra.mxu0 %v8529_v10  ;;  %10472 = vmatprep.subr.mxu1 %v8435_v8  ;;  %v8537_v10 = vld [vmem:[#allocation7 + $0x898] sm:$0xff]  ;;  %v9005_v8 = vld [vmem:[#allocation10 + $0x60] sm:$0xff] }
 0x5fc   : > { %8755 = vmatprep.subr.mxu0 %v8527_v6  ;;  %10473 = vmatpush3.msra.mxu1 %v8387_v29  ;;  %v8489_v6 = vld [vmem:[#allocation7 + $0x718] sm:$0xff] }
 0x5fd   : > { %8756 = vmatpush2.msra.mxu0 %v8526_v4  ;;  %10474 = vmatprep.subr.mxu1 %v8432_v7  ;;  %v9020_v29 = vld [vmem:[#allocation10 + $0xd8] sm:$0xff] }
 0x5fe   : > { %8757 = vmatprep.subr.mxu0 %v8524_v21  ;;  %10475 = vmatpush3.msra.mxu1 %v8384_v48  ;;  %v8534_v4 = vld [vmem:[#allocation7 + $0x880] sm:$0xff]  ;;  %v9019_v48 = vld [vmem:[#allocation10 + $0xd0] sm:$0xff] }
 0x5ff   : > { %8758 = vmatpush2.msra.mxu0 %v8523_v9  ;;  %10476 = vmatprep.subr.mxu1 %v8429_v11  ;;  %v9004_v7 = vld [vmem:[#allocation10 + $0x58] sm:$0xff]  ;;  %v8531_v9 = vld [vmem:[#allocation7 + $0x868] sm:$0xff]  ;;  %v9003_v11 = vld [vmem:[#allocation10 + $0x50] sm:$0xff] }
 0x600   : > { %8759 = vmatprep.subr.mxu0 %v8521_v40  ;;  %10477 = vmatpush3.msra.mxu1 %v8381_v37  ;;  %v8486_v21 = vld [vmem:[#allocation7 + $0x700] sm:$0xff]  ;;  %v8483_v40 = vld [vmem:[#allocation7 + $0x6e8] sm:$0xff] }
 0x601   : > { %8760 = vmatpush2.msra.mxu0 %v8520_v31  ;;  %10478 = vmatprep.subr.mxu1 %v8426_v12  ;;  %v9018_v37 = vld [vmem:[#allocation10 + $0xc8] sm:$0xff] }
 0x602   : > { %8761 = vmatprep.subr.mxu0 %v8518_v15  ;;  %10479 = vmatpush3.msra.mxu1 %v8378_v24  ;;  %v8528_v31 = vld [vmem:[#allocation7 + $0x850] sm:$0xff]  ;;  %v9017_v24 = vld [vmem:[#allocation10 + $0xc0] sm:$0xff] }
 0x603   : > { %8762 = vmatpush2.msra.mxu0 %v8517_v19  ;;  %10480 = vmatprep.subr.mxu1 %v8423_v20  ;;  %v9002_v12 = vld [vmem:[#allocation10 + $0x48] sm:$0xff]  ;;  %v8525_v19 = vld [vmem:[#allocation7 + $0x838] sm:$0xff]  ;;  %v9001_v20 = vld [vmem:[#allocation10 + $0x40] sm:$0xff] }
 0x604   : > { %8763 = vmatprep.subr.mxu0 %v8515_v22  ;;  %10481 = vmatpush3.msra.mxu1 %v8375_v45  ;;  %v8480_v15 = vld [vmem:[#allocation7 + $0x6d0] sm:$0xff]  ;;  %v8477_v22 = vld [vmem:[#allocation7 + $0x6b8] sm:$0xff] }
 0x605   : > { %8764 = vmatpush2.msra.mxu0 %v8514_v27  ;;  %10482 = vmatprep.subr.mxu1 %v8420_v33  ;;  %v9016_v45 = vld [vmem:[#allocation10 + $0xb8] sm:$0xff] }
 0x606   : > { %8765 = vmatprep.subr.mxu0 %v8512_v36  ;;  %10483 = vmatpush3.msra.mxu1 %v8372_v61  ;;  %v8522_v27 = vld [vmem:[#allocation7 + $0x820] sm:$0xff]  ;;  %v8519_v61 = vld [vmem:[#allocation7 + $0x808] sm:$0xff] }
 0x607   : > { %8766 = vmatpush2.msra.mxu0 %v8511_v18  ;;  %10484 = vmatprep.subr.mxu1 %v8417_v43  ;;  %v9000_v33 = vld [vmem:[#allocation10 + $0x38] sm:$0xff]  ;;  %v8999_v18 = vld [vmem:[#allocation10 + $0x30] sm:$0xff]  ;;  %v8471_v43 = vld [vmem:[#allocation7 + $0x688] sm:$0xff] }
 0x608   : > { %8767 = vmatprep.subr.mxu0 %v8509_v44  ;;  %10485 = vmatpush3.msra.mxu1 %v8369_v46  ;;  %v8474_v36 = vld [vmem:[#allocation7 + $0x6a0] sm:$0xff]  ;;  %v8516_v44 = vld [vmem:[#allocation7 + $0x7f0] sm:$0xff]  ;;  %v8513_v46 = vld [vmem:[#allocation7 + $0x7d8] sm:$0xff] }
 0x609   : > { %8768 = vmatpush2.msra.mxu0 %v8508_v42  ;;  %10486 = vmatprep.subr.mxu1 %v8414_v49  ;;  %v8465_v42 = vld [vmem:[#allocation7 + $0x658] sm:$0xff]  ;;  %v8462_v49 = vld [vmem:[#allocation7 + $0x640] sm:$0xff] }
 0x60a   : > { %8769 = vmatprep.subr.mxu0 %v8506_v25  ;;  %10487 = vmatpush3.msra.mxu1 %v8366_v50  ;;  %v8507_v25 = vld [vmem:[#allocation7 + $0x7a8] sm:$0xff] }
 0x60b   : > { %8770 = vmatpush2.msra.mxu0 %v8505_v32  ;;  %10488 = vmatprep.subr.mxu1 %v8411_v51  ;;  %v8459_v50 = vld [vmem:[#allocation7 + $0x628] sm:$0xff]  ;;  %v8504_v32 = vld [vmem:[#allocation7 + $0x790] sm:$0xff] }
 0x60c   : > { %8771 = vmatprep.subr.mxu0 %v8503_v53  ;;  %10489 = vmatpush3.msra.mxu1 %v8363_v17  ;;  %v8456_v51 = vld [vmem:[#allocation7 + $0x610] sm:$0xff] }
 0x60d   : > { %8772 = vmatpush2.msra.mxu0 %v8502_v57  ;;  %10490 = vmatprep.subr.mxu1 %v8408_v59  ;;  %v9014_v53 = vld [vmem:[#allocation10 + $0xa8] sm:$0xff]  ;;  %v9013_v57 = vld [vmem:[#allocation10 + $0xa0] sm:$0xff]  ;;  %v9012_v59 = vld [vmem:[#allocation10 + $0x98] sm:$0xff] }
 0x60e   : > { %8773 = vmatprep.mubr.f32.mxu0 %v8261_v52  ;;  %10491 = vmatpush3.msra.mxu1 %v8360_v38  ;;  %v8998_v17 = vld [vmem:[#allocation10 + $0x28] sm:$0xff]  ;;  %v8996_v38 = vld [vmem:[#allocation10 + $0x18] sm:$0xff] }
 0x60f   : > { %8914 = vmatprep.mubr.f32.mxu1 %v8259_v23  ;;  %8774 = vmatmul.mubr.f32.vlgmr.msra.gmra.mxu0 %v8260_v54  ;;  %v9022_v23 = vld [vmem:[#allocation10 + $0xe8] sm:$0xff] }
 0x610   : > { %8915 = vmatmul.mubr.f32.vlgmr.msra.gmra.mxu1 %v8258_v16  ;;  %10495 = vmatprep.subr.mxu0 %v8549_v35  ;;  %v8492_v16 = vld [vmem:[#allocation7 + $0x730] sm:$0xff] }
 0x611   : > { %8984 = vmatprep.mubr.f32.mxu0 %v8261_v52  ;;  %10496 = vmatpush3.msra.mxu0 %v8501_v55  ;;  %v8997_v52 = vld [vmem:[#allocation10 + $0x20] sm:$0xff]  ;;  %v9011_v35 = vld [vmem:[#allocation10 + $0x90] sm:$0xff] }
 0x612   : > { %10530 = vmatprep.subr.mxu1 %v9024_v13  ;;  %10497 = vmatprep.subr.mxu0 %v8546_v62  ;;  %v8995_v55 = vld [vmem:[#allocation10 + $0x10] sm:$0xff]  ;;  %v9010_v62 = vld [vmem:[#allocation10 + $0x88] sm:$0xff]  ;;  %v9009_v13 = vld [vmem:[#allocation10 + $0x80] sm:$0xff] }
 0x613   : > { %10531 = vmatpush3.msra.mxu1 %v9008_v1  ;;  %10498 = vmatpush3.msra.mxu0 %v8498_v5  ;;  %v8994_v5 = vld [vmem:[#allocation10 + $0x8] sm:$0xff]  ;;  %v12573_v1 = vmov 0.0  }
 0x614   : > { %10532 = vmatprep.subr.mxu1 %v9023_v58  ;;  %10499 = vmatprep.subr.mxu0 %v8543_v63  ;;  %v9039_v58 = vld [vmem:[#allocation10 + $0x170] sm:$0xff]  ;;  %v9038_v63 = vld [vmem:[#allocation10 + $0x168] sm:$0xff] }
 0x615   : > { %10533 = vmatpush3.msra.mxu1 %v9007_v3  ;;  %10500 = vmatpush3.msra.mxu0 %v8495_v39  ;;  %v9037_v3 = vld [vmem:[#allocation10 + $0x160] sm:$0xff]  ;;  %v9036_v39 = vld [vmem:[#allocation10 + $0x158] sm:$0xff] }
 0x616   : > { %10534 = vmatprep.subr.mxu1 %v9022_v23  ;;  %10501 = vmatprep.subr.mxu0 %v8540_v0  ;;  %v9035_v23 = vld [vmem:[#allocation10 + $0x150] sm:$0xff]  ;;  %v9034_v0 = vld [vmem:[#allocation10 + $0x148] sm:$0xff] }
 0x617   : > { %10535 = vmatpush3.msra.mxu1 %v9006_v28  ;;  %10502 = vmatpush3.msra.mxu0 %v8492_v16  ;;  %v9033_v28 = vld [vmem:[#allocation10 + $0x140] sm:$0xff]  ;;  %v9032_v16 = vld [vmem:[#allocation10 + $0x138] sm:$0xff] }
 0x618   : > { %10536 = vmatprep.subr.mxu1 %v9021_v2  ;;  %10503 = vmatprep.subr.mxu0 %v8537_v10  ;;  %v9031_v2 = vld [vmem:[#allocation10 + $0x130] sm:$0xff]  ;;  %v9030_v10 = vld [vmem:[#allocation10 + $0x128] sm:$0xff] }
 0x619   : > { %10537 = vmatpush3.msra.mxu1 %v9005_v8  ;;  %10504 = vmatpush3.msra.mxu0 %v8489_v6  ;;  %v9029_v8 = vld [vmem:[#allocation10 + $0x120] sm:$0xff]  ;;  %v9028_v6 = vld [vmem:[#allocation10 + $0x118] sm:$0xff] }
 0x61a   : > { %10538 = vmatprep.subr.mxu1 %v9020_v29  ;;  %10505 = vmatprep.subr.mxu0 %v8534_v4  ;;  %v9027_v29 = vld [vmem:[#allocation10 + $0x110] sm:$0xff]  ;;  %v9026_v4 = vld [vmem:[#allocation10 + $0x108] sm:$0xff] }
 0x61b   : > { %10539 = vmatpush3.msra.mxu1 %v9004_v7  ;;  %10506 = vmatpush3.msra.mxu0 %v8486_v21  ;;  %v9025_v7 = vld [vmem:[#allocation10 + $0x100] sm:$0xff]  ;;  %v8550_v21 = vld [vmem:[#allocation8] sm:$0x7] }
 0x61c   : > { %10540 = vmatprep.subr.mxu1 %v9019_v48  ;;  %10507 = vmatprep.subr.mxu0 %v8531_v9  ;;  %v8555_v9 = vrot.slane %v8550_v21, %v8222_v47 }
 0x61d   : > { %10541 = vmatpush3.msra.mxu1 %v9003_v11  ;;  %10508 = vmatpush3.msra.mxu0 %v8483_v40  ;;  %v8559_v11 = vrot.slane %v8550_v21, %v8226_v41  ;;  %v8563_v41 = vrot.slane %v8550_v21, %v8230_v56 }
 0x61e   : > { %10542 = vmatprep.subr.mxu1 %v9018_v37  ;;  %10509 = vmatprep.subr.mxu0 %v8528_v31 }
 0x61f   : > { %10543 = vmatpush3.msra.mxu1 %v9002_v12  ;;  %10510 = vmatpush3.msra.mxu0 %v8480_v15 }
 0x620   : > { %10544 = vmatprep.subr.mxu1 %v9017_v24  ;;  %10511 = vmatprep.subr.mxu0 %v8525_v19 }
 0x621   : > { %10545 = vmatpush3.msra.mxu1 %v9001_v20  ;;  %10512 = vmatpush3.msra.mxu0 %v8477_v22 }
 0x622   : > { %10546 = vmatprep.subr.mxu1 %v9016_v45  ;;  %10513 = vmatprep.subr.mxu0 %v8522_v27 }
 0x623   : > { %10547 = vmatpush3.msra.mxu1 %v9000_v33  ;;  %10514 = vmatpush3.msra.mxu0 %v8474_v36 }
 0x624   : > { %10548 = vmatprep.subr.mxu1 %v9015_v60  ;;  %10515 = vmatprep.subr.mxu0 %v8519_v61 }
 0x625   : > { %10549 = vmatpush3.msra.mxu1 %v8999_v18  ;;  %10516 = vmatpush3.msra.mxu0 %v8471_v43 }
 0x626   : > { %10517 = vmatprep.subr.mxu0 %v8516_v44  ;;  %10550 = vmatprep.subr.mxu1 %v9014_v53 }
 0x627   : > { %10518 = vmatpush3.msra.mxu0 %v8468_v34  ;;  %10551 = vmatpush3.msra.mxu1 %v8998_v17  ;;  %v10421_v17 = vld [vmem:[#allocation11] ss:$0 sm:$0xff] }
 0x628   : > { %10519 = vmatprep.subr.mxu0 %v8513_v46  ;;  %10552 = vmatprep.subr.mxu1 %v9013_v57 }
 0x629   : > { %10520 = vmatpush3.msra.mxu0 %v8465_v42  ;;  %10553 = vmatpush3.msra.mxu1 %v8997_v52 }
 0x62a   : > { %10521 = vmatprep.subr.mxu0 %v8510_v30  ;;  %10554 = vmatprep.subr.mxu1 %v9012_v59 }
 0x62b   : > { %10522 = vmatpush3.msra.mxu0 %v8462_v49  ;;  %10555 = vmatpush3.msra.mxu1 %v8996_v38 }
 0x62c   : > { %10523 = vmatprep.subr.mxu0 %v8507_v25  ;;  %10556 = vmatprep.subr.mxu1 %v9011_v35 }
 0x62d   : > { %10524 = vmatpush3.msra.mxu0 %v8459_v50  ;;  %10557 = vmatpush3.msra.mxu1 %v8995_v55 }
 0x62e   : > { %10525 = vmatprep.subr.mxu0 %v8504_v32  ;;  %10558 = vmatprep.subr.mxu1 %v9010_v62 }
 0x62f   : > { %10526 = vmatpush3.msra.mxu0 %v8456_v51  ;;  %10559 = vmatpush3.msra.mxu1 %v8994_v5 }
 0x630   : > { %8985 = vmatmul.mubr.f32.vlgmr.msra.gmra.mxu0 %v8260_v54  ;;  %10560 = vmatprep.subr.mxu1 %v9009_v13  ;;  %v9040_v54 = vld [vmem:[#allocation10 + $0x178] sm:$0xff] }
 0x631   : > { %10561 = vmatpush3.msra.mxu1 %v8993_v26  ;;  %10582 = vmatprep.subr.mxu0 %v12573_v1 }
 0x632   : > { %10583 = vmatpush3.msra.mxu0 %v9040_v54  ;;  %10614 = vmatprep.mubr.msk.f32.mxu0 %vm12574_vm0, %v12573_v1 }
 0x633   : > { %10584 = vmatprep.subr.mxu0 %v12573_v1 }
 0x634   : > { %10585 = vmatpush3.msra.mxu0 %v9039_v58 }
 0x635   : > { %10586 = vmatprep.subr.mxu0 %v12573_v1 }
 0x636   : > { %10587 = vmatpush3.msra.mxu0 %v9038_v63 }
 0x637   : > { %10588 = vmatprep.subr.mxu0 %v12573_v1 }
 0x638   : > { %10589 = vmatpush3.msra.mxu0 %v9037_v3 }
 0x639   : > { %10590 = vmatprep.subr.mxu0 %v12573_v1 }
 0x63a   : > { %10591 = vmatpush3.msra.mxu0 %v9036_v39 }
 0x63b   : > { %10592 = vmatprep.subr.mxu0 %v12573_v1 }
 0x63c   : > { %10593 = vmatpush3.msra.mxu0 %v9035_v23 }
 0x63d   : > { %10594 = vmatprep.subr.mxu0 %v12573_v1 }
 0x63e   : > { %10595 = vmatpush3.msra.mxu0 %v9034_v0 }
 0x63f   : > { %10596 = vmatprep.subr.mxu0 %v12573_v1 }
 0x640   : > { %10597 = vmatpush3.msra.mxu0 %v9033_v28 }
 0x641   : > { %10598 = vmatprep.subr.mxu0 %v12573_v1 }
 0x642   : > { %10599 = vmatpush3.msra.mxu0 %v9032_v16 }
 0x643   : > { %10600 = vmatprep.subr.mxu0 %v12573_v1 }
 0x644   : > { %10601 = vmatpush3.msra.mxu0 %v9031_v2 }
 0x645   : > { %10602 = vmatprep.subr.mxu0 %v12573_v1 }
 0x646   : > { %10603 = vmatpush3.msra.mxu0 %v9030_v10 }
 0x647   : > { %10604 = vmatprep.subr.mxu0 %v12573_v1 }
 0x648   : > { %10605 = vmatpush3.msra.mxu0 %v9029_v8 }
 0x649   : > { %10606 = vmatprep.subr.mxu0 %v12573_v1 }
 0x64a   : > { %10607 = vmatpush3.msra.mxu0 %v9028_v6 }
 0x64b   : > { %10608 = vmatprep.subr.mxu0 %v12573_v1 }
 0x64c   : > { %10609 = vmatpush3.msra.mxu0 %v9027_v29 }
 0x64d   : > { %10610 = vmatprep.subr.mxu0 %v12573_v1 }
 0x64e   : > { %10611 = vmatpush3.msra.mxu0 %v9026_v4 }
 0x64f   : > { %10612 = vmatprep.subr.mxu0 %v12573_v1 }
 0x650   : > { %10613 = vmatpush3.msra.mxu0 %v9025_v7 }
 0x68c   : > { %v8633_v48 = vpop.f32.mrf.mxu0 }
 0x68d   : > { %v8634_v31 = vadd.f32 %v8633_v48, %v8555_v9 }
 0x68e   : > { %v8635_v40 = vpop.f32.mrf.mxu0  ;;  %v8704_v37 = vpop.f32.mrf.mxu1 }
 0x68f   : > { %v8636_v12 = vadd.f32 %v8635_v40, %v8559_v11  ;;  %v8705_v24 = vadd.f32 %v8704_v37, %v8634_v31 }
 0x690   : > { %v8706_v15 = vpop.f32.mrf.mxu1 }
 0x691   : > { %v8707_v20 = vadd.f32 %v8706_v15, %v8636_v12 }
 0x6af   : > { %v10457_v60 = vpop.f32.mrf.mxu1 }
 0x6b1   : > { %v10458_v47 = vpop.f32.mrf.mxu1 }
 0x6b2   : > { %v10459_v18 = vadd.f32 %v10458_v47, %v10457_v60 }
 0x6b4   : > { %v8847_v44 = vadd.f32 %v10459_v18, %v8563_v41 }
 0x6cf   : > { %v8775_v19 = vpop.f32.mrf.mxu0 }
 0x6d0   : > { %v8776_v22 = vadd.f32 %v8775_v19, %v8705_v24  ;;  %v10492_v61 = vpop.f32.mrf.mxu1 }
 0x6d1   : > { %v8777_v45 = vpop.f32.mrf.mxu0 }
 0x6d2   : > { %v8778_v27 = vadd.f32 %v8777_v45, %v8707_v20  ;;  %v8990_v36 = vmax.f32 %v8776_v22, 0.0  ;;  %v10493_v43 = vpop.f32.mrf.mxu1 }
 0x6d3   : > { %v10494_v34 = vadd.f32 %v10493_v43, %v10492_v61 }
 0x6d4   : > { %v8991_v33 = vmax.f32 %v8778_v27, 0.0 }
 0x6d5   : > { %v8917_v30 = vadd.f32 %v10494_v34, %v8847_v44 }
 0x6d6   : > { %9112 = vmatprep.mubr.f32.mxu1 %v8991_v33 }
 0x6d7   : > { %9113 = vmatmul.mubr.f32.vlgmr.msra.gmra.mxu1 %v8990_v36 }
 0x6f0   : > { %v10527_v46 = vpop.f32.mrf.mxu0 }
 0x6f2   : > { %v10528_v42 = vpop.f32.mrf.mxu0 }
 0x6f3   : > { %v10529_v49 = vadd.f32 %v10528_v42, %v10527_v46 }
 0x6f5   : > { %v8987_v25 = vadd.f32 %v10529_v49, %v8917_v30 }
 0x6f7   : > { %v8992_v50 = vmax.f32 %v8987_v25, 0.0 }
 0x6f9   : > { %10615 = vmatmul.mubr.f32.vlgmr.msra.gmra.mxu0 %v8992_v50 }
 0x797   : > { %v10562_v32 = vpop.f32.mrf.mxu1 }
 0x799   : > { %v10563_v51 = vpop.f32.mrf.mxu1 }
 0x79a   : > { %v10564_v53 = vadd.f32 %v10563_v51, %v10562_v32 }
 0x79c   : > { %v9115_v57 = vadd.f32 %v10564_v53, %v10421_v17 }
 0x7b9   : > { %v9184_v52 = vpop.f32.mrf.mxu0 }
 0x7ba   : > { %v9185_v59 = vadd.f32 %v9184_v52, %v9115_v57 }
 0x7bb   : > { %v10616_v14 = vpop.f32.mrf.mxu0 }
 0x7bc   : > { %9188 = vst [vmem:[%s14185_s7] sm:$0xff] %v9185_v59 }
 0x7bd PF: > { %s23_s29 = sadd.s32 1, %s12560_s29   ;;  %s14204_s24 = smov %s12544_s25 }
 0x7be   : > { %p20_p13 = scmp.ge.s32.totalorder %s23_s29, 4   ;;  %s14205_s25 = smov %s12548_s26 }
 0x7bf   : > { %s14206_s26 = smov %s12735_s23  ;;  %s14207_s27 = smov %s12556_s28 }
 0x7c0   : > { %s14208_s28 = smov %s14210_s17  ;;  %22 = sbr.rel (!%p20_p13) target bundleno = 9 (0x9), region = 120 }
 0x7c5   :  { %9208 = vsyncpa [#allocation4], 1 }
 0x7c6   :  { %9210 = vsyncpa [#allocation4 + $0x1], 1 }
 0x7c7   :  { %9211 = vsyncpa [#allocation6], 1 }
 0x7c8   :  { %9212 = vsyncpa [#allocation9], 1 }
 0x7c9   :  { %9213 = vsyncpa [#allocation12], 1 }

</bundles_post_ra>
